<compile_context>
chip_gen: v7x
topology: tpu7x:2x2x1
jax: 0.10.0
libtpu: 0.0.40
codegen_flags: <defaults>
</compile_context>

<pallas_src>
import functools

import jax
import jax.numpy as jnp
from jax.experimental import pallas as pl
from jax.experimental.pallas import tpu as pltpu


def _round_up(x, m):
    return -(-x // m) * m


def _softmax_lanes(logits):
    """Softmax over the last (lane) axis of a (Bb, S) fp32 array."""
    m = jnp.max(logits, axis=-1, keepdims=True)
    e = jnp.exp(logits - m)
    return e * pl.reciprocal(jnp.sum(e, axis=-1, keepdims=True), approx=True)


def _mask_tail(logits, valid):
    """Mask padded key positions (index >= valid) with a huge negative logit."""
    Bb, S = logits.shape
    if valid == S:
        return logits
    idx = jax.lax.broadcasted_iota(jnp.int32, (Bb, S), 1)
    return jnp.where(idx < valid, logits, jnp.float32(-1e30))


def coattn_kernel(q_ref, v_ref, w_ref, b_ref, whxt_ref, out_ref, *, T, N, k):
    """One sublane-aligned batch block of the alternating co-attention forward."""
    Bb, T_pad, d = q_ref.shape
    _, N_pad, _ = v_ref.shape
    f32 = jnp.float32
    mm_dt = w_ref.dtype                                # matmul (MXU) dtype, e.g. bf16

    Qb = q_ref[...]                                    # (Bb, T_pad, d) matmul dtype
    Vb = v_ref[...]                                    # (Bb, N_pad, d)
    Qf = Qb.astype(f32)                                # fp32 copies for weighted sums
    Vf = Vb.astype(f32)

    # --- batch-independent projections, fused into two big MXU matmuls ---
    # W_all column layout: [ Wx1 | Wx3 | Wx2 | Wg2 | Wg3 ]
    QW = jnp.dot(Qb.reshape(Bb * T_pad, d), w_ref[:, 0:2 * k],
                 preferred_element_type=f32)           # (Bb*T_pad, 2k)
    VW = jnp.dot(Vb.reshape(Bb * N_pad, d), w_ref[:, 2 * k:3 * k],
                 preferred_element_type=f32)           # (Bb*N_pad, k)
    qx1 = QW[:, 0:k].reshape(Bb, T_pad, k)             # Q @ Wx1
    qx3 = QW[:, k:2 * k].reshape(Bb, T_pad, k)         # Q @ Wx3
    vx2 = VW.reshape(Bb, N_pad, k)                     # V @ Wx2

    # ---- step 1: attend over the question Q ----
    H1 = jnp.tanh(qx1 + b_ref[0:1, :])                                    # (Bb,T_pad,k) fp32
    l1 = _mask_tail(jnp.sum(H1 * whxt_ref[0:1, :], axis=-1), T)           # (Bb,T_pad)
    ax1 = _softmax_lanes(l1)
    shat = jnp.sum(Qf * ax1[:, :, None], axis=1)                          # (Bb,d) VPU+XLU

    # ---- step 2: attend over the image V, guided by shat ----
    g2 = jnp.dot(shat.astype(mm_dt), w_ref[:, 3 * k:4 * k],
                 preferred_element_type=f32)                              # (Bb,k)
    H2 = jnp.tanh(vx2 + g2[:, None, :] + b_ref[1:2, :])                   # (Bb,N_pad,k)
    l2 = _mask_tail(jnp.sum(H2 * whxt_ref[1:2, :], axis=-1), N)
    ax2 = _softmax_lanes(l2)
    vhat = jnp.sum(Vf * ax2[:, :, None], axis=1)                          # (Bb,d)

    # ---- step 3: re-attend over the question Q, guided by vhat ----
    g3 = jnp.dot(vhat.astype(mm_dt), w_ref[:, 4 * k:5 * k],
                 preferred_element_type=f32)                              # (Bb,k)
    H3 = jnp.tanh(qx3 + g3[:, None, :] + b_ref[2:3, :])                   # (Bb,T_pad,k)
    l3 = _mask_tail(jnp.sum(H3 * whxt_ref[2:3, :], axis=-1), T)
    ax3 = _softmax_lanes(l3)
    shat2 = jnp.sum(Qf * ax3[:, :, None], axis=1)                         # (Bb,d)

    # Lane-dense packed output block [ shat2 | vhat ]; no in-kernel concatenate.
    out_ref[:, 0:d] = shat2.astype(out_ref.dtype)
    out_ref[:, d:2 * d] = vhat.astype(out_ref.dtype)


def alternating_co_attention(Q, V, params, *, batch_block=None,
                             matmul_dtype=jnp.bfloat16,
                             vmem_budget_bytes=48 * 1024 * 1024):
    """Q: (B, T, d), V: (B, N, d). Returns (shat2, vhat), each (B, d)."""
    B, T, d = Q.shape
    _, N, _ = V.shape
    k = params["wx1"].shape[1]
    out_dtype = Q.dtype

    in_item = jnp.dtype(matmul_dtype).itemsize
    out_item = jnp.dtype(out_dtype).itemsize
    sub_in = max(8, 32 // in_item)       # sublane tile of matmul dtype (8 f32, 16 bf16)
    sub_out = max(8, 32 // out_item)     # sublane tile of the output dtype

    # Pad sequence axes so the in-kernel reshapes / column slices are layout no-ops.
    T_pad = _round_up(T, sub_in)
    N_pad = _round_up(N, sub_in)

    def vmem_estimate(bb):
        q_blk = 2 * bb * T_pad * d * in_item            # double-buffered input blocks
        v_blk = 2 * bb * N_pad * d * in_item
        w_blk = d * 5 * k * in_item                     # single-buffered weights
        small = 2 * 2 * 3 * k * 4                       # biases / whx^T
        out_blk = 2 * bb * 2 * d * out_item
        # fp32 intermediates: QW/H1/H3 + fp32 Q copy (T side); VW/H2 + fp32 V copy (N side)
        inter = 4 * (bb * T_pad * (4 * k + 2 * d) + bb * N_pad * (2 * k + 2 * d))
        return q_blk + v_blk + w_blk + small + out_blk + inter

    # ---- pick a batch block: fill MXU rows (Bb*T_pad >= 256) but stay inside VMEM ----
    if batch_block is None:
        batch_block = max(sub_out, _round_up(-(-256 // T_pad), sub_out))
    Bb = min(_round_up(B, sub_out), _round_up(batch_block, sub_out))
    Bb = max(Bb, sub_out)
    while Bb > sub_out and vmem_estimate(Bb) > int(0.85 * vmem_budget_bytes):
        Bb -= sub_out

    n_blocks = -(-B // Bb)
    # If a single block would cover a large batch, split into >=2 blocks so
    # dimension_semantics=("parallel",) can feed both v7x TensorCores.
    if n_blocks == 1 and _round_up(B, sub_out) >= 2 * sub_out \
            and (_round_up(B, sub_out) // 2) * T_pad >= 256:
        Bb = _round_up(-(-B // 2), sub_out)
        n_blocks = -(-B // Bb)
    Bpad = n_blocks * Bb

    Qp = jnp.pad(Q.astype(matmul_dtype), ((0, Bpad - B), (0, T_pad - T), (0, 0)))
    Vp = jnp.pad(V.astype(matmul_dtype), ((0, Bpad - B), (0, N_pad - N), (0, 0)))

    # ---- fold 16 small parameters into 3 dense operands (fewer DMAs / BlockSpecs) ----
    # W_all columns: [ Wx1 | Wx3 | Wx2 | Wg2 | Wg3 ]
    w_all = jnp.concatenate(
        [params["wx1"], params["wx3"], params["wx2"], params["wg2"], params["wg3"]],
        axis=1).astype(matmul_dtype)                                   # (d, 5k) matmul dtype
    b_all = jnp.concatenate(
        [params["b1"],
         params["b2"] + params["bg2"],                                 # constant-fold bias pairs
         params["b3"] + params["bg3"]], axis=0).astype(jnp.float32)    # (3, k) fp32
    whxt_all = jnp.concatenate(
        [params["whx1"].T, params["whx2"].T, params["whx3"].T], axis=0
    ).astype(jnp.float32)                                              # (3, k) fp32
    # bh1/bh2/bh3 are intentionally NOT passed: softmax is shift-invariant, they cancel.

    kern = functools.partial(coattn_kernel, T=T, N=N, k=k)

    def build(single_buffer_weights):
        const_kw = dict(pipeline_mode=pl.Buffered(1)) if single_buffer_weights else {}
        in_specs = [
            pl.BlockSpec((Bb, T_pad, d), lambda b: (b, 0, 0)),          # Q batch block
            pl.BlockSpec((Bb, N_pad, d), lambda b: (b, 0, 0)),          # V batch block
            pl.BlockSpec((d, 5 * k), lambda b: (0, 0), **const_kw),     # fused weights
            pl.BlockSpec((3, k), lambda b: (0, 0), **const_kw),         # fused biases
            pl.BlockSpec((3, k), lambda b: (0, 0), **const_kw),         # whx^T rows
        ]
        return pl.pallas_call(
            kern,
            out_shape=jax.ShapeDtypeStruct((Bpad, 2 * d), out_dtype),
            grid=(n_blocks,),
            in_specs=in_specs,
            out_specs=pl.BlockSpec((Bb, 2 * d), lambda b: (b, 0)),
            compiler_params=pltpu.CompilerParams(
                dimension_semantics=("parallel",),        # batch blocks across TCs (v7x)
                vmem_limit_bytes=int(vmem_budget_bytes),  # v5e default (16 MiB) is too small
            ),
        )

    args = (Qp, Vp, w_all, b_all, whxt_all)
    try:
        packed = build(True)(*args)
    except Exception:
        # Fallback if this jax version rejects Buffered(1) on top-level pallas_call specs.
        packed = build(False)(*args)

    packed = packed[:B]
    return packed[:, :d], packed[:, d:]


def reference_co_attention(Q, V, p):
    """Pure-JAX fp32 reference mirroring the PyTorch forward (eval mode)."""
    H = jnp.tanh(Q @ p["wx1"] + p["b1"])
    ax = jax.nn.softmax(H @ p["whx1"] + p["bh1"], axis=1)
    shat = jnp.sum(Q * ax, axis=1, keepdims=True)
    H = jnp.tanh(V @ p["wx2"] + p["b2"] + shat @ p["wg2"] + p["bg2"])
    ax = jax.nn.softmax(H @ p["whx2"] + p["bh2"], axis=1)
    vhat = jnp.sum(V * ax, axis=1, keepdims=True)
    H = jnp.tanh(Q @ p["wx3"] + p["b3"] + vhat @ p["wg3"] + p["bg3"])
    ax = jax.nn.softmax(H @ p["whx3"] + p["bh3"], axis=1)
    shat2 = jnp.sum(Q * ax, axis=1, keepdims=True)
    return jnp.squeeze(shat2, axis=1), jnp.squeeze(vhat, axis=1)


def init_params(key, d, k):
    ks = jax.random.split(key, 16)
    s = 0.05
    return {
        "wx1": s * jax.random.normal(ks[0], (d, k), jnp.float32),
        "b1": s * jax.random.normal(ks[1], (1, k), jnp.float32),
        "whx1": s * jax.random.normal(ks[2], (k, 1), jnp.float32),
        "bh1": s * jax.random.normal(ks[3], (1, 1), jnp.float32),
        "wx2": s * jax.random.normal(ks[4], (d, k), jnp.float32),
        "b2": s * jax.random.normal(ks[5], (1, k), jnp.float32),
        "wg2": s * jax.random.normal(ks[6], (d, k), jnp.float32),
        "bg2": s * jax.random.normal(ks[7], (1, k), jnp.float32),
        "whx2": s * jax.random.normal(ks[8], (k, 1), jnp.float32),
        "bh2": s * jax.random.normal(ks[9], (1, 1), jnp.float32),
        "wx3": s * jax.random.normal(ks[10], (d, k), jnp.float32),
        "b3": s * jax.random.normal(ks[11], (1, k), jnp.float32),
        "wg3": s * jax.random.normal(ks[12], (d, k), jnp.float32),
        "bg3": s * jax.random.normal(ks[13], (1, k), jnp.float32),
        "whx3": s * jax.random.normal(ks[14], (k, 1), jnp.float32),
        "bh3": s * jax.random.normal(ks[15], (1, 1), jnp.float32),
    }


def _check(key, B, T, N, d, k, matmul_dtype, tol):
    kq, kv, kp = jax.random.split(key, 3)
    Q = jax.random.normal(kq, (B, T, d), jnp.float32)
    V = jax.random.normal(kv, (B, N, d), jnp.float32)
    params = init_params(kp, d, k)

    shat2, vhat = alternating_co_attention(Q, V, params, matmul_dtype=matmul_dtype)
    shat2, vhat = jax.block_until_ready((shat2, vhat))

    shat2_ref, vhat_ref = reference_co_attention(Q, V, params)
    assert shat2.shape == (B, d) and vhat.shape == (B, d)
    assert jnp.allclose(shat2, shat2_ref, atol=tol, rtol=tol), \
        float(jnp.max(jnp.abs(shat2 - shat2_ref)))
    assert jnp.allclose(vhat, vhat_ref, atol=tol, rtol=tol), \
        float(jnp.max(jnp.abs(vhat - vhat_ref)))


if __name__ == "__main__":
    key = jax.random.PRNGKey(0)
    k1, k2 = jax.random.split(key)
    # fp32 MXU path, single batch block, d == k as in the reference module defaults.
    _check(k1, B=2, T=8, N=16, d=32, k=32, matmul_dtype=jnp.float32, tol=2e-3)
    # bf16 MXU path (default): padded batch block, padded T with -inf masking, d != k.
    _check(k2, B=12, T=8, N=16, d=64, k=32, matmul_dtype=jnp.bfloat16, tol=3e-2)
    print("KERNEL_OK")
</pallas_src>

<mosaic_0001>
module attributes {stable_mosaic.version = 11 : i64} {
  func.func @coattn_kernel(%arg0: i32, %arg1: memref<8x8x32xf32, #tpu.memory_space<vmem>>, %arg2: memref<8x16x32xf32, #tpu.memory_space<vmem>>, %arg3: memref<32x160xf32, #tpu.memory_space<vmem>>, %arg4: memref<3x32xf32, #tpu.memory_space<vmem>>, %arg5: memref<3x32xf32, #tpu.memory_space<vmem>>, %arg6: memref<8x64xf32, #tpu.memory_space<vmem>>) attributes {dimension_semantics = [#tpu.dimension_semantics<parallel>], iteration_bounds = array<i64: 1>, scalar_prefetch = 0 : i64, scratch_operands = 0 : i64, tpu.core_type = #tpu.core_type<tc>, window_params = [{transform_indices = @transform_0, window_bounds = array<i64: 8, 8, 32>}, {transform_indices = @transform_1, window_bounds = array<i64: 8, 16, 32>}, {pipeline_mode = #tpu.pipeline_mode<synchronous>, transform_indices = @transform_2, window_bounds = array<i64: 32, 160>}, {pipeline_mode = #tpu.pipeline_mode<synchronous>, transform_indices = @transform_3, window_bounds = array<i64: 3, 32>}, {pipeline_mode = #tpu.pipeline_mode<synchronous>, transform_indices = @transform_4, window_bounds = array<i64: 3, 32>}, {transform_indices = @transform_5, window_bounds = array<i64: 8, 64>}]} {
    %c0 = arith.constant 0 : index
    %c0_0 = arith.constant 0 : index
    %c0_1 = arith.constant 0 : index
    %0 = vector.load %arg1[%c0, %c0_0, %c0_1] : memref<8x8x32xf32, #tpu.memory_space<vmem>>, vector<8x8x32xf32>
    %c0_2 = arith.constant 0 : index
    %c0_3 = arith.constant 0 : index
    %c0_4 = arith.constant 0 : index
    %1 = vector.load %arg2[%c0_2, %c0_3, %c0_4] : memref<8x16x32xf32, #tpu.memory_space<vmem>>, vector<8x16x32xf32>
    %2 = vector.shape_cast %0 : vector<8x8x32xf32> to vector<64x32xf32>
    %c0_5 = arith.constant 0 : index
    %c0_6 = arith.constant 0 : index
    %3 = vector.load %arg3[%c0_5, %c0_6] : memref<32x160xf32, #tpu.memory_space<vmem>>, vector<32x64xf32>
    %cst = arith.constant dense<0.000000e+00> : vector<64x64xf32>
    %4 = tpu.matmul %2, %3, %cst {dimension_numbers = #tpu.dot_dimension_numbers<[1], [0], [0], [1], [0, 0, 1, 1], [], []>} : vector<64x32xf32>, vector<32x64xf32>, vector<64x64xf32> -> vector<64x64xf32>
    %5 = vector.shape_cast %1 : vector<8x16x32xf32> to vector<128x32xf32>
    %c0_7 = arith.constant 0 : index
    %c64 = arith.constant 64 : index
    %6 = vector.load %arg3[%c0_7, %c64] : memref<32x160xf32, #tpu.memory_space<vmem>>, vector<32x32xf32>
    %cst_8 = arith.constant dense<0.000000e+00> : vector<128x32xf32>
    %7 = tpu.matmul %5, %6, %cst_8 {dimension_numbers = #tpu.dot_dimension_numbers<[1], [0], [0], [1], [0, 0, 1, 1], [], []>} : vector<128x32xf32>, vector<32x32xf32>, vector<128x32xf32> -> vector<128x32xf32>
    %8 = vector.extract_strided_slice %4 {offsets = [0, 0], sizes = [64, 32], strides = [1, 1]} : vector<64x64xf32> to vector<64x32xf32>
    %9 = vector.shape_cast %8 : vector<64x32xf32> to vector<8x8x32xf32>
    %10 = vector.extract_strided_slice %4 {offsets = [0, 32], sizes = [64, 32], strides = [1, 1]} : vector<64x64xf32> to vector<64x32xf32>
    %11 = vector.shape_cast %10 : vector<64x32xf32> to vector<8x8x32xf32>
    %12 = vector.shape_cast %7 : vector<128x32xf32> to vector<8x16x32xf32>
    %c0_9 = arith.constant 0 : index
    %c0_10 = arith.constant 0 : index
    %13 = vector.load %arg4[%c0_9, %c0_10] : memref<3x32xf32, #tpu.memory_space<vmem>>, vector<1x32xf32>
    %14 = vector.shape_cast %13 : vector<1x32xf32> to vector<1x1x32xf32>
    %15 = vector.broadcast %14 : vector<1x1x32xf32> to vector<8x8x32xf32>
    %16 = arith.addf %9, %15 : vector<8x8x32xf32>
    %17 = math.tanh %16 : vector<8x8x32xf32>
    %c0_11 = arith.constant 0 : index
    %c0_12 = arith.constant 0 : index
    %18 = vector.load %arg5[%c0_11, %c0_12] : memref<3x32xf32, #tpu.memory_space<vmem>>, vector<1x32xf32>
    %19 = vector.shape_cast %18 : vector<1x32xf32> to vector<1x1x32xf32>
    %20 = vector.broadcast %19 : vector<1x1x32xf32> to vector<8x8x32xf32>
    %21 = arith.mulf %17, %20 : vector<8x8x32xf32>
    %cst_13 = arith.constant dense<0.000000e+00> : vector<8x8xf32>
    %22 = vector.multi_reduction <add>, %21, %cst_13 [2] : vector<8x8x32xf32> to vector<8x8xf32>
    %cst_14 = arith.constant dense<0xFF800000> : vector<8xf32>
    %23 = vector.multi_reduction <maximumf>, %22, %cst_14 [1] : vector<8x8xf32> to vector<8xf32>
    %24 = vector.shape_cast %23 : vector<8xf32> to vector<8x1xf32>
    %25 = vector.broadcast %24 : vector<8x1xf32> to vector<8x8xf32>
    %26 = arith.subf %22, %25 : vector<8x8xf32>
    %27 = math.exp %26 : vector<8x8xf32>
    %cst_15 = arith.constant dense<0.000000e+00> : vector<8xf32>
    %28 = vector.multi_reduction <add>, %27, %cst_15 [1] : vector<8x8xf32> to vector<8xf32>
    %29 = vector.shape_cast %28 : vector<8xf32> to vector<8x1xf32>
    %30 = tpu.reciprocal %29 {approx = true} : vector<8x1xf32> -> vector<8x1xf32>
    %31 = vector.broadcast %30 : vector<8x1xf32> to vector<8x8xf32>
    %32 = arith.mulf %27, %31 : vector<8x8xf32>
    %33 = vector.shape_cast %32 : vector<8x8xf32> to vector<8x8x1xf32>
    %34 = vector.broadcast %33 : vector<8x8x1xf32> to vector<8x8x32xf32>
    %35 = arith.mulf %0, %34 : vector<8x8x32xf32>
    %cst_16 = arith.constant dense<0.000000e+00> : vector<8x32xf32>
    %36 = vector.multi_reduction <add>, %35, %cst_16 [1] : vector<8x8x32xf32> to vector<8x32xf32>
    %c0_17 = arith.constant 0 : index
    %c96 = arith.constant 96 : index
    %37 = vector.load %arg3[%c0_17, %c96] : memref<32x160xf32, #tpu.memory_space<vmem>>, vector<32x32xf32>
    %cst_18 = arith.constant dense<0.000000e+00> : vector<8x32xf32>
    %38 = tpu.matmul %36, %37, %cst_18 {dimension_numbers = #tpu.dot_dimension_numbers<[1], [0], [0], [1], [0, 0, 1, 1], [], []>} : vector<8x32xf32>, vector<32x32xf32>, vector<8x32xf32> -> vector<8x32xf32>
    %39 = vector.shape_cast %38 : vector<8x32xf32> to vector<8x1x32xf32>
    %40 = vector.broadcast %39 : vector<8x1x32xf32> to vector<8x16x32xf32>
    %41 = arith.addf %12, %40 : vector<8x16x32xf32>
    %c1 = arith.constant 1 : index
    %c0_19 = arith.constant 0 : index
    %42 = vector.load %arg4[%c1, %c0_19] : memref<3x32xf32, #tpu.memory_space<vmem>>, vector<1x32xf32>
    %43 = vector.shape_cast %42 : vector<1x32xf32> to vector<1x1x32xf32>
    %44 = vector.broadcast %43 : vector<1x1x32xf32> to vector<8x16x32xf32>
    %45 = arith.addf %41, %44 : vector<8x16x32xf32>
    %46 = math.tanh %45 : vector<8x16x32xf32>
    %c1_20 = arith.constant 1 : index
    %c0_21 = arith.constant 0 : index
    %47 = vector.load %arg5[%c1_20, %c0_21] : memref<3x32xf32, #tpu.memory_space<vmem>>, vector<1x32xf32>
    %48 = vector.shape_cast %47 : vector<1x32xf32> to vector<1x1x32xf32>
    %49 = vector.broadcast %48 : vector<1x1x32xf32> to vector<8x16x32xf32>
    %50 = arith.mulf %46, %49 : vector<8x16x32xf32>
    %cst_22 = arith.constant dense<0.000000e+00> : vector<8x16xf32>
    %51 = vector.multi_reduction <add>, %50, %cst_22 [2] : vector<8x16x32xf32> to vector<8x16xf32>
    %cst_23 = arith.constant dense<0xFF800000> : vector<8xf32>
    %52 = vector.multi_reduction <maximumf>, %51, %cst_23 [1] : vector<8x16xf32> to vector<8xf32>
    %53 = vector.shape_cast %52 : vector<8xf32> to vector<8x1xf32>
    %54 = vector.broadcast %53 : vector<8x1xf32> to vector<8x16xf32>
    %55 = arith.subf %51, %54 : vector<8x16xf32>
    %56 = math.exp %55 : vector<8x16xf32>
    %cst_24 = arith.constant dense<0.000000e+00> : vector<8xf32>
    %57 = vector.multi_reduction <add>, %56, %cst_24 [1] : vector<8x16xf32> to vector<8xf32>
    %58 = vector.shape_cast %57 : vector<8xf32> to vector<8x1xf32>
    %59 = tpu.reciprocal %58 {approx = true} : vector<8x1xf32> -> vector<8x1xf32>
    %60 = vector.broadcast %59 : vector<8x1xf32> to vector<8x16xf32>
    %61 = arith.mulf %56, %60 : vector<8x16xf32>
    %62 = vector.shape_cast %61 : vector<8x16xf32> to vector<8x16x1xf32>
    %63 = vector.broadcast %62 : vector<8x16x1xf32> to vector<8x16x32xf32>
    %64 = arith.mulf %1, %63 : vector<8x16x32xf32>
    %cst_25 = arith.constant dense<0.000000e+00> : vector<8x32xf32>
    %65 = vector.multi_reduction <add>, %64, %cst_25 [1] : vector<8x16x32xf32> to vector<8x32xf32>
    %c0_26 = arith.constant 0 : index
    %c128 = arith.constant 128 : index
    %66 = vector.load %arg3[%c0_26, %c128] : memref<32x160xf32, #tpu.memory_space<vmem>>, vector<32x32xf32>
    %cst_27 = arith.constant dense<0.000000e+00> : vector<8x32xf32>
    %67 = tpu.matmul %65, %66, %cst_27 {dimension_numbers = #tpu.dot_dimension_numbers<[1], [0], [0], [1], [0, 0, 1, 1], [], []>} : vector<8x32xf32>, vector<32x32xf32>, vector<8x32xf32> -> vector<8x32xf32>
    %68 = vector.shape_cast %67 : vector<8x32xf32> to vector<8x1x32xf32>
    %69 = vector.broadcast %68 : vector<8x1x32xf32> to vector<8x8x32xf32>
    %70 = arith.addf %11, %69 : vector<8x8x32xf32>
    %c2 = arith.constant 2 : index
    %c0_28 = arith.constant 0 : index
    %71 = vector.load %arg4[%c2, %c0_28] : memref<3x32xf32, #tpu.memory_space<vmem>>, vector<1x32xf32>
    %72 = vector.shape_cast %71 : vector<1x32xf32> to vector<1x1x32xf32>
    %73 = vector.broadcast %72 : vector<1x1x32xf32> to vector<8x8x32xf32>
    %74 = arith.addf %70, %73 : vector<8x8x32xf32>
    %75 = math.tanh %74 : vector<8x8x32xf32>
    %c2_29 = arith.constant 2 : index
    %c0_30 = arith.constant 0 : index
    %76 = vector.load %arg5[%c2_29, %c0_30] : memref<3x32xf32, #tpu.memory_space<vmem>>, vector<1x32xf32>
    %77 = vector.shape_cast %76 : vector<1x32xf32> to vector<1x1x32xf32>
    %78 = vector.broadcast %77 : vector<1x1x32xf32> to vector<8x8x32xf32>
    %79 = arith.mulf %75, %78 : vector<8x8x32xf32>
    %cst_31 = arith.constant dense<0.000000e+00> : vector<8x8xf32>
    %80 = vector.multi_reduction <add>, %79, %cst_31 [2] : vector<8x8x32xf32> to vector<8x8xf32>
    %cst_32 = arith.constant dense<0xFF800000> : vector<8xf32>
    %81 = vector.multi_reduction <maximumf>, %80, %cst_32 [1] : vector<8x8xf32> to vector<8xf32>
    %82 = vector.shape_cast %81 : vector<8xf32> to vector<8x1xf32>
    %83 = vector.broadcast %82 : vector<8x1xf32> to vector<8x8xf32>
    %84 = arith.subf %80, %83 : vector<8x8xf32>
    %85 = math.exp %84 : vector<8x8xf32>
    %cst_33 = arith.constant dense<0.000000e+00> : vector<8xf32>
    %86 = vector.multi_reduction <add>, %85, %cst_33 [1] : vector<8x8xf32> to vector<8xf32>
    %87 = vector.shape_cast %86 : vector<8xf32> to vector<8x1xf32>
    %88 = tpu.reciprocal %87 {approx = true} : vector<8x1xf32> -> vector<8x1xf32>
    %89 = vector.broadcast %88 : vector<8x1xf32> to vector<8x8xf32>
    %90 = arith.mulf %85, %89 : vector<8x8xf32>
    %91 = vector.shape_cast %90 : vector<8x8xf32> to vector<8x8x1xf32>
    %92 = vector.broadcast %91 : vector<8x8x1xf32> to vector<8x8x32xf32>
    %93 = arith.mulf %0, %92 : vector<8x8x32xf32>
    %cst_34 = arith.constant dense<0.000000e+00> : vector<8x32xf32>
    %94 = vector.multi_reduction <add>, %93, %cst_34 [1] : vector<8x8x32xf32> to vector<8x32xf32>
    %c0_35 = arith.constant 0 : index
    %c0_36 = arith.constant 0 : index
    %95 = vector.load %arg6[%c0_35, %c0_36] : memref<8x64xf32, #tpu.memory_space<vmem>>, vector<8x32xf32>
    tpu.vector_store %arg6[%c0_35, %c0_36], %94 {strides = array<i32>} : memref<8x64xf32, #tpu.memory_space<vmem>>, vector<8x32xf32>,
    %c0_37 = arith.constant 0 : index
    %c32 = arith.constant 32 : index
    %96 = vector.load %arg6[%c0_37, %c32] : memref<8x64xf32, #tpu.memory_space<vmem>>, vector<8x32xf32>
    tpu.vector_store %arg6[%c0_37, %c32], %65 {strides = array<i32>} : memref<8x64xf32, #tpu.memory_space<vmem>>, vector<8x32xf32>,
    return
  }
  func.func @transform_0(%arg0: i32) -> (i32, i32, i32) {
    %c0_i32 = arith.constant 0 : i32
    %c0_i32_0 = arith.constant 0 : i32
    %c0_i32_1 = arith.constant 0 : i32
    return %arg0, %c0_i32, %c0_i32_0 : i32, i32, i32
  }
  func.func @transform_1(%arg0: i32) -> (i32, i32, i32) {
    %c0_i32 = arith.constant 0 : i32
    %c0_i32_0 = arith.constant 0 : i32
    %c0_i32_1 = arith.constant 0 : i32
    return %arg0, %c0_i32, %c0_i32_0 : i32, i32, i32
  }
  func.func @transform_2(%arg0: i32) -> (i32, i32) {
    %c0_i32 = arith.constant 0 : i32
    %c0_i32_0 = arith.constant 0 : i32
    %c0_i32_1 = arith.constant 0 : i32
    return %c0_i32, %c0_i32_0 : i32, i32
  }
  func.func @transform_3(%arg0: i32) -> (i32, i32) {
    %c0_i32 = arith.constant 0 : i32
    %c0_i32_0 = arith.constant 0 : i32
    %c0_i32_1 = arith.constant 0 : i32
    return %c0_i32, %c0_i32_0 : i32, i32
  }
  func.func @transform_4(%arg0: i32) -> (i32, i32) {
    %c0_i32 = arith.constant 0 : i32
    %c0_i32_0 = arith.constant 0 : i32
    %c0_i32_1 = arith.constant 0 : i32
    return %c0_i32, %c0_i32_0 : i32, i32
  }
  func.func @transform_5(%arg0: i32) -> (i32, i32) {
    %c0_i32 = arith.constant 0 : i32
    %c0_i32_0 = arith.constant 0 : i32
    return %arg0, %c0_i32 : i32, i32
  }
}

module attributes {stable_mosaic.version = 11 : i64} {
  func.func @coattn_kernel(%arg0: i32, %arg1: memref<8x8x32xf32, #tpu.memory_space<vmem>>, %arg2: memref<8x16x32xf32, #tpu.memory_space<vmem>>, %arg3: memref<32x160xf32, #tpu.memory_space<vmem>>, %arg4: memref<3x32xf32, #tpu.memory_space<vmem>>, %arg5: memref<3x32xf32, #tpu.memory_space<vmem>>, %arg6: memref<8x64xf32, #tpu.memory_space<vmem>>) attributes {dimension_semantics = [#tpu.dimension_semantics<parallel>], iteration_bounds = array<i64: 1>, scalar_prefetch = 0 : i64, scratch_operands = 0 : i64, tpu.core_type = #tpu.core_type<tc>, window_params = [{transform_indices = @transform_0, window_bounds = array<i64: 8, 8, 32>}, {transform_indices = @transform_1, window_bounds = array<i64: 8, 16, 32>}, {pipeline_mode = #tpu.pipeline_mode<synchronous>, transform_indices = @transform_2, window_bounds = array<i64: 32, 160>}, {pipeline_mode = #tpu.pipeline_mode<synchronous>, transform_indices = @transform_3, window_bounds = array<i64: 3, 32>}, {pipeline_mode = #tpu.pipeline_mode<synchronous>, transform_indices = @transform_4, window_bounds = array<i64: 3, 32>}, {transform_indices = @transform_5, window_bounds = array<i64: 8, 64>}]} {
    %c0 = arith.constant 0 : index
    %c0_0 = arith.constant 0 : index
    %c0_1 = arith.constant 0 : index
    %0 = vector.load %arg1[%c0, %c0_0, %c0_1] : memref<8x8x32xf32, #tpu.memory_space<vmem>>, vector<8x8x32xf32>
    %c0_2 = arith.constant 0 : index
    %c0_3 = arith.constant 0 : index
    %c0_4 = arith.constant 0 : index
    %1 = vector.load %arg2[%c0_2, %c0_3, %c0_4] : memref<8x16x32xf32, #tpu.memory_space<vmem>>, vector<8x16x32xf32>
    %2 = vector.shape_cast %0 : vector<8x8x32xf32> to vector<64x32xf32>
    %c0_5 = arith.constant 0 : index
    %c0_6 = arith.constant 0 : index
    %3 = vector.load %arg3[%c0_5, %c0_6] : memref<32x160xf32, #tpu.memory_space<vmem>>, vector<32x64xf32>
    %cst = arith.constant dense<0.000000e+00> : vector<64x64xf32>
    %4 = tpu.matmul %2, %3, %cst {dimension_numbers = #tpu.dot_dimension_numbers<[1], [0], [0], [1], [0, 0, 1, 1], [], []>} : vector<64x32xf32>, vector<32x64xf32>, vector<64x64xf32> -> vector<64x64xf32>
    %5 = vector.shape_cast %1 : vector<8x16x32xf32> to vector<128x32xf32>
    %c0_7 = arith.constant 0 : index
    %c64 = arith.constant 64 : index
    %6 = vector.load %arg3[%c0_7, %c64] : memref<32x160xf32, #tpu.memory_space<vmem>>, vector<32x32xf32>
    %cst_8 = arith.constant dense<0.000000e+00> : vector<128x32xf32>
    %7 = tpu.matmul %5, %6, %cst_8 {dimension_numbers = #tpu.dot_dimension_numbers<[1], [0], [0], [1], [0, 0, 1, 1], [], []>} : vector<128x32xf32>, vector<32x32xf32>, vector<128x32xf32> -> vector<128x32xf32>
    %8 = vector.extract_strided_slice %4 {offsets = [0, 0], sizes = [64, 32], strides = [1, 1]} : vector<64x64xf32> to vector<64x32xf32>
    %9 = vector.shape_cast %8 : vector<64x32xf32> to vector<8x8x32xf32>
    %10 = vector.extract_strided_slice %4 {offsets = [0, 32], sizes = [64, 32], strides = [1, 1]} : vector<64x64xf32> to vector<64x32xf32>
    %11 = vector.shape_cast %10 : vector<64x32xf32> to vector<8x8x32xf32>
    %12 = vector.shape_cast %7 : vector<128x32xf32> to vector<8x16x32xf32>
    %c0_9 = arith.constant 0 : index
    %c0_10 = arith.constant 0 : index
    %13 = vector.load %arg4[%c0_9, %c0_10] : memref<3x32xf32, #tpu.memory_space<vmem>>, vector<1x32xf32>
    %14 = vector.shape_cast %13 : vector<1x32xf32> to vector<1x1x32xf32>
    %15 = vector.broadcast %14 : vector<1x1x32xf32> to vector<8x8x32xf32>
    %16 = arith.addf %9, %15 : vector<8x8x32xf32>
    %17 = math.tanh %16 : vector<8x8x32xf32>
    %c0_11 = arith.constant 0 : index
    %c0_12 = arith.constant 0 : index
    %18 = vector.load %arg5[%c0_11, %c0_12] : memref<3x32xf32, #tpu.memory_space<vmem>>, vector<1x32xf32>
    %19 = vector.shape_cast %18 : vector<1x32xf32> to vector<1x1x32xf32>
    %20 = vector.broadcast %19 : vector<1x1x32xf32> to vector<8x8x32xf32>
    %21 = arith.mulf %17, %20 : vector<8x8x32xf32>
    %cst_13 = arith.constant dense<0.000000e+00> : vector<8x8xf32>
    %22 = vector.multi_reduction <add>, %21, %cst_13 [2] : vector<8x8x32xf32> to vector<8x8xf32>
    %cst_14 = arith.constant dense<0xFF800000> : vector<8xf32>
    %23 = vector.multi_reduction <maximumf>, %22, %cst_14 [1] : vector<8x8xf32> to vector<8xf32>
    %24 = vector.shape_cast %23 : vector<8xf32> to vector<8x1xf32>
    %25 = vector.broadcast %24 : vector<8x1xf32> to vector<8x8xf32>
    %26 = arith.subf %22, %25 : vector<8x8xf32>
    %27 = math.exp %26 : vector<8x8xf32>
    %cst_15 = arith.constant dense<0.000000e+00> : vector<8xf32>
    %28 = vector.multi_reduction <add>, %27, %cst_15 [1] : vector<8x8xf32> to vector<8xf32>
    %29 = vector.shape_cast %28 : vector<8xf32> to vector<8x1xf32>
    %30 = tpu.reciprocal %29 {approx = true} : vector<8x1xf32> -> vector<8x1xf32>
    %31 = vector.broadcast %30 : vector<8x1xf32> to vector<8x8xf32>
    %32 = arith.mulf %27, %31 : vector<8x8xf32>
    %33 = vector.shape_cast %32 : vector<8x8xf32> to vector<8x8x1xf32>
    %34 = vector.broadcast %33 : vector<8x8x1xf32> to vector<8x8x32xf32>
    %35 = arith.mulf %0, %34 : vector<8x8x32xf32>
    %cst_16 = arith.constant dense<0.000000e+00> : vector<8x32xf32>
    %36 = vector.multi_reduction <add>, %35, %cst_16 [1] : vector<8x8x32xf32> to vector<8x32xf32>
    %c0_17 = arith.constant 0 : index
    %c96 = arith.constant 96 : index
    %37 = vector.load %arg3[%c0_17, %c96] : memref<32x160xf32, #tpu.memory_space<vmem>>, vector<32x32xf32>
    %cst_18 = arith.constant dense<0.000000e+00> : vector<8x32xf32>
    %38 = tpu.matmul %36, %37, %cst_18 {dimension_numbers = #tpu.dot_dimension_numbers<[1], [0], [0], [1], [0, 0, 1, 1], [], []>} : vector<8x32xf32>, vector<32x32xf32>, vector<8x32xf32> -> vector<8x32xf32>
    %39 = vector.shape_cast %38 : vector<8x32xf32> to vector<8x1x32xf32>
    %40 = vector.broadcast %39 : vector<8x1x32xf32> to vector<8x16x32xf32>
    %41 = arith.addf %12, %40 : vector<8x16x32xf32>
    %c1 = arith.constant 1 : index
    %c0_19 = arith.constant 0 : index
    %42 = vector.load %arg4[%c1, %c0_19] : memref<3x32xf32, #tpu.memory_space<vmem>>, vector<1x32xf32>
    %43 = vector.shape_cast %42 : vector<1x32xf32> to vector<1x1x32xf32>
    %44 = vector.broadcast %43 : vector<1x1x32xf32> to vector<8x16x32xf32>
    %45 = arith.addf %41, %44 : vector<8x16x32xf32>
    %46 = math.tanh %45 : vector<8x16x32xf32>
    %c1_20 = arith.constant 1 : index
    %c0_21 = arith.constant 0 : index
    %47 = vector.load %arg5[%c1_20, %c0_21] : memref<3x32xf32, #tpu.memory_space<vmem>>, vector<1x32xf32>
    %48 = vector.shape_cast %47 : vector<1x32xf32> to vector<1x1x32xf32>
    %49 = vector.broadcast %48 : vector<1x1x32xf32> to vector<8x16x32xf32>
    %50 = arith.mulf %46, %49 : vector<8x16x32xf32>
    %cst_22 = arith.constant dense<0.000000e+00> : vector<8x16xf32>
    %51 = vector.multi_reduction <add>, %50, %cst_22 [2] : vector<8x16x32xf32> to vector<8x16xf32>
    %cst_23 = arith.constant dense<0xFF800000> : vector<8xf32>
    %52 = vector.multi_reduction <maximumf>, %51, %cst_23 [1] : vector<8x16xf32> to vector<8xf32>
    %53 = vector.shape_cast %52 : vector<8xf32> to vector<8x1xf32>
    %54 = vector.broadcast %53 : vector<8x1xf32> to vector<8x16xf32>
    %55 = arith.subf %51, %54 : vector<8x16xf32>
    %56 = math.exp %55 : vector<8x16xf32>
    %cst_24 = arith.constant dense<0.000000e+00> : vector<8xf32>
    %57 = vector.multi_reduction <add>, %56, %cst_24 [1] : vector<8x16xf32> to vector<8xf32>
    %58 = vector.shape_cast %57 : vector<8xf32> to vector<8x1xf32>
    %59 = tpu.reciprocal %58 {approx = true} : vector<8x1xf32> -> vector<8x1xf32>
    %60 = vector.broadcast %59 : vector<8x1xf32> to vector<8x16xf32>
    %61 = arith.mulf %56, %60 : vector<8x16xf32>
    %62 = vector.shape_cast %61 : vector<8x16xf32> to vector<8x16x1xf32>
    %63 = vector.broadcast %62 : vector<8x16x1xf32> to vector<8x16x32xf32>
    %64 = arith.mulf %1, %63 : vector<8x16x32xf32>
    %cst_25 = arith.constant dense<0.000000e+00> : vector<8x32xf32>
    %65 = vector.multi_reduction <add>, %64, %cst_25 [1] : vector<8x16x32xf32> to vector<8x32xf32>
    %c0_26 = arith.constant 0 : index
    %c128 = arith.constant 128 : index
    %66 = vector.load %arg3[%c0_26, %c128] : memref<32x160xf32, #tpu.memory_space<vmem>>, vector<32x32xf32>
    %cst_27 = arith.constant dense<0.000000e+00> : vector<8x32xf32>
    %67 = tpu.matmul %65, %66, %cst_27 {dimension_numbers = #tpu.dot_dimension_numbers<[1], [0], [0], [1], [0, 0, 1, 1], [], []>} : vector<8x32xf32>, vector<32x32xf32>, vector<8x32xf32> -> vector<8x32xf32>
    %68 = vector.shape_cast %67 : vector<8x32xf32> to vector<8x1x32xf32>
    %69 = vector.broadcast %68 : vector<8x1x32xf32> to vector<8x8x32xf32>
    %70 = arith.addf %11, %69 : vector<8x8x32xf32>
    %c2 = arith.constant 2 : index
    %c0_28 = arith.constant 0 : index
    %71 = vector.load %arg4[%c2, %c0_28] : memref<3x32xf32, #tpu.memory_space<vmem>>, vector<1x32xf32>
    %72 = vector.shape_cast %71 : vector<1x32xf32> to vector<1x1x32xf32>
    %73 = vector.broadcast %72 : vector<1x1x32xf32> to vector<8x8x32xf32>
    %74 = arith.addf %70, %73 : vector<8x8x32xf32>
    %75 = math.tanh %74 : vector<8x8x32xf32>
    %c2_29 = arith.constant 2 : index
    %c0_30 = arith.constant 0 : index
    %76 = vector.load %arg5[%c2_29, %c0_30] : memref<3x32xf32, #tpu.memory_space<vmem>>, vector<1x32xf32>
    %77 = vector.shape_cast %76 : vector<1x32xf32> to vector<1x1x32xf32>
    %78 = vector.broadcast %77 : vector<1x1x32xf32> to vector<8x8x32xf32>
    %79 = arith.mulf %75, %78 : vector<8x8x32xf32>
    %cst_31 = arith.constant dense<0.000000e+00> : vector<8x8xf32>
    %80 = vector.multi_reduction <add>, %79, %cst_31 [2] : vector<8x8x32xf32> to vector<8x8xf32>
    %cst_32 = arith.constant dense<0xFF800000> : vector<8xf32>
    %81 = vector.multi_reduction <maximumf>, %80, %cst_32 [1] : vector<8x8xf32> to vector<8xf32>
    %82 = vector.shape_cast %81 : vector<8xf32> to vector<8x1xf32>
    %83 = vector.broadcast %82 : vector<8x1xf32> to vector<8x8xf32>
    %84 = arith.subf %80, %83 : vector<8x8xf32>
    %85 = math.exp %84 : vector<8x8xf32>
    %cst_33 = arith.constant dense<0.000000e+00> : vector<8xf32>
    %86 = vector.multi_reduction <add>, %85, %cst_33 [1] : vector<8x8xf32> to vector<8xf32>
    %87 = vector.shape_cast %86 : vector<8xf32> to vector<8x1xf32>
    %88 = tpu.reciprocal %87 {approx = true} : vector<8x1xf32> -> vector<8x1xf32>
    %89 = vector.broadcast %88 : vector<8x1xf32> to vector<8x8xf32>
    %90 = arith.mulf %85, %89 : vector<8x8xf32>
    %91 = vector.shape_cast %90 : vector<8x8xf32> to vector<8x8x1xf32>
    %92 = vector.broadcast %91 : vector<8x8x1xf32> to vector<8x8x32xf32>
    %93 = arith.mulf %0, %92 : vector<8x8x32xf32>
    %cst_34 = arith.constant dense<0.000000e+00> : vector<8x32xf32>
    %94 = vector.multi_reduction <add>, %93, %cst_34 [1] : vector<8x8x32xf32> to vector<8x32xf32>
    %c0_35 = arith.constant 0 : index
    %c0_36 = arith.constant 0 : index
    %95 = vector.load %arg6[%c0_35, %c0_36] : memref<8x64xf32, #tpu.memory_space<vmem>>, vector<8x32xf32>
    tpu.vector_store %arg6[%c0_35, %c0_36], %94 {strides = array<i32>} : memref<8x64xf32, #tpu.memory_space<vmem>>, vector<8x32xf32>,
    %c0_37 = arith.constant 0 : index
    %c32 = arith.constant 32 : index
    %96 = vector.load %arg6[%c0_37, %c32] : memref<8x64xf32, #tpu.memory_space<vmem>>, vector<8x32xf32>
    tpu.vector_store %arg6[%c0_37, %c32], %65 {strides = array<i32>} : memref<8x64xf32, #tpu.memory_space<vmem>>, vector<8x32xf32>,
    return
  }
  func.func @transform_0(%arg0: i32) -> (i32, i32, i32) {
    %c0_i32 = arith.constant 0 : i32
    %c0_i32_0 = arith.constant 0 : i32
    %c0_i32_1 = arith.constant 0 : i32
    return %arg0, %c0_i32, %c0_i32_0 : i32, i32, i32
  }
  func.func @transform_1(%arg0: i32) -> (i32, i32, i32) {
    %c0_i32 = arith.constant 0 : i32
    %c0_i32_0 = arith.constant 0 : i32
    %c0_i32_1 = arith.constant 0 : i32
    return %arg0, %c0_i32, %c0_i32_0 : i32, i32, i32
  }
  func.func @transform_2(%arg0: i32) -> (i32, i32) {
    %c0_i32 = arith.constant 0 : i32
    %c0_i32_0 = arith.constant 0 : i32
    %c0_i32_1 = arith.constant 0 : i32
    return %c0_i32, %c0_i32_0 : i32, i32
  }
  func.func @transform_3(%arg0: i32) -> (i32, i32) {
    %c0_i32 = arith.constant 0 : i32
    %c0_i32_0 = arith.constant 0 : i32
    %c0_i32_1 = arith.constant 0 : i32
    return %c0_i32, %c0_i32_0 : i32, i32
  }
  func.func @transform_4(%arg0: i32) -> (i32, i32) {
    %c0_i32 = arith.constant 0 : i32
    %c0_i32_0 = arith.constant 0 : i32
    %c0_i32_1 = arith.constant 0 : i32
    return %c0_i32, %c0_i32_0 : i32, i32
  }
  func.func @transform_5(%arg0: i32) -> (i32, i32) {
    %c0_i32 = arith.constant 0 : i32
    %c0_i32_0 = arith.constant 0 : i32
    return %arg0, %c0_i32 : i32, i32
  }
}

</mosaic_0001>

<bundles_post_ra>
// kernel: tpu_custom_call.1
= control target key start
LH: loop header
LB: loop body
LE: loop exit
PB: predicated region body
PF: predicated region fallthrough
CT: control target
= control target key end

     0   :  { %10 = vsyncpa [#allocation3], 0  ;;  %s3663_s0 = inlined_call_operand.hbm [shape: f32[8,8,32], index: 0, kind: input, shape index: {}]   ;;  %s3664_s1 = inlined_call_operand.hbm [shape: f32[8,16,32], index: 1, kind: input, shape index: {}]   ;;  %s3665_s2 = inlined_call_operand.hbm [shape: f32[32,160], index: 2, kind: input, shape index: {}]   ;;  %s3666_s3 = inlined_call_operand.vmem [shape: f32[3,32], index: 3, kind: input, shape index: {}]   ;;  %s3667_s4 = inlined_call_operand.vmem [shape: f32[3,32], index: 4, kind: input, shape index: {}]   ;;  %s3668_s5 = inlined_call_operand.hbm [shape: f32[8,64], index: 5, kind: output, shape index: {}]  }
   0x1   :  { %11 = vsyncpa [#allocation6], 0 }
   0x2   :  { %12 = vsyncpa [#allocation4], 0  ;;  %s2854_s18 = smov [#allocation5]   ;;  %s2855_s20 = smov [#allocation2]  }
   0x3   :  { %s30_s19 = sshll.u32 %s2854_s18, 4  ;;  %s18_s21 = sshll.u32 %s2855_s20, 4  ;;  %s31_s19 = int_to_ptr.vmem [resolvable:$true] %s30_s19  ;;  %s2900_s21 = int_to_ptr.vmem [resolvable:$true] %s18_s21 }
   0x4   :  { %s2760_s24 = scalar_lea.hbm %s3664_s1, 2048 }
   0x5   :  { %p2761_p0 = scmp.ne.s32.totalorder %s3664_s1, %s2760_s24  ;;  %p2764_p1 = scmp.lt.u32.totalorder %s2760_s24, %s3664_s1 }
   0x7   :  { %p2766_p2 = pnand %p2764_p1, %p2761_p0 }
   0x9   :  { %2769 = shalt.err (!%p2766_p2)
}
   0xa   :  { %s2770_s29 = scalar_lea.vmem %s31_s19, 2048  ;;  %p2775_p4 = scmp.lt.s32.totalorder %s31_s19, %s31_s19 }
   0xb   :  { %p2771_p3 = scmp.ne.s32.totalorder %s31_s19, %s2770_s29  ;;  %p2776_p5 = scmp.lt.s32.totalorder %s2770_s29, %s2770_s29 }
   0xd   :  { %p2777_p6 = por %p2776_p5, %p2775_p4 }
   0xf   :  { %p2778_p7 = pnand %p2777_p6, %p2771_p3 }
  0x11   :  { %2781 = shalt.err (!%p2778_p7)
}
  0x12   :  { %s2856_s30 = smov 128   ;;  %s2857_s6 = smov 8  }
  0x13   :  { %36 = dma.hbm_to_vmem [thread:$0]  %s3664_s1, 2048, %s31_s19, [#allocation6], %s2856_s30, %s2856_s30, %s2857_s6  }
  0x14   :  { %s2782_s11 = scalar_lea.hbm %s3663_s0, 1024 }
  0x15   :  { %p2783_p8 = scmp.ne.s32.totalorder %s3663_s0, %s2782_s11  ;;  %p2786_p9 = scmp.lt.u32.totalorder %s2782_s11, %s3663_s0 }
  0x17   :  { %p2788_p10 = pnand %p2786_p9, %p2783_p8 }
  0x19   :  { %2791 = shalt.err (!%p2788_p10)
}
  0x1a   :  { %s2792_s16 = scalar_lea.vmem %s2900_s21, 1024  ;;  %p2797_p12 = scmp.lt.s32.totalorder %s2900_s21, %s2900_s21 }
  0x1b   :  { %p2793_p11 = scmp.ne.s32.totalorder %s2900_s21, %s2792_s16  ;;  %p2798_p13 = scmp.lt.s32.totalorder %s2792_s16, %s2792_s16 }
  0x1d   :  { %p2799_p0 = por %p2798_p13, %p2797_p12 }
  0x1f   :  { %p2800_p1 = pnand %p2799_p0, %p2793_p11 }
  0x21   :  { %2803 = shalt.err (!%p2800_p1)
}
  0x22   :  { %24 = dma.hbm_to_vmem [thread:$0]  %s3663_s0, 1024, %s2900_s21, [#allocation3], %s2856_s30, %s2856_s30, %s2857_s6  }
  0x23   :  { %s2858_s18 = smov [#allocation7]   ;;  %s2804_s23 = scalar_lea.hbm %s3665_s2, 1024 }
  0x24   :  { %s42_s19 = sshll.u32 %s2858_s18, 4  ;;  %p2805_p2 = scmp.ne.s32.totalorder %s3665_s2, %s2804_s23  ;;  %s43_s19 = int_to_ptr.vmem [resolvable:$true] %s42_s19 }
  0x25   :  { %p2808_p3 = scmp.lt.u32.totalorder %s2804_s23, %s3665_s2 }
  0x27   :  { %p2810_p4 = pnand %p2808_p3, %p2805_p2 }
  0x29   :  { %2813 = shalt.err (!%p2810_p4)
}
  0x2a   :  { %s2814_s28 = scalar_lea.vmem %s43_s19, 1024  ;;  %p2819_p6 = scmp.lt.s32.totalorder %s43_s19, %s43_s19 }
  0x2b   :  { %p2815_p5 = scmp.ne.s32.totalorder %s43_s19, %s2814_s28  ;;  %p2820_p7 = scmp.lt.s32.totalorder %s2814_s28, %s2814_s28 }
  0x2d   :  { %p2821_p8 = por %p2820_p7, %p2819_p6 }
  0x2f   :  { %p2822_p9 = pnand %p2821_p8, %p2815_p5 }
  0x31   :  { %2825 = shalt.err (!%p2822_p9)
}
  0x32   :  { %s2859_s0 = smov 256   ;;  %s2860_s21 = smov 16  }
  0x33   :  { %48 = dma.hbm_to_vmem [thread:$0]  %s3665_s2, 1024, %s43_s19, [#allocation6], %s2859_s0, %s2859_s0, %s2860_s21  }
  0x34   :  { %2848 = dma.done.wait [#allocation3], 1024  }
  0x35   :  { %2849 = vsyncadd [#allocation3], 4294966272 }
  0x36   :  { %2850 = dma.done.wait [#allocation6], 3072  }
  0x37   :  { %2851 = vsyncadd [#allocation6], 4294964224  ;;  %vm90_vm0 = vcmask 261120   ;;  %v2943_v0 = vld [vmem:[#allocation7] sm:$0xff]  ;;  %v2945_v1 = vld [vmem:[#allocation7 + $0x10] sm:$0xff]  ;;  %v495_v56 = vlaneseq  ;;  %vm529_vm1 = vcmask 1041409  }
  0x38   :  { %v2947_v2 = vld [vmem:[#allocation7 + $0x20] sm:$0xff]  ;;  %v2551_v3 = vpack.c.bf16 %v2945_v1, %v2943_v0  ;;  %v2951_v4 = vld [vmem:[#allocation7 + $0x30] sm:$0xff]  ;;  %v2959_v7 = vld [vmem:[#allocation2 + $0x8] sm:$0xff]  ;;  %vm531_vm2 = vcmask 1042434   ;;  %vm533_vm3 = vcmask 1043459   ;;  %vm535_vm4 = vcmask 1044484  }
  0x39   :  { %v2953_v5 = vld [vmem:[#allocation2] sm:$0xff]  ;;  %v2555_v6 = vpack.c.bf16 %v2951_v4, %v2947_v2  ;;  %v2961_v8 = vld [vmem:[#allocation2 + $0x10] sm:$0xff]  ;;  %v2967_v9 = vld [vmem:[#allocation2 + $0x18] sm:$0xff]  ;;  %v3025_v57 = vand.u32 127, %v495_v56  ;;  %v3027_v58 = vshrl.u32 %v495_v56, 7  ;;  %vm537_vm5 = vcmask 1045509  }
  0x3a   :  { %2485 = vmatprep.mubr.msk.f32.mxu0 %vm90_vm0, %v2953_v5  ;;  %2552 = vmatprep.subr.bf16.mxu0 %v2551_v3  ;;  %v2969_v10 = vld [vmem:[#allocation2 + $0x20] sm:$0xff]  ;;  %v2975_v11 = vld [vmem:[#allocation2 + $0x28] sm:$0xff]  ;;  %v2977_v12 = vld [vmem:[#allocation2 + $0x30] sm:$0xff]  ;;  %vm539_vm6 = vcmask 1046534   ;;  %vm541_vm7 = vcmask 1047559   ;;  %vm544_vm8 = vcmask 64512  }
  0x3b   :  { %2554 = vmatpush3.bf16.msra.mxu0 %v2551_v3  ;;  %v2983_v13 = vld [vmem:[#allocation2 + $0x38] sm:$0xff]  ;;  %v2427_v14 = vld [vmem:[%s3666_s3] ss:$0 sm:$0xff]  ;;  %v3031_v60 = vsub.s32 %v3025_v57, %v3027_v58  ;;  %v3069_v56 = vsub.s32 5, %v3027_v58  ;;  %s2862_s9 = smov 64   ;;  %s2863_s10 = smov 32  }
  0x3c   :  { %2556 = vmatprep.subr.bf16.mxu0 %v2555_v6  ;;  %v2428_v27 = vld [vmem:[%s3667_s4] ss:$0 sm:$0xff]  ;;  %vm2865_vm9 = vmmov 0   ;;  %vm1178_vm10 = vcmask 130112   ;;  %vm1251_vm11 = vcmask 130048   ;;  %s2869_s17 = smov [#allocation8]  }
  0x3d   :  { %s2393_s18 = sshll.u32 %s2869_s17, 4  ;;  %vm2385_vm12 = vcmask 523520   ;;  %s2394_s18 = int_to_ptr.vmem [resolvable:$true] %s2393_s18 }
  0x3e   :  { %s2826_s19 = scalar_lea.vmem %s2394_s18, 128  ;;  %p2831_p11 = scmp.lt.s32.totalorder %s2394_s18, %s2394_s18 }
  0x3f   :  { %2558 = vmatpush3.bf16.msra.mxu0 %v2555_v6  ;;  %p2827_p10 = scmp.ne.s32.totalorder %s2394_s18, %s2826_s19  ;;  %p2832_p12 = scmp.lt.s32.totalorder %s2826_s19, %s2826_s19 }
  0x41   :  { %p2833_p13 = por %p2832_p12, %p2831_p11 }
  0x42   :  { %2486 = vmatmul.mubr.msk.f32.vlgmr.msra.gmra.mrb[0].mxu0 %vm90_vm0, %v2959_v7 }
  0x43   :  { %2488 = vmatprep.mubr.msk.f32.mxu0 %vm90_vm0, %v2961_v8  ;;  %p2834_p0 = pnand %p2833_p13, %p2827_p10 }
  0x46   :  { %2489 = vmatmul.mubr.msk.f32.gmra.mrb[2].mxu0 %vm90_vm0, %v2967_v9 }
  0x47   :  { %2491 = vmatprep.mubr.msk.f32.mxu0 %vm90_vm0, %v2969_v10 }
  0x4a   :  { %2492 = vmatmul.mubr.msk.f32.gmra.mrb[4].mxu0 %vm90_vm0, %v2975_v11 }
  0x4b   :  { %2494 = vmatprep.mubr.msk.f32.mxu0 %vm90_vm0, %v2977_v12 }
  0x4e   :  { %2495 = vmatmul.mubr.msk.f32.gmra.mrb[6].mxu0 %vm90_vm0, %v2983_v13 }
 0x115   :  { %v2990_v15 = vpop.f32.mrb[0].mxu0 }
 0x116   :  { %3680 = vst [vmem:[#allocation12_spill] sm:$0xff] %v2990_v15  ;;  %v435_v16 = vadd.f32 %v2990_v15, %v2427_v14  ;;  %v2993_v17 = vpop.f32.mrb[1].mxu0 }
 0x117   :  { %3681 = vst [vmem:[#allocation13_spill] sm:$0xff] %v2993_v17  ;;  %v434_v18 = vadd.f32 %v2427_v14, %v2993_v17 }
 0x118   :  { %2617 = vtanh.f32 %v435_v16 }
 0x119   :  { %2619 = vtanh.f32 %v434_v18  ;;  %v2996_v19 = vpop.f32.mrb[2].mxu0 }
 0x11a   :  { %3682 = vst [vmem:[#allocation14_spill] sm:$0xff] %v2996_v19  ;;  %v437_v20 = vadd.f32 %v2996_v19, %v2427_v14  ;;  %v2999_v21 = vpop.f32.mrb[3].mxu0 }
 0x11b   :  { %3683 = vst [vmem:[#allocation15_spill] sm:$0xff] %v2999_v21  ;;  %v436_v22 = vadd.f32 %v2427_v14, %v2999_v21 }
 0x11c   :  { %2621 = vtanh.f32 %v437_v20 }
 0x11d   :  { %2623 = vtanh.f32 %v436_v22  ;;  %v3002_v23 = vpop.f32.mrb[4].mxu0 }
 0x11e   :  { %3684 = vst [vmem:[#allocation16_spill] sm:$0xff] %v3002_v23  ;;  %v439_v24 = vadd.f32 %v3002_v23, %v2427_v14  ;;  %v3005_v25 = vpop.f32.mrb[5].mxu0 }
 0x11f   :  { %3685 = vst [vmem:[#allocation17_spill] sm:$0xff] %v3005_v25  ;;  %v438_v26 = vadd.f32 %v2427_v14, %v3005_v25 }
 0x120   :  { %2625 = vtanh.f32 %v439_v24 }
 0x121   :  { %2627 = vtanh.f32 %v438_v26  ;;  %v3011_v28 = vpop.f32.mrb[6].mxu0 }
 0x122   :  { %3686 = vst [vmem:[#allocation18_spill] sm:$0xff] %v3011_v28  ;;  %v2618_v29 = vpop.eup %2617  ;;  %v441_v30 = vadd.f32 %v3011_v28, %v2427_v14  ;;  %v3014_v31 = vpop.f32.mrb[7].mxu0 }
 0x123   :  { %3687 = vst [vmem:[#allocation19_spill] sm:$0xff] %v3014_v31  ;;  %v2620_v32 = vpop.eup %2619  ;;  %v440_v33 = vadd.f32 %v2427_v14, %v3014_v31  ;;  %v456_v34 = vmul.f32 %v2618_v29, %v2428_v27 }
 0x124   :  { %2629 = vtanh.f32 %v441_v30  ;;  %v455_v36 = vmul.f32 %v2620_v32, %v2428_v27 }
 0x125   :  { %2631 = vtanh.f32 %v440_v33  ;;  %v466_v35 = vsel %vm90_vm0, %v456_v34, 0.0 }
 0x126   :  { %v2622_v37 = vpop.eup %2621  ;;  %467 = vadd.xlane.f32.xlu0 %v466_v35  ;;  %v463_v40 = vsel %vm90_vm0, %v455_v36, 0.0 }
 0x127   :  { %v2624_v38 = vpop.eup %2623  ;;  %v458_v39 = vmul.f32 %v2622_v37, %v2428_v27 }
 0x128   :  { %v457_v42 = vmul.f32 %v2624_v38, %v2428_v27 }
 0x129   :  { %v472_v41 = vsel %vm90_vm0, %v458_v39, 0.0 }
 0x12a   :  { %v2626_v43 = vpop.eup %2625  ;;  %464 = vadd.xlane.f32.xlu0 %v463_v40  ;;  %473 = vadd.xlane.f32.xlu1 %v472_v41  ;;  %v469_v46 = vsel %vm90_vm0, %v457_v42, 0.0  ;;  %v2861_v40 = vmov 0   ;;  %v3050_v41 = vsub.s32 0, %v3027_v58  ;;  %v3053_v42 = vsub.s32 1, %v3027_v58 }
 0x12b   :  { %v2628_v44 = vpop.eup %2627  ;;  %v460_v47 = vmul.f32 %v2626_v43, %v2428_v27  ;;  %2596 = vset.pattern.permute.xlu0 %v2861_v40  ;;  %2595 = vset.pattern.permute.xlu1 %v2861_v40  ;;  %v3056_v43 = vsub.s32 2, %v3027_v58 }
 0x12c   :  { %v459_v45 = vmul.f32 %v2628_v44, %v2428_v27  ;;  %v3059_v44 = vsub.s32 3, %v3027_v58 }
 0x12d   :  { %v478_v52 = vsel %vm90_vm0, %v460_v47, 0.0 }
 0x12e   :  { %v2630_v48 = vpop.eup %2629  ;;  %470 = vadd.xlane.f32.xlu1 %v469_v46  ;;  %v475_v49 = vsel %vm90_vm0, %v459_v45, 0.0 }
 0x12f   :  { %v2632_v50 = vpop.eup %2631  ;;  %476 = vadd.xlane.f32.xlu0 %v475_v49  ;;  %v462_v53 = vmul.f32 %v2630_v48, %v2428_v27 }
 0x130   :  { %v461_v51 = vmul.f32 %v2632_v50, %v2428_v27 }
 0x131   :  { %v484_v55 = vsel %vm90_vm0, %v462_v53, 0.0 }
 0x132   :  { %479 = vadd.xlane.f32.xlu1 %v478_v52  ;;  %v481_v54 = vsel %vm90_vm0, %v461_v51, 0.0  ;;  %v3065_v51 = vsub.s32 4, %v3027_v58 }
 0x133   :  { %482 = vadd.xlane.f32.xlu0 %v481_v54 }
 0x136   :  { %485 = vadd.xlane.f32.xlu1 %v484_v55 }
 0x1b3   :  { %v468_v59 = vpop.xlane.xlu0 %467 }
 0x1b4   :  { %v504_v3 = vrot.slane %v468_v59, %v3031_v60 }
 0x1b7   :  { %v465_v61 = vpop.xlane.xlu0 %464  ;;  %v474_v62 = vpop.xlane.xlu1 %473 }
 0x1b8   :  { %v500_v63 = vrot.slane %v465_v61, %v3031_v60  ;;  %v512_v20 = vrot.slane %v474_v62, %v3031_v60 }
 0x1ba   :  { %v530_v18 = vsel %vm529_vm1, %v504_v3, %v500_v63 }
 0x1bb   :  { %v471_v6 = vpop.xlane.xlu1 %470 }
 0x1bc   :  { %v508_v14 = vrot.slane %v471_v6, %v3031_v60  ;;  %v477_v16 = vpop.xlane.xlu0 %476 }
 0x1bd   :  { %v516_v22 = vrot.slane %v477_v16, %v3031_v60 }
 0x1be   :  { %v532_v24 = vsel %vm531_vm2, %v508_v14, %v530_v18 }
 0x1bf   :  { %v534_v26 = vsel %vm533_vm3, %v512_v20, %v532_v24  ;;  %v480_v27 = vpop.xlane.xlu1 %479 }
 0x1c0   :  { %v536_v29 = vsel %vm535_vm4, %v516_v22, %v534_v26  ;;  %v520_v30 = vrot.slane %v480_v27, %v3031_v60  ;;  %v483_v32 = vpop.xlane.xlu0 %482 }
 0x1c1   :  { %v524_v33 = vrot.slane %v483_v32, %v3031_v60 }
 0x1c2   :  { %v538_v34 = vsel %vm537_vm5, %v520_v30, %v536_v29 }
 0x1c3   :  { %v486_v35 = vpop.xlane.xlu1 %485  ;;  %v540_v37 = vsel %vm539_vm6, %v524_v33, %v538_v34 }
 0x1c4   :  { %v528_v36 = vrot.slane %v486_v35, %v3031_v60 }
 0x1c6   :  { %v542_v38 = vsel %vm541_vm7, %v528_v36, %v540_v37 }
 0x1c7   :  { %v545_v39 = vsel %vm544_vm8, %v542_v38, -inf }
 0x1c8   :  { %546 = vmax.xlane.f32.xlu0 %v545_v39 }
 0x255   :  { %v547_v45 = vpop.xlane.xlu0 %546 }
 0x256   :  { %v552_v46 = vrot.slane %v547_v45, %v3050_v41  ;;  %v556_v47 = vrot.slane %v547_v45, %v3053_v42  ;;  %v560_v48 = vrot.slane %v547_v45, %v3056_v43  ;;  %v564_v52 = vrot.slane %v547_v45, %v3059_v44 }
 0x257   :  { %v568_v63 = vrot.slane %v547_v45, %v3065_v51 }
 0x258   :  { %v590_v49 = vsub.f32 %v468_v59, %v556_v47  ;;  %v589_v50 = vsub.f32 %v465_v61, %v552_v46  ;;  %v591_v53 = vsub.f32 %v471_v6, %v560_v48  ;;  %v592_v14 = vsub.f32 %v474_v62, %v564_v52 }
 0x259   :  { %v3073_v59 = vsub.s32 6, %v3027_v58  ;;  %v572_v61 = vrot.slane %v547_v45, %v3069_v56  ;;  %v593_v20 = vsub.f32 %v477_v16, %v568_v63  ;;  %v3077_v6 = vsub.s32 7, %v3027_v58 }
 0x25a   :  { %v599_v54 = vmul.f32 1.442695, %v590_v49  ;;  %v597_v55 = vmul.f32 1.442695, %v589_v50  ;;  %v601_v3 = vmul.f32 1.442695, %v591_v53 }
 0x25b   :  { %v603_v18 = vmul.f32 1.442695, %v592_v14  ;;  %v576_v22 = vrot.slane %v547_v45, %v3073_v59  ;;  %v605_v24 = vmul.f32 1.442695, %v593_v20  ;;  %v594_v26 = vsub.f32 %v480_v27, %v572_v61 }
 0x25c   :  { %2633 = vpow2.f32 %v599_v54  ;;  %v580_v62 = vrot.slane %v547_v45, %v3077_v6 }
 0x25d   :  { %2635 = vpow2.f32 %v597_v55  ;;  %v607_v16 = vmul.f32 1.442695, %v594_v26  ;;  %v595_v33 = vsub.f32 %v483_v32, %v576_v22 }
 0x25e   :  { %2637 = vpow2.f32 %v601_v3  ;;  %v596_v27 = vsub.f32 %v486_v35, %v580_v62 }
 0x25f   :  { %2639 = vpow2.f32 %v603_v18  ;;  %v609_v36 = vmul.f32 1.442695, %v595_v33 }
 0x260   :  { %2641 = vpow2.f32 %v605_v24  ;;  %v611_v38 = vmul.f32 1.442695, %v596_v27 }
 0x261   :  { %2643 = vpow2.f32 %v607_v16 }
 0x262   :  { %2645 = vpow2.f32 %v609_v36 }
 0x263   :  { %2647 = vpow2.f32 %v611_v38  ;;  %v2597_v38 = vpack.i.bf16 %v2945_v1, %v2943_v0 }
 0x266   :  { %v3080_v29 = vpop.eup %2633 }
 0x267   :  { %v3082_v30 = vpop.eup %2635  ;;  %625 = vperm.xlu0 %2596, %v3080_v29  }
 0x268   :  { %622 = vperm.xlu1 %2595, %v3082_v30   ;;  %v3087_v34 = vpop.eup %2637 }
 0x269   :  { %v3090_v37 = vpop.eup %2639 }
 0x26a   :  { %v2642_v39 = vpop.eup %2641 }
 0x26b   :  { %v2644_v40 = vpop.eup %2643  ;;  %2598 = vrot.lane.b32.xlu0 %v2597_v38, %s2862_s9 }
 0x26c   :  { %628 = vperm.xlu1 %2595, %v3087_v34   ;;  %v3093_v45 = vpop.eup %2645 }
 0x26d   :  { %v2648_v32 = vpop.eup %2647 }
 0x270   :  { %631 = vperm.xlu1 %2595, %v3090_v37  }
 0x274   :  { %634 = vperm.xlu1 %2595, %v2642_v39  }
 0x278   :  { %637 = vperm.xlu1 %2595, %v2644_v40  }
 0x27c   :  { %640 = vperm.xlu1 %2595, %v3093_v45  }
 0x280   :  { %643 = vperm.xlu1 %2595, %v2648_v32  }
 0x2e6   :  { %v626_v49 = vpop.permute.xlu0 %625 }
 0x2e7   :  { %v623_v46 = vpop.permute.xlu1 %622  ;;  %v652_v52 = vrot.slane %v626_v49, %v3031_v60 }
 0x2e8   :  { %v648_v53 = vrot.slane %v623_v46, %v3031_v60 }
 0x2ea   :  { %v677_v14 = vsel %vm529_vm1, %v652_v52, %v648_v53  ;;  %v2599_v46 = vpop.permute.xlu0 %2598 }
 0x2eb   :  { %v629_v47 = vpop.permute.xlu1 %628 }
 0x2ec   :  { %v656_v54 = vrot.slane %v629_v47, %v3031_v60  ;;  %v2601_v47 = vunpack.i.h.bf16 %v2599_v46 }
 0x2ee   :  { %v678_v18 = vsel %vm531_vm2, %v656_v54, %v677_v14 }
 0x2ef   :  { %v632_v35 = vpop.permute.xlu1 %631 }
 0x2f0   :  { %v660_v55 = vrot.slane %v632_v35, %v3031_v60  ;;  %v2600_v35 = vunpack.i.l.bf16 %v2599_v46 }
 0x2f2   :  { %v679_v22 = vsel %vm533_vm3, %v660_v55, %v678_v18 }
 0x2f3   :  { %v635_v48 = vpop.permute.xlu1 %634 }
 0x2f4   :  { %v664_v63 = vrot.slane %v635_v48, %v3031_v60  ;;  %v2559_v48 = vpack.c.bf16 %v2601_v47, %v2600_v35 }
 0x2f6   :  { %v680_v24 = vsel %vm535_vm4, %v664_v63, %v679_v22  ;;  %2560 = vmatprep.subr.bf16.mxu1 %v2559_v48 }
 0x2f7   :  { %v638_v50 = vpop.permute.xlu1 %637  ;;  %2562 = vmatpush3.bf16.msra.mxu1 %v2559_v48 }
 0x2f8   :  { %v668_v61 = vrot.slane %v638_v50, %v3031_v60 }
 0x2fa   :  { %v681_v16 = vsel %vm537_vm5, %v668_v61, %v680_v24 }
 0x2fb   :  { %v641_v3 = vpop.permute.xlu1 %640 }
 0x2fc   :  { %v672_v20 = vrot.slane %v641_v3, %v3031_v60 }
 0x2fe   :  { %v682_v33 = vsel %vm539_vm6, %v672_v20, %v681_v16 }
 0x2ff   :  { %v644_v26 = vpop.permute.xlu1 %643 }
 0x300   :  { %v676_v62 = vrot.slane %v644_v26, %v3031_v60 }
 0x302   :  { %v683_v36 = vsel %vm541_vm7, %v676_v62, %v682_v33 }
 0x303   :  { %v685_v27 = vsel %vm544_vm8, %v683_v36, 0.0 }
 0x304   :  { %686 = vadd.xlane.f32.xlu1 %v685_v27 }
 0x391   :  { %v687_v49 = vpop.xlane.xlu1 %686 }
 0x392   :  { %2649 = vrcp.f32 %v687_v49 }
 0x39c   :  { %v2650_v50 = vpop.eup %2649 }
 0x39d   :  { %v721_v52 = vrot.slane %v2650_v50, %v3077_v6  ;;  %v693_v53 = vrot.slane %v2650_v50, %v3050_v41  ;;  %v697_v0 = vrot.slane %v2650_v50, %v3053_v42  ;;  %v701_v63 = vrot.slane %v2650_v50, %v3056_v43 }
 0x39e   :  { %v705_v14 = vrot.slane %v2650_v50, %v3059_v44  ;;  %v713_v18 = vrot.slane %v2650_v50, %v3069_v56 }
 0x39f   :  { %v737_v54 = vmul.f32 %v2648_v32, %v721_v52  ;;  %v730_v55 = vmul.f32 %v3082_v30, %v693_v53  ;;  %v731_v1 = vmul.f32 %v3080_v29, %v697_v0  ;;  %v732_v3 = vmul.f32 %v3087_v34, %v701_v63 }
 0x3a0   :  { %v733_v61 = vmul.f32 %v3090_v37, %v705_v14  ;;  %v709_v32 = vrot.slane %v2650_v50, %v3065_v51  ;;  %v735_v20 = vmul.f32 %v2644_v40, %v713_v18  ;;  %v717_v29 = vrot.slane %v2650_v50, %v3073_v59  ;;  %v70_v37 = vld [vmem:[#allocation5] sm:$0xff] }
 0x3a1   :  { %775 = vperm.xlu1 %2595, %v737_v54   ;;  %740 = vperm.xlu0 %2596, %v730_v55   ;;  %v2602_v34 = vpack.i.bf16 %v2951_v4, %v2947_v2  ;;  %v2866_v40 = vmov 0.0  }
 0x3a2   :  { %v734_v30 = vmul.f32 %v2642_v39, %v709_v32  ;;  %v736_v22 = vmul.f32 %v3093_v45, %v717_v29  ;;  %2505 = vmatprep.mubr.msk.f32.mxu1 %vm90_vm0, %v70_v37  ;;  %v3669_v39 = vmov 0.0|0.0   ;;  %2537 = vmatprep.mubr.msk.f32.mxu0 %vm2865_vm9, %v2866_v40 }
 0x3a3   :  { %2567 = vmatprep.subr.bf16.mxu0 %v3669_v39 }
 0x3a5   :  { %745 = vperm.xlu0 %2596, %v731_v1  }
 0x3a9   :  { %750 = vperm.xlu0 %2596, %v732_v3  }
 0x3ad   :  { %755 = vperm.xlu0 %2596, %v733_v61  }
 0x3b1   :  { %760 = vperm.xlu0 %2596, %v734_v30  }
 0x3b5   :  { %765 = vperm.xlu0 %2596, %v735_v20  }
 0x3b9   :  { %770 = vperm.xlu0 %2596, %v736_v22  }
 0x3bd   :  { %2603 = vrot.lane.b32.xlu0 %v2602_v34, %s2862_s9 }
 0x3c1   :  { %2608 = vrot.lane.b32.xlu0 %v2597_v38, %s2863_s10 }
 0x3c5   :  { %2613 = vrot.lane.b32.xlu0 %v2602_v34, %s2863_s10 }
 0x420   :  { %v741_v45 = vpop.permute.xlu0 %740  ;;  %v776_v33 = vpop.permute.xlu1 %775 }
 0x421   :  { %v778_v24 = vmul.f32 %v741_v45, %v2953_v5  ;;  %v785_v35 = vmul.f32 %v776_v33, %v2983_v13 }
 0x423   :  { %v786_v36 = vsel %vm90_vm0, %v778_v24, 0.0 }
 0x424   :  { %v746_v2 = vpop.permute.xlu0 %745  ;;  %v787_v48 = vrot.slane %v786_v36, 4 }
 0x425   :  { %v779_v4 = vmul.f32 %v746_v2, %v2959_v7 }
 0x426   :  { %v788_v54 = vadd.f32 %v787_v48, %v786_v36 }
 0x427   :  { %v793_v26 = vsel %vm90_vm0, %v779_v4, 0.0 }
 0x428   :  { %v751_v62 = vpop.permute.xlu0 %750  ;;  %v794_v27 = vrot.slane %v793_v26, 4 }
 0x429   :  { %v780_v16 = vmul.f32 %v751_v62, %v2961_v8  ;;  %v835_v8 = vsel %vm90_vm0, %v785_v35, 0.0 }
 0x42a   :  { %v795_v49 = vadd.f32 %v794_v27, %v793_v26  ;;  %v836_v3 = vrot.slane %v835_v8, 4 }
 0x42b   :  { %v800_v38 = vsel %vm90_vm0, %v780_v16, 0.0 }
 0x42c   :  { %v801_v46 = vrot.slane %v800_v38, 4  ;;  %v756_v47 = vpop.permute.xlu0 %755  ;;  %v796_v1 = vrot.slane %v795_v49, 2  ;;  %v837_v22 = vadd.f32 %v836_v3, %v835_v8 }
 0x42d   :  { %v781_v7 = vmul.f32 %v756_v47, %v2967_v9  ;;  %v789_v9 = vrot.slane %v788_v54, 2 }
 0x42e   :  { %v802_v50 = vadd.f32 %v801_v46, %v800_v38  ;;  %v797_v20 = vadd.f32 %v796_v1, %v795_v49  ;;  %v838_v36 = vrot.slane %v837_v22, 2 }
 0x42f   :  { %v807_v5 = vsel %vm90_vm0, %v781_v7, 0.0  ;;  %v790_v2 = vadd.f32 %v789_v9, %v788_v54  ;;  %v3153_v9 = vld [vmem:[#allocation5 + $0x8] sm:$0xff] }
 0x430   :  { %v808_v52 = vrot.slane %v807_v5, 4  ;;  %v761_v53 = vpop.permute.xlu0 %760  ;;  %v803_v13 = vrot.slane %v802_v50, 2  ;;  %v798_v16 = vrot.slane %v797_v20, 1 }
 0x431   :  { %v782_v55 = vmul.f32 %v761_v53, %v2969_v10  ;;  %v791_v47 = vrot.slane %v790_v2, 1 }
 0x432   :  { %v809_v0 = vadd.f32 %v808_v52, %v807_v5  ;;  %v804_v34 = vadd.f32 %v803_v13, %v802_v50  ;;  %v799_v52 = vadd.f32 %v798_v16, %v797_v20  ;;  %v3156_v20 = vld [vmem:[#allocation5 + $0x10] sm:$0xff]  ;;  %v3168_v16 = vld [vmem:[#allocation5 + $0x20] sm:$0xff] }
 0x433   :  { %v814_v63 = vsel %vm90_vm0, %v782_v55, 0.0  ;;  %v792_v1 = vadd.f32 %v791_v47, %v790_v2  ;;  %v3189_v47 = vld [vmem:[#allocation5 + $0x38] sm:$0xff] }
 0x434   :  { %v815_v14 = vrot.slane %v814_v63, 4  ;;  %v766_v61 = vpop.permute.xlu0 %765  ;;  %v810_v32 = vrot.slane %v809_v0, 2 }
 0x435   :  { %v783_v30 = vmul.f32 %v766_v61, %v2975_v11  ;;  %v805_v11 = vrot.slane %v804_v34, 1 }
 0x436   :  { %v816_v18 = vadd.f32 %v815_v14, %v814_v63  ;;  %v811_v4 = vadd.f32 %v810_v32, %v809_v0  ;;  %v850_v32 = vsel %vm529_vm1, %v799_v52, %v792_v1  ;;  %v3221_v52 = vld [vmem:[#allocation5 + $0x78] sm:$0xff] }
 0x437   :  { %v821_v29 = vsel %vm90_vm0, %v783_v30, 0.0  ;;  %v806_v8 = vadd.f32 %v805_v11, %v804_v34 }
 0x438   :  { %v817_v37 = vrot.slane %v816_v18, 2  ;;  %v822_v10 = vrot.slane %v821_v29, 4  ;;  %v771_v45 = vpop.permute.xlu0 %770  ;;  %v812_v35 = vrot.slane %v811_v4, 1 }
 0x439   :  { %v784_v24 = vmul.f32 %v771_v45, %v2977_v12  ;;  %v839_v12 = vadd.f32 %v838_v36, %v837_v22 }
 0x43a   :  { %v818_v26 = vadd.f32 %v817_v37, %v816_v18  ;;  %v823_v62 = vadd.f32 %v822_v10, %v821_v29  ;;  %v813_v63 = vadd.f32 %v812_v35, %v811_v4  ;;  %v851_v29 = vsel %vm531_vm2, %v806_v8, %v850_v32  ;;  %v3191_v35 = vld [vmem:[#allocation5 + $0x40] sm:$0xff] }
 0x43b   :  { %v828_v33 = vsel %vm90_vm0, %v784_v24, 0.0  ;;  %v840_v37 = vrot.slane %v839_v12, 1 }
 0x43c   :  { %v824_v27 = vrot.slane %v823_v62, 2  ;;  %v829_v38 = vrot.slane %v828_v33, 4  ;;  %v2604_v46 = vpop.permute.xlu0 %2603  ;;  %v819_v49 = vrot.slane %v818_v26, 1  ;;  %v852_v10 = vsel %vm533_vm3, %v813_v63, %v851_v29 }
 0x43d   :  { %v2606_v48 = vunpack.i.h.bf16 %v2604_v46  ;;  %v2605_v7 = vunpack.i.l.bf16 %v2604_v46  ;;  %v841_v11 = vadd.f32 %v840_v37, %v839_v12  ;;  %v3180_v46 = vld [vmem:[#allocation5 + $0x30] sm:$0xff] }
 0x43e   :  { %v825_v5 = vadd.f32 %v824_v27, %v823_v62  ;;  %v830_v50 = vadd.f32 %v829_v38, %v828_v33  ;;  %v820_v14 = vadd.f32 %v819_v49, %v818_v26  ;;  %v3166_v26 = vld [vmem:[#allocation5 + $0x18] sm:$0xff]  ;;  %v3176_v27 = vld [vmem:[#allocation5 + $0x28] sm:$0xff]  ;;  %v3207_v49 = vld [vmem:[#allocation5 + $0x60] sm:$0xff] }
 0x43f   :  { %v2563_v53 = vpack.c.bf16 %v2606_v48, %v2605_v7  ;;  %v3197_v48 = vld [vmem:[#allocation5 + $0x48] sm:$0xff]  ;;  %v3199_v7 = vld [vmem:[#allocation5 + $0x50] sm:$0xff] }
 0x440   :  { %v826_v54 = vrot.slane %v825_v5, 1  ;;  %v831_v55 = vrot.slane %v830_v50, 2  ;;  %v2609_v0 = vpop.permute.xlu0 %2608  ;;  %v853_v4 = vsel %vm535_vm4, %v820_v14, %v852_v10 }
 0x441   :  { %v2611_v3 = vunpack.i.h.bf16 %v2609_v0  ;;  %v2610_v13 = vunpack.i.l.bf16 %v2609_v0  ;;  %2564 = vmatprep.subr.bf16.mxu1 %v2563_v53 }
 0x442   :  { %v832_v61 = vadd.f32 %v831_v55, %v830_v50  ;;  %2566 = vmatpush3.bf16.msra.mxu1 %v2563_v53  ;;  %v827_v30 = vadd.f32 %v826_v54, %v825_v5  ;;  %v3213_v5 = vld [vmem:[#allocation5 + $0x68] sm:$0xff]  ;;  %v3215_v50 = vld [vmem:[#allocation5 + $0x70] sm:$0xff]  ;;  %v2867_v53 = vmov 1966171168  }
 0x443   :  { %v2568_v18 = vpack.c.bf16 %v2611_v3, %v2610_v13  ;;  %v944_v12 = vunpack.c.l.s4 %v2867_v53 }
 0x444   :  { %v833_v22 = vrot.slane %v832_v61, 1  ;;  %v2614_v34 = vpop.permute.xlu0 %2613  ;;  %v854_v33 = vsel %vm537_vm5, %v827_v30, %v853_v4  ;;  %v3236_v4 = vld [vmem:[%s3666_s3 + $0x1] ss:$0 sm:$0xff] }
 0x445   :  { %v2616_v45 = vunpack.i.h.bf16 %v2614_v34  ;;  %v2615_v2 = vunpack.i.l.bf16 %v2614_v34  ;;  %2506 = vmatmul.mubr.msk.f32.vlgmr.msra.gmra.mrb[0].mxu1 %vm90_vm0, %v3153_v9  ;;  %2569 = vmatpush3.bf16.msra.mxu0 %v2568_v18  ;;  %v945_v8 = vunpack.c.0.s8 %v944_v12 }
 0x446   :  { %v834_v24 = vadd.f32 %v833_v22, %v832_v61  ;;  %2508 = vmatprep.mubr.msk.f32.mxu1 %vm90_vm0, %v3156_v20  ;;  %2570 = vmatprep.subr.bf16.mxu0 %v3669_v39 }
 0x447   :  { %v2571_v62 = vpack.c.bf16 %v2616_v45, %v2615_v2  ;;  %v3226_v0 = vsub.s32 %v945_v8, %v3027_v58 }
 0x448   :  { %v855_v36 = vsel %vm539_vm6, %v834_v24, %v854_v33 }
 0x449   :  { %2509 = vmatmul.mubr.msk.f32.gmra.mrb[2].mxu1 %vm90_vm0, %v3166_v26  ;;  %2572 = vmatpush3.bf16.msra.mxu0 %v2571_v62  ;;  %v856_v38 = vsel %vm541_vm7, %v841_v11, %v855_v36  ;;  %3688 = vst [vmem:[#allocation20_spill] sm:$0xff] %v3226_v0 }
 0x44a   :  { %2511 = vmatprep.mubr.msk.f32.mxu1 %vm90_vm0, %v3168_v16  ;;  %2573 = vmatprep.subr.bf16.mxu0 %v3669_v39 }
 0x44c   :  { %2538 = vmatmul.mubr.msk.f32.vlgmr.msra.gmra.mrb[8].mxu0 %vm90_vm0, %v856_v38 }
 0x44d   :  { %2512 = vmatmul.mubr.msk.f32.gmra.mrb[4].mxu1 %vm90_vm0, %v3176_v27  ;;  %2548 = vmatprep.mubr.msk.f32.mxu0 %vm2865_vm9, %v2866_v40  ;;  %v3205_v40 = vld [vmem:[#allocation5 + $0x58] sm:$0xff] }
 0x44e   :  { %2514 = vmatprep.mubr.msk.f32.mxu1 %vm90_vm0, %v3180_v46 }
 0x451   :  { %2515 = vmatmul.mubr.msk.f32.gmra.mrb[6].mxu1 %vm90_vm0, %v3189_v47 }
 0x452   :  { %2517 = vmatprep.mubr.msk.f32.mxu1 %vm90_vm0, %v3191_v35 }
 0x455   :  { %2518 = vmatmul.mubr.msk.f32.gmra.mrb[8].mxu1 %vm90_vm0, %v3197_v48 }
 0x456   :  { %2520 = vmatprep.mubr.msk.f32.mxu1 %vm90_vm0, %v3199_v7 }
 0x459   :  { %2521 = vmatmul.mubr.msk.f32.gmra.mrb[10].mxu1 %vm90_vm0, %v3205_v40 }
 0x45a   :  { %2523 = vmatprep.mubr.msk.f32.mxu1 %vm90_vm0, %v3207_v49 }
 0x45d   :  { %2524 = vmatmul.mubr.msk.f32.gmra.mrb[12].mxu1 %vm90_vm0, %v3213_v5 }
 0x45e   :  { %2526 = vmatprep.mubr.msk.f32.mxu1 %vm90_vm0, %v3215_v50 }
 0x461   :  { %2527 = vmatmul.mubr.msk.f32.gmra.mrb[14].mxu1 %vm90_vm0, %v3221_v52 }
 0x518   :  { %v2507_v54 = vpop.f32.mrb[0].mxu1 }
 0x519   :  { %v350_v55 = vpop.f32.mrb[1].mxu1 }
 0x51c   :  { %v2510_v1 = vpop.f32.mrb[2].mxu1 }
 0x51d   :  { %v360_v63 = vpop.f32.mrb[3].mxu1 }
 0x51f   :  { %v937_v3 = vpop.f32.mrb[8].mxu0 }
 0x520   :  { %v942_v13 = vcombine.high %v937_v3, %v937_v3  ;;  %v949_v14 = vrot.slane %v937_v3, %v3226_v0  ;;  %v2539_v61 = vpop.f32.mrb[9].mxu0  ;;  %v2513_v32 = vpop.f32.mrb[4].mxu1 }
 0x521   :  { %v370_v30 = vpop.f32.mrb[5].mxu1 }
 0x522   :  { %v956_v18 = vrot.slane %v942_v13, %v3226_v0  ;;  %v957_v29 = vcombine.high %v949_v14, %v949_v14  ;;  %v965_v22 = vrot.slane %v949_v14, %v3226_v0 }
 0x524   :  { %v958_v34 = vcombine.high %v956_v18, %v956_v18  ;;  %v994_v37 = vrot.slane %v965_v22, %v3050_v41  ;;  %v979_v10 = vrot.slane %v957_v29, %v3226_v0  ;;  %v987_v45 = vcombine.high %v965_v22, %v965_v22  ;;  %v2516_v2 = vpop.f32.mrb[6].mxu1 }
 0x525   :  { %v380_v24 = vpop.f32.mrb[7].mxu1  ;;  %v972_v62 = vrot.slane %v956_v18, %v3226_v0 }
 0x526   :  { %v1032_v33 = vadd.f32 %v2507_v54, %v994_v37  ;;  %v1031_v36 = vadd.f32 %v994_v37, %v350_v55  ;;  %v998_v11 = vrot.slane %v979_v10, %v3050_v41  ;;  %v1002_v38 = vrot.slane %v987_v45, %v3050_v41 }
 0x527   :  { %v989_v53 = vcombine.high %v979_v10, %v979_v10  ;;  %v1010_v12 = vrot.slane %v972_v62, %v3050_v41  ;;  %v986_v8 = vrot.slane %v958_v34, %v3226_v0  ;;  %v988_v3 = vcombine.high %v972_v62, %v972_v62 }
 0x528   :  { %v1053_v13 = vadd.f32 %v3236_v4, %v1032_v33  ;;  %v1052_v14 = vadd.f32 %v3236_v4, %v1031_v36  ;;  %v1034_v61 = vadd.f32 %v2510_v1, %v998_v11  ;;  %v1033_v29 = vadd.f32 %v998_v11, %v360_v63  ;;  %v2519_v22 = vpop.f32.mrb[8].mxu1 }
 0x529   :  { %v1036_v18 = vadd.f32 %v2513_v32, %v1002_v38  ;;  %v1035_v54 = vadd.f32 %v1002_v38, %v370_v30  ;;  %v1006_v55 = vrot.slane %v989_v53, %v3050_v41  ;;  %v1040_v37 = vadd.f32 %v2519_v22, %v1010_v12  ;;  %v390_v39 = vpop.f32.mrb[9].mxu1  ;;  %v3258_v22 = vld [vmem:[%s3667_s4 + $0x1] ss:$0 sm:$0xff] }
 0x52a   :  { %2651 = vtanh.f32 %v1053_v13  ;;  %v1055_v10 = vadd.f32 %v3236_v4, %v1034_v61  ;;  %v1054_v45 = vadd.f32 %v3236_v4, %v1033_v29  ;;  %v1039_v34 = vadd.f32 %v1010_v12, %v390_v39 }
 0x52b   :  { %2653 = vtanh.f32 %v1052_v14  ;;  %v1056_v62 = vadd.f32 %v3236_v4, %v1035_v54  ;;  %v1038_v33 = vadd.f32 %v2516_v2, %v1006_v55  ;;  %v1037_v36 = vadd.f32 %v1006_v55, %v380_v24 }
 0x52c   :  { %v2522_v1 = vpop.f32.mrb[10].mxu1  ;;  %2655 = vtanh.f32 %v1054_v45  ;;  %v1057_v63 = vadd.f32 %v3236_v4, %v1036_v18  ;;  %v1014_v32 = vrot.slane %v986_v8, %v3050_v41  ;;  %v1060_v38 = vadd.f32 %v3236_v4, %v1039_v34 }
 0x52d   :  { %v400_v30 = vpop.f32.mrb[11].mxu1  ;;  %2657 = vtanh.f32 %v1055_v10  ;;  %v1058_v11 = vadd.f32 %v3236_v4, %v1037_v36  ;;  %v1018_v53 = vrot.slane %v988_v3, %v3050_v41  ;;  %v990_v13 = vcombine.high %v986_v8, %v986_v8 }
 0x52e   :  { %2659 = vtanh.f32 %v1056_v62  ;;  %v1042_v39 = vadd.f32 %v2522_v1, %v1014_v32  ;;  %v1041_v12 = vadd.f32 %v1014_v32, %v400_v30  ;;  %v1061_v61 = vadd.f32 %v3236_v4, %v1040_v37 }
 0x52f   :  { %2661 = vtanh.f32 %v1057_v63  ;;  %v1022_v18 = vrot.slane %v990_v13, %v3050_v41  ;;  %v1059_v37 = vadd.f32 %v3236_v4, %v1038_v33 }
 0x530   :  { %v2525_v2 = vpop.f32.mrb[12].mxu1  ;;  %2663 = vtanh.f32 %v1058_v11  ;;  %v1062_v3 = vadd.f32 %v3236_v4, %v1041_v12  ;;  %v1063_v33 = vadd.f32 %v3236_v4, %v1042_v39 }
 0x531   :  { %v1044_v24 = vadd.f32 %v2525_v2, %v1018_v53  ;;  %v410_v14 = vpop.f32.mrb[13].mxu1  ;;  %2665 = vtanh.f32 %v1060_v38 }
 0x532   :  { %v1043_v29 = vadd.f32 %v1018_v53, %v410_v14  ;;  %2667 = vtanh.f32 %v1061_v61 }
 0x533   :  { %2669 = vtanh.f32 %v1062_v3  ;;  %v1065_v39 = vadd.f32 %v3236_v4, %v1044_v24 }
 0x534   :  { %v2652_v54 = vpop.eup %2651  ;;  %v2528_v8 = vpop.f32.mrb[14].mxu1  ;;  %v1064_v63 = vadd.f32 %v3236_v4, %v1043_v29  ;;  %2671 = vtanh.f32 %v1059_v37 }
 0x535   :  { %v2654_v55 = vpop.eup %2653  ;;  %v1046_v10 = vadd.f32 %v2528_v8, %v1022_v18  ;;  %v420_v45 = vpop.f32.mrb[15].mxu1  ;;  %v1090_v34 = vmul.f32 %v2652_v54, %v3258_v22 }
 0x536   :  { %v1045_v62 = vadd.f32 %v1022_v18, %v420_v45  ;;  %v1089_v36 = vmul.f32 %v2654_v55, %v3258_v22  ;;  %v2656_v1 = vpop.eup %2655  ;;  %2673 = vtanh.f32 %v1064_v63 }
 0x537   :  { %v1108_v32 = vsel %vm90_vm0, %v1090_v34, 0.0  ;;  %v2658_v30 = vpop.eup %2657  ;;  %v1091_v38 = vmul.f32 %v2656_v1, %v3258_v22  ;;  %2675 = vtanh.f32 %v1063_v33 }
 0x538   :  { %1109 = vadd.xlane.f32.xlu1 %v1108_v32  ;;  %v1105_v11 = vsel %vm90_vm0, %v1089_v36, 0.0  ;;  %v2660_v53 = vpop.eup %2659  ;;  %v1066_v2 = vadd.f32 %v3236_v4, %v1045_v62  ;;  %v1092_v3 = vmul.f32 %v2658_v30, %v3258_v22  ;;  %v1067_v36 = vadd.f32 %v3236_v4, %v1046_v10 }
 0x539   :  { %1106 = vadd.xlane.f32.xlu0 %v1105_v11  ;;  %v1093_v12 = vmul.f32 %v2660_v53, %v3258_v22  ;;  %v2662_v13 = vpop.eup %2661  ;;  %v1111_v61 = vsel %vm90_vm0, %v1091_v38, 0.0 }
 0x53a   :  { %v2664_v14 = vpop.eup %2663  ;;  %2677 = vtanh.f32 %v1066_v2  ;;  %v1114_v55 = vsel %vm90_vm0, %v1092_v3, 0.0  ;;  %v1094_v34 = vmul.f32 %v2662_v13, %v3258_v22 }
 0x53b   :  { %v1117_v29 = vsel %vm90_vm0, %v1093_v12, 0.0  ;;  %v2666_v18 = vpop.eup %2665  ;;  %v1095_v37 = vmul.f32 %v2664_v14, %v3258_v22  ;;  %2679 = vtanh.f32 %v1065_v39 }
 0x53c   :  { %1118 = vadd.xlane.f32.xlu1 %v1117_v29  ;;  %v1097_v54 = vmul.f32 %v2666_v18, %v3258_v22  ;;  %v2668_v8 = vpop.eup %2667  ;;  %v1120_v63 = vsel %vm90_vm0, %v1094_v34, 0.0  ;;  %2681 = vtanh.f32 %v1067_v36 }
 0x53d   :  { %1112 = vadd.xlane.f32.xlu0 %v1111_v61  ;;  %v2670_v62 = vpop.eup %2669  ;;  %v1123_v24 = vsel %vm90_vm0, %v1095_v37, 0.0  ;;  %v1098_v32 = vmul.f32 %v2668_v8, %v3258_v22 }
 0x53e   :  { %v1129_v45 = vsel %vm90_vm0, %v1097_v54, 0.0  ;;  %v2672_v1 = vpop.eup %2671  ;;  %v1099_v30 = vmul.f32 %v2670_v62, %v3258_v22 }
 0x53f   :  { %v1132_v53 = vsel %vm90_vm0, %v1098_v32, 0.0  ;;  %v1096_v4 = vmul.f32 %v2672_v1, %v3258_v22 }
 0x540   :  { %1130 = vadd.xlane.f32.xlu1 %v1129_v45  ;;  %v2674_v11 = vpop.eup %2673  ;;  %v1135_v33 = vsel %vm90_vm0, %v1099_v30, 0.0  ;;  %v1173_v30 = vadd.s32 4294967288, %v3025_v57 }
 0x541   :  { %1115 = vadd.xlane.f32.xlu0 %v1114_v55  ;;  %v2676_v38 = vpop.eup %2675  ;;  %v1101_v10 = vmul.f32 %v2674_v11, %v3258_v22  ;;  %v1126_v13 = vsel %vm90_vm0, %v1096_v4, 0.0 }
 0x542   :  { %v1100_v14 = vmul.f32 %v2676_v38, %v3258_v22  ;;  %v3316_v38 = vsub.s32 %v1173_v30, %v3027_v58 }
 0x543   :  { %v1141_v2 = vsel %vm90_vm0, %v1101_v10, 0.0 }
 0x544   :  { %1124 = vadd.xlane.f32.xlu1 %v1123_v24  ;;  %v2678_v12 = vpop.eup %2677  ;;  %v1138_v3 = vsel %vm90_vm0, %v1100_v14, 0.0 }
 0x545   :  { %1121 = vadd.xlane.f32.xlu0 %v1120_v63  ;;  %v1103_v61 = vmul.f32 %v2678_v12, %v3258_v22  ;;  %v2680_v29 = vpop.eup %2679 }
 0x546   :  { %v1102_v54 = vmul.f32 %v2680_v29, %v3258_v22  ;;  %v2682_v39 = vpop.eup %2681 }
 0x547   :  { %v1147_v18 = vsel %vm90_vm0, %v1103_v61, 0.0  ;;  %v1104_v55 = vmul.f32 %v2682_v39, %v3258_v22 }
 0x548   :  { %1136 = vadd.xlane.f32.xlu1 %v1135_v33  ;;  %v1144_v8 = vsel %vm90_vm0, %v1102_v54, 0.0 }
 0x549   :  { %1133 = vadd.xlane.f32.xlu0 %v1132_v53  ;;  %v1150_v45 = vsel %vm90_vm0, %v1104_v55, 0.0 }
 0x54c   :  { %1142 = vadd.xlane.f32.xlu1 %v1141_v2 }
 0x54d   :  { %1127 = vadd.xlane.f32.xlu0 %v1126_v13 }
 0x550   :  { %1148 = vadd.xlane.f32.xlu1 %v1147_v18 }
 0x551   :  { %1139 = vadd.xlane.f32.xlu0 %v1138_v3 }
 0x555   :  { %1145 = vadd.xlane.f32.xlu0 %v1144_v8 }
 0x559   :  { %1151 = vadd.xlane.f32.xlu0 %v1150_v45 }
 0x5c5   :  { %v1110_v34 = vpop.xlane.xlu1 %1109 }
 0x5c6   :  { %v1107_v37 = vpop.xlane.xlu0 %1106  ;;  %v1177_v10 = vrot.slane %v1110_v34, %v3316_v38 }
 0x5c7   :  { %v1172_v12 = vrot.slane %v1107_v37, %v3031_v60 }
 0x5c9   :  { %v3302_v36 = vpop.xlane.xlu1 %1118  ;;  %v1179_v18 = vsel %vm1178_vm10, %v1177_v10, %v1172_v12 }
 0x5ca   :  { %v3300_v62 = vpop.xlane.xlu0 %1112  ;;  %v1192_v58 = vrot.slane %v3302_v36, %v3031_v60 }
 0x5cb   :  { %v1183_v57 = vrot.slane %v3300_v62, %v3031_v60 }
 0x5cd   :  { %v3304_v63 = vpop.xlane.xlu1 %1130 }
 0x5ce   :  { %v1116_v1 = vpop.xlane.xlu0 %1115  ;;  %v1210_v10 = vrot.slane %v3304_v63, %v3031_v60 }
 0x5cf   :  { %v1187_v33 = vrot.slane %v1116_v1, %v3316_v38 }
 0x5d1   :  { %v3308_v32 = vpop.xlane.xlu1 %1124  ;;  %v1188_v61 = vsel %vm1178_vm10, %v1187_v33, %v1183_v57 }
 0x5d2   :  { %v3306_v24 = vpop.xlane.xlu0 %1121  ;;  %v1201_v29 = vrot.slane %v3308_v32, %v3031_v60  ;;  %v1243_v8 = vsel %vm529_vm1, %v1188_v61, %v1179_v18 }
 0x5d3   :  { %v1196_v4 = vrot.slane %v3306_v24, %v3316_v38 }
 0x5d5   :  { %v3313_v11 = vpop.xlane.xlu1 %1136  ;;  %v1197_v3 = vsel %vm1178_vm10, %v1196_v4, %v1192_v58 }
 0x5d6   :  { %v3311_v22 = vpop.xlane.xlu0 %1133  ;;  %v1244_v30 = vsel %vm531_vm2, %v1197_v3, %v1243_v8  ;;  %v1219_v33 = vrot.slane %v3313_v11, %v3031_v60 }
 0x5d7   :  { %v1214_v55 = vrot.slane %v3311_v22, %v3316_v38 }
 0x5d9   :  { %v3331_v2 = vpop.xlane.xlu1 %1142  ;;  %v1215_v61 = vsel %vm1178_vm10, %v1214_v55, %v1210_v10 }
 0x5da   :  { %v3318_v53 = vpop.xlane.xlu0 %1127  ;;  %v1228_v57 = vrot.slane %v3331_v2, %v3031_v60 }
 0x5db   :  { %v1205_v13 = vrot.slane %v3318_v53, %v3316_v38 }
 0x5dd   :  { %v1206_v54 = vsel %vm1178_vm10, %v1205_v13, %v1201_v29  ;;  %v3358_v13 = vpop.xlane.xlu1 %1148 }
 0x5de   :  { %v3333_v14 = vpop.xlane.xlu0 %1139  ;;  %v1245_v12 = vsel %vm533_vm3, %v1206_v54, %v1244_v30  ;;  %v1237_v18 = vrot.slane %v3358_v13, %v3031_v60 }
 0x5df   :  { %v1223_v39 = vrot.slane %v3333_v14, %v3316_v38  ;;  %v1246_v54 = vsel %vm535_vm4, %v1215_v61, %v1245_v12 }
 0x5e1   :  { %v1224_v58 = vsel %vm1178_vm10, %v1223_v39, %v1219_v33 }
 0x5e2   :  { %v3346_v45 = vpop.xlane.xlu0 %1145  ;;  %v1247_v30 = vsel %vm537_vm5, %v1224_v58, %v1246_v54 }
 0x5e3   :  { %v1232_v4 = vrot.slane %v3346_v45, %v3316_v38 }
 0x5e5   :  { %v1233_v3 = vsel %vm1178_vm10, %v1232_v4, %v1228_v57 }
 0x5e6   :  { %v3362_v29 = vpop.xlane.xlu0 %1151  ;;  %v1248_v39 = vsel %vm539_vm6, %v1233_v3, %v1247_v30 }
 0x5e7   :  { %v1241_v8 = vrot.slane %v3362_v29, %v3316_v38 }
 0x5e9   :  { %v1242_v31 = vsel %vm1178_vm10, %v1241_v8, %v1237_v18 }
 0x5ea   :  { %v1249_v55 = vsel %vm541_vm7, %v1242_v31, %v1248_v39 }
 0x5eb   :  { %v1252_v33 = vsel %vm1251_vm11, %v1249_v55, -inf }
 0x5ec   :  { %1253 = vmax.xlane.f32.xlu1 %v1252_v33 }
 0x679   :  { %v1254_v4 = vpop.xlane.xlu1 %1253 }
 0x67a   :  { %v1259_v10 = vrot.slane %v1254_v4, %v3050_v41  ;;  %v1263_v57 = vrot.slane %v1254_v4, %v3053_v42  ;;  %v1267_v12 = vrot.slane %v1254_v4, %v3056_v43  ;;  %v1271_v3 = vrot.slane %v1254_v4, %v3059_v44 }
 0x67c   :  { %v1296_v28 = vsub.f32 %v1107_v37, %v1259_v10  ;;  %v1297_v19 = vsub.f32 %v1110_v34, %v1259_v10  ;;  %v1299_v58 = vsub.f32 %v1116_v1, %v1263_v57  ;;  %v1298_v61 = vsub.f32 %v3300_v62, %v1263_v57 }
 0x67d   :  { %v1301_v31 = vsub.f32 %v3306_v24, %v1267_v12  ;;  %v1300_v30 = vsub.f32 %v3302_v36, %v1267_v12  ;;  %v1275_v37 = vrot.slane %v1254_v4, %v3065_v51  ;;  %v1303_v34 = vsub.f32 %v3318_v53, %v1271_v3 }
 0x67e   :  { %v1312_v18 = vmul.f32 1.442695, %v1296_v28  ;;  %v1314_v8 = vmul.f32 1.442695, %v1297_v19  ;;  %v1318_v54 = vmul.f32 1.442695, %v1299_v58  ;;  %v1302_v62 = vsub.f32 %v3308_v32, %v1271_v3 }
 0x67f   :  { %v1316_v39 = vmul.f32 1.442695, %v1298_v61  ;;  %v1322_v1 = vmul.f32 1.442695, %v1301_v31  ;;  %v1320_v19 = vmul.f32 1.442695, %v1300_v30  ;;  %v1279_v28 = vrot.slane %v1254_v4, %v3069_v56 }
 0x680   :  { %2683 = vpow2.f32 %v1312_v18  ;;  %v1305_v24 = vsub.f32 %v3311_v22, %v1275_v37  ;;  %v1326_v55 = vmul.f32 1.442695, %v1303_v34  ;;  %v1304_v36 = vsub.f32 %v3304_v63, %v1275_v37 }
 0x681   :  { %2685 = vpow2.f32 %v1314_v8  ;;  %v1324_v33 = vmul.f32 1.442695, %v1302_v62  ;;  %v1283_v32 = vrot.slane %v1254_v4, %v3073_v59  ;;  %v1307_v53 = vsub.f32 %v3333_v14, %v1279_v28 }
 0x682   :  { %2687 = vpow2.f32 %v1318_v54  ;;  %v1330_v12 = vmul.f32 1.442695, %v1305_v24  ;;  %v1306_v22 = vsub.f32 %v3313_v11, %v1279_v28  ;;  %v1328_v63 = vmul.f32 1.442695, %v1304_v36 }
 0x683   :  { %2689 = vpow2.f32 %v1316_v39  ;;  %v1287_v18 = vrot.slane %v1254_v4, %v3077_v6  ;;  %v1309_v8 = vsub.f32 %v3346_v45, %v1283_v32  ;;  %v1334_v14 = vmul.f32 1.442695, %v1307_v53 }
 0x684   :  { %2691 = vpow2.f32 %v1322_v1  ;;  %v1308_v3 = vsub.f32 %v3331_v2, %v1283_v32  ;;  %v1332_v11 = vmul.f32 1.442695, %v1306_v22 }
 0x685   :  { %2693 = vpow2.f32 %v1320_v19  ;;  %v1311_v30 = vsub.f32 %v3362_v29, %v1287_v18  ;;  %v1338_v4 = vmul.f32 1.442695, %v1309_v8  ;;  %v1310_v45 = vsub.f32 %v3358_v13, %v1287_v18 }
 0x686   :  { %2695 = vpow2.f32 %v1326_v55  ;;  %v1336_v39 = vmul.f32 1.442695, %v1308_v3 }
 0x687   :  { %2697 = vpow2.f32 %v1324_v33  ;;  %v1342_v34 = vmul.f32 1.442695, %v1311_v30  ;;  %v1340_v29 = vmul.f32 1.442695, %v1310_v45 }
 0x688   :  { %2699 = vpow2.f32 %v1330_v12 }
 0x689   :  { %2701 = vpow2.f32 %v1328_v63 }
 0x68a   :  { %v3388_v10 = vpop.eup %2683  ;;  %2703 = vpow2.f32 %v1334_v14 }
 0x68b   :  { %v3390_v57 = vpop.eup %2685  ;;  %1361 = vperm.xlu0 %2596, %v3388_v10   ;;  %2705 = vpow2.f32 %v1332_v11 }
 0x68c   :  { %1364 = vperm.xlu1 %2595, %v3390_v57   ;;  %v3397_v58 = vpop.eup %2687  ;;  %2707 = vpow2.f32 %v1338_v4 }
 0x68d   :  { %v3399_v61 = vpop.eup %2689  ;;  %2709 = vpow2.f32 %v1336_v39 }
 0x68e   :  { %v3406_v31 = vpop.eup %2691  ;;  %2711 = vpow2.f32 %v1342_v34 }
 0x68f   :  { %1370 = vperm.xlu0 %2596, %v3397_v58   ;;  %v3408_v54 = vpop.eup %2693  ;;  %2713 = vpow2.f32 %v1340_v29 }
 0x690   :  { %1367 = vperm.xlu1 %2595, %v3399_v61   ;;  %v3414_v37 = vpop.eup %2695 }
 0x691   :  { %v3416_v2 = vpop.eup %2697 }
 0x692   :  { %v3420_v1 = vpop.eup %2699 }
 0x693   :  { %1376 = vperm.xlu0 %2596, %v3406_v31   ;;  %v3422_v62 = vpop.eup %2701 }
 0x694   :  { %1373 = vperm.xlu1 %2595, %v3408_v54   ;;  %v3426_v13 = vpop.eup %2703 }
 0x695   :  { %v3428_v19 = vpop.eup %2705 }
 0x696   :  { %v3432_v28 = vpop.eup %2707 }
 0x697   :  { %1382 = vperm.xlu0 %2596, %v3414_v37   ;;  %v3434_v24 = vpop.eup %2709 }
 0x698   :  { %1379 = vperm.xlu1 %2595, %v3416_v2   ;;  %v3438_v55 = vpop.eup %2711 }
 0x699   :  { %v2714_v36 = vpop.eup %2713 }
 0x69b   :  { %1388 = vperm.xlu0 %2596, %v3420_v1  }
 0x69c   :  { %1385 = vperm.xlu1 %2595, %v3422_v62  }
 0x69f   :  { %1394 = vperm.xlu0 %2596, %v3426_v13  }
 0x6a0   :  { %1391 = vperm.xlu1 %2595, %v3428_v19  }
 0x6a3   :  { %1400 = vperm.xlu0 %2596, %v3432_v28  }
 0x6a4   :  { %1397 = vperm.xlu1 %2595, %v3434_v24  }
 0x6a7   :  { %1406 = vperm.xlu0 %2596, %v3438_v55  }
 0x6a8   :  { %1403 = vperm.xlu1 %2595, %v2714_v36  }
 0x70a   :  { %v1362_v33 = vpop.permute.xlu0 %1361 }
 0x70b   :  { %v1365_v32 = vpop.permute.xlu1 %1364  ;;  %v1411_v23 = vrot.slane %v1362_v33, %v3031_v60 }
 0x70c   :  { %v1415_v29 = vrot.slane %v1365_v32, %v3316_v38 }
 0x70e   :  { %v1371_v53 = vpop.permute.xlu0 %1370 }
 0x70f   :  { %v1368_v12 = vpop.permute.xlu1 %1367  ;;  %v1424_v30 = vrot.slane %v1371_v53, %v3316_v38 }
 0x710   :  { %v1420_v11 = vrot.slane %v1368_v12, %v3031_v60 }
 0x712   :  { %v1377_v22 = vpop.permute.xlu0 %1376  ;;  %v1425_v53 = vsel %vm1178_vm10, %v1424_v30, %v1420_v11 }
 0x713   :  { %v1374_v63 = vpop.permute.xlu1 %1373  ;;  %v1433_v39 = vrot.slane %v1377_v22, %v3316_v38 }
 0x714   :  { %v1429_v45 = vrot.slane %v1374_v63, %v3031_v60 }
 0x716   :  { %v1383_v18 = vpop.permute.xlu0 %1382  ;;  %v1434_v0 = vsel %vm1178_vm10, %v1433_v39, %v1429_v45 }
 0x717   :  { %v1380_v8 = vpop.permute.xlu1 %1379  ;;  %v1442_v21 = vrot.slane %v1383_v18, %v3316_v38 }
 0x718   :  { %v1438_v25 = vrot.slane %v1380_v8, %v3031_v60  ;;  %v1416_v8 = vsel %vm1178_vm10, %v1415_v29, %v1411_v23 }
 0x71a   :  { %v1389_v14 = vpop.permute.xlu0 %1388  ;;  %v1443_v18 = vsel %vm1178_vm10, %v1442_v21, %v1438_v25 }
 0x71b   :  { %v1386_v3 = vpop.permute.xlu1 %1385  ;;  %v1451_v12 = vrot.slane %v1389_v14, %v3316_v38  ;;  %v1480_v14 = vsel %vm529_vm1, %v1425_v53, %v1416_v8 }
 0x71c   :  { %v1447_v15 = vrot.slane %v1386_v3, %v3031_v60  ;;  %v1481_v30 = vsel %vm531_vm2, %v1434_v0, %v1480_v14 }
 0x71d   :  { %v1482_v45 = vsel %vm533_vm3, %v1443_v18, %v1481_v30 }
 0x71e   :  { %v1395_v4 = vpop.permute.xlu0 %1394  ;;  %v1452_v11 = vsel %vm1178_vm10, %v1451_v12, %v1447_v15 }
 0x71f   :  { %v1392_v34 = vpop.permute.xlu1 %1391  ;;  %v1460_v63 = vrot.slane %v1395_v4, %v3316_v38  ;;  %v1483_v21 = vsel %vm535_vm4, %v1452_v11, %v1482_v45 }
 0x720   :  { %v1456_v17 = vrot.slane %v1392_v34, %v3031_v60 }
 0x722   :  { %v1401_v22 = vpop.permute.xlu0 %1400  ;;  %v1461_v4 = vsel %vm1178_vm10, %v1460_v63, %v1456_v17 }
 0x723   :  { %v1398_v32 = vpop.permute.xlu1 %1397  ;;  %v1469_v33 = vrot.slane %v1401_v22, %v3316_v38  ;;  %v1484_v29 = vsel %vm537_vm5, %v1461_v4, %v1483_v21  ;;  %v1719_v21 = vld [vmem:[#allocation7 + $0x28] sm:$0xff] }
 0x724   :  { %v1465_v3 = vrot.slane %v1398_v32, %v3031_v60 }
 0x726   :  { %v1407_v34 = vpop.permute.xlu0 %1406  ;;  %v1470_v39 = vsel %vm1178_vm10, %v1469_v33, %v1465_v3 }
 0x727   :  { %v1404_v22 = vpop.permute.xlu1 %1403  ;;  %v1478_v23 = vrot.slane %v1407_v34, %v3316_v38  ;;  %v1485_v0 = vsel %vm539_vm6, %v1470_v39, %v1484_v29 }
 0x728   :  { %v1474_v25 = vrot.slane %v1404_v22, %v3031_v60 }
 0x72a   :  { %v1479_v15 = vsel %vm1178_vm10, %v1478_v23, %v1474_v25  ;;  %v1718_v23 = vld [vmem:[#allocation7 + $0x18] sm:$0xff] }
 0x72b   :  { %v1486_v17 = vsel %vm541_vm7, %v1479_v15, %v1485_v0 }
 0x72c   :  { %v1488_v12 = vsel %vm1251_vm11, %v1486_v17, 0.0 }
 0x72d   :  { %1489 = vadd.xlane.f32.xlu1 %v1488_v12 }
 0x7ba   :  { %v1490_v53 = vpop.xlane.xlu1 %1489 }
 0x7bb   :  { %2715 = vrcp.f32 %v1490_v53 }
 0x7c5   :  { %v2716_v63 = vpop.eup %2715 }
 0x7c6   :  { %v1512_v38 = vrot.slane %v2716_v63, %v3065_v51  ;;  %v1496_v32 = vrot.slane %v2716_v63, %v3050_v41  ;;  %v1524_v18 = vrot.slane %v2716_v63, %v3077_v6  ;;  %v1500_v11 = vrot.slane %v2716_v63, %v3053_v42 }
 0x7c8   :  { %v1542_v33 = vmul.f32 %v3420_v1, %v1512_v38  ;;  %v1533_v8 = vmul.f32 %v3388_v10, %v1496_v32  ;;  %v1547_v3 = vmul.f32 %v2714_v36, %v1524_v18  ;;  %v1534_v14 = vmul.f32 %v3390_v57, %v1496_v32 }
 0x7c9   :  { %v1535_v30 = vmul.f32 %v3399_v61, %v1500_v11  ;;  %v1536_v4 = vmul.f32 %v3397_v58, %v1500_v11  ;;  %v1504_v1 = vrot.slane %v2716_v63, %v3056_v43  ;;  %v1508_v36 = vrot.slane %v2716_v63, %v3059_v44  ;;  %v2751_v11 = vld [vmem:[#allocation5] sm:$0xff] }
 0x7ca   :  { %1596 = vperm.xlu1 %2595, %v1542_v33   ;;  %1551 = vperm.xlu0 %2596, %v1533_v8   ;;  %v1541_v61 = vmul.f32 %v3422_v62, %v1512_v38  ;;  %v1516_v58 = vrot.slane %v2716_v63, %v3069_v56  ;;  %v1717_v62 = vld [vmem:[#allocation7 + $0x8] sm:$0xff] }
 0x7cb   :  { %v1537_v10 = vmul.f32 %v3408_v54, %v1504_v1  ;;  %v1538_v34 = vmul.f32 %v3406_v31, %v1504_v1  ;;  %v1539_v57 = vmul.f32 %v3416_v2, %v1508_v36  ;;  %v1540_v45 = vmul.f32 %v3414_v37, %v1508_v36 }
 0x7cc   :  { %v1543_v39 = vmul.f32 %v3428_v19, %v1516_v58  ;;  %v1544_v54 = vmul.f32 %v3426_v13, %v1516_v58  ;;  %v1520_v31 = vrot.slane %v2716_v63, %v3073_v59  ;;  %v1548_v37 = vmul.f32 %v3438_v55, %v1524_v18  ;;  %v1720_v19 = vld [vmem:[#allocation7 + $0x38] sm:$0xff] }
 0x7cd   :  { %v2574_v25 = vpack.c.bf16 %v1718_v23, %v1717_v62  ;;  %v2577_v29 = vpack.c.bf16 %v1720_v19, %v1719_v21  ;;  %v3689_v13 = vmov 0.0|0.0  }
 0x7ce   :  { %1621 = vperm.xlu1 %2595, %v1547_v3   ;;  %1556 = vperm.xlu0 %2596, %v1534_v14   ;;  %v1545_v22 = vmul.f32 %v3434_v24, %v1520_v31  ;;  %v1546_v2 = vmul.f32 %v3432_v28, %v1520_v31 }
 0x7cf   :  { %2575 = vmatpush3.bf16.msra.mxu0 %v2574_v25 }
 0x7d0   :  { %2576 = vmatprep.subr.bf16.mxu0 %v3689_v13 }
 0x7d2   :  { %1561 = vperm.xlu0 %2596, %v1535_v30  }
 0x7d3   :  { %2578 = vmatpush3.bf16.msra.mxu0 %v2577_v29 }
 0x7d6   :  { %1566 = vperm.xlu0 %2596, %v1536_v4  }
 0x7da   :  { %1571 = vperm.xlu0 %2596, %v1537_v10  }
 0x7de   :  { %1576 = vperm.xlu0 %2596, %v1538_v34  }
 0x7e2   :  { %1581 = vperm.xlu0 %2596, %v1539_v57  }
 0x7e6   :  { %1586 = vperm.xlu0 %2596, %v1540_v45  }
 0x7ea   :  { %1591 = vperm.xlu0 %2596, %v1541_v61  }
 0x7ee   :  { %1601 = vperm.xlu0 %2596, %v1543_v39  }
 0x7f2   :  { %1606 = vperm.xlu0 %2596, %v1544_v54  }
 0x7f6   :  { %1611 = vperm.xlu0 %2596, %v1545_v22  }
 0x7fa   :  { %1616 = vperm.xlu0 %2596, %v1546_v2  }
 0x7fe   :  { %1626 = vperm.xlu0 %2596, %v1548_v37  }
 0x849   :  { %v1552_v15 = vpop.permute.xlu0 %1551  ;;  %v1597_v32 = vpop.permute.xlu1 %1596 }
 0x84a   :  { %v1629_v30 = vmul.f32 %v2751_v11, %v1552_v15 }
 0x84d   :  { %v1557_v0 = vpop.permute.xlu0 %1556 }
 0x84e   :  { %v1630_v33 = vmul.f32 %v1557_v0, %v3153_v9 }
 0x850   :  { %v1646_v9 = vsel %vm90_vm0, %v1630_v33, 0.0 }
 0x851   :  { %v1562_v24 = vpop.permute.xlu0 %1561 }
 0x852   :  { %v1631_v8 = vmul.f32 %v1562_v24, %v3156_v20 }
 0x854   :  { %v1654_v20 = vsel %vm90_vm0, %v1631_v8, 0.0 }
 0x855   :  { %v1567_v17 = vpop.permute.xlu0 %1566 }
 0x856   :  { %v1632_v55 = vmul.f32 %v1567_v17, %v3166_v26 }
 0x858   :  { %v1655_v4 = vsel %vm90_vm0, %v1632_v55, 0.0 }
 0x859   :  { %v1572_v12 = vpop.permute.xlu0 %1571 }
 0x85a   :  { %v1633_v3 = vmul.f32 %v1572_v12, %v3168_v16  ;;  %v1656_v16 = vadd.f32 %v1655_v4, %v1654_v20 }
 0x85c   :  { %v1663_v34 = vsel %vm90_vm0, %v1633_v3, 0.0  ;;  %v1657_v31 = vrot.slane %v1656_v16, 4 }
 0x85d   :  { %v1577_v28 = vpop.permute.xlu0 %1576 }
 0x85e   :  { %v1634_v38 = vmul.f32 %v1577_v28, %v3176_v27  ;;  %v1638_v27 = vmul.f32 %v1597_v32, %v3197_v48  ;;  %v1658_v29 = vadd.f32 %v1657_v31, %v1656_v16 }
 0x860   :  { %v1664_v10 = vsel %vm90_vm0, %v1634_v38, 0.0  ;;  %v1682_v48 = vsel %vm90_vm0, %v1638_v27, 0.0 }
 0x861   :  { %v1582_v53 = vpop.permute.xlu0 %1581  ;;  %v1665_v45 = vadd.f32 %v1664_v10, %v1663_v34 }
 0x862   :  { %v1635_v1 = vmul.f32 %v1582_v53, %v3180_v46  ;;  %v1645_v46 = vsel %vm90_vm0, %v1629_v30, 0.0  ;;  %v1622_v53 = vpop.permute.xlu1 %1621 }
 0x863   :  { %v1647_v61 = vadd.f32 %v1646_v9, %v1645_v46  ;;  %v1666_v2 = vrot.slane %v1665_v45, 4 }
 0x865   :  { %v1587_v63 = vpop.permute.xlu0 %1586  ;;  %v1648_v62 = vrot.slane %v1647_v61, 4  ;;  %v1667_v0 = vadd.f32 %v1666_v2, %v1665_v45 }
 0x866   :  { %v1636_v18 = vmul.f32 %v1587_v63, %v3189_v47  ;;  %v1659_v63 = vrot.slane %v1658_v29, 2 }
 0x867   :  { %v1649_v24 = vadd.f32 %v1648_v62, %v1647_v61  ;;  %v1668_v38 = vrot.slane %v1667_v0, 2 }
 0x868   :  { %v1673_v47 = vsel %vm90_vm0, %v1636_v18, 0.0  ;;  %v1643_v18 = vmul.f32 %v1622_v53, %v3215_v50  ;;  %v1660_v30 = vadd.f32 %v1659_v63, %v1658_v29  ;;  %v2433_v63 = vld [vmem:[%s3666_s3 + $0x2] ss:$0 sm:$0xff] }
 0x869   :  { %v1592_v14 = vpop.permute.xlu0 %1591  ;;  %v1650_v33 = vrot.slane %v1649_v24, 2  ;;  %1928 = vrot.lane.b32.xlu1 %v2433_v63, %s2863_s10 }
 0x86a   :  { %v1637_v26 = vmul.f32 %v1592_v14, %v3191_v35  ;;  %v1672_v35 = vsel %vm90_vm0, %v1635_v1, 0.0  ;;  %v1661_v16 = vrot.slane %v1660_v30, 1 }
 0x86b   :  { %v1674_v58 = vadd.f32 %v1673_v47, %v1672_v35  ;;  %v1651_v10 = vadd.f32 %v1650_v33, %v1649_v24 }
 0x86c   :  { %v1681_v36 = vsel %vm90_vm0, %v1637_v26, 0.0  ;;  %v1669_v26 = vadd.f32 %v1668_v38, %v1667_v0  ;;  %v3690_v38 = vld [vmem:[#allocation20_spill] sm:$0xff] }
 0x86d   :  { %v1602_v57 = vpop.permute.xlu0 %1601  ;;  %v1683_v39 = vadd.f32 %v1682_v48, %v1681_v36  ;;  %v1675_v23 = vrot.slane %v1674_v58, 4  ;;  %v1652_v45 = vrot.slane %v1651_v10, 1 }
 0x86e   :  { %v1639_v54 = vmul.f32 %v1602_v57, %v3199_v7  ;;  %v1670_v46 = vrot.slane %v1669_v26, 1 }
 0x86f   :  { %v1684_v21 = vrot.slane %v1683_v39, 4  ;;  %v1676_v17 = vadd.f32 %v1675_v23, %v1674_v58  ;;  %v1653_v2 = vadd.f32 %v1652_v45, %v1651_v10  ;;  %v3691_v45 = vld [vmem:[#allocation13_spill] sm:$0xff] }
 0x870   :  { %v1690_v25 = vsel %vm90_vm0, %v1639_v54, 0.0 }
 0x871   :  { %v1607_v22 = vpop.permute.xlu0 %1606  ;;  %v1685_v7 = vadd.f32 %v1684_v21, %v1683_v39  ;;  %v1677_v8 = vrot.slane %v1676_v17, 2  ;;  %v1662_v39 = vadd.f32 %v1661_v16, %v1660_v30 }
 0x872   :  { %v1640_v37 = vmul.f32 %v1607_v22, %v3205_v40  ;;  %v1671_v22 = vadd.f32 %v1670_v46, %v1669_v26 }
 0x873   :  { %v1686_v3 = vrot.slane %v1685_v7, 2  ;;  %v1678_v9 = vadd.f32 %v1677_v8, %v1676_v17 }
 0x874   :  { %v1691_v19 = vsel %vm90_vm0, %v1640_v37, 0.0 }
 0x875   :  { %v1692_v13 = vadd.f32 %v1691_v19, %v1690_v25  ;;  %v1612_v15 = vpop.permute.xlu0 %1611  ;;  %v1687_v47 = vadd.f32 %v1686_v3, %v1685_v7  ;;  %v1679_v35 = vrot.slane %v1678_v9, 1  ;;  %v1729_v25 = vsel %vm529_vm1, %v1662_v39, %v1653_v2 }
 0x876   :  { %v1641_v28 = vmul.f32 %v1612_v15, %v3207_v49 }
 0x877   :  { %v1693_v12 = vrot.slane %v1692_v13, 4  ;;  %v1688_v58 = vrot.slane %v1687_v47, 1  ;;  %v1680_v37 = vadd.f32 %v1679_v35, %v1678_v9 }
 0x878   :  { %v1699_v14 = vsel %vm90_vm0, %v1641_v28, 0.0 }
 0x879   :  { %v1694_v40 = vadd.f32 %v1693_v12, %v1692_v13  ;;  %v1617_v55 = vpop.permute.xlu0 %1616  ;;  %v1689_v21 = vadd.f32 %v1688_v58, %v1687_v47  ;;  %v1730_v13 = vsel %vm531_vm2, %v1671_v22, %v1729_v25 }
 0x87a   :  { %v1642_v32 = vmul.f32 %v1617_v55, %v3213_v5  ;;  %v1708_v5 = vsel %vm90_vm0, %v1643_v18, 0.0  ;;  %v1731_v0 = vsel %vm533_vm3, %v1680_v37, %v1730_v13  ;;  %v3694_v37 = vld [vmem:[#allocation17_spill] sm:$0xff] }
 0x87b   :  { %v1695_v4 = vrot.slane %v1694_v40, 2  ;;  %v1732_v17 = vsel %vm535_vm4, %v1689_v21, %v1731_v0 }
 0x87c   :  { %v1700_v11 = vsel %vm90_vm0, %v1642_v32, 0.0 }
 0x87d   :  { %v1701_v1 = vadd.f32 %v1700_v11, %v1699_v14  ;;  %v1627_v49 = vpop.permute.xlu0 %1626  ;;  %v1696_v34 = vadd.f32 %v1695_v4, %v1694_v40 }
 0x87e   :  { %v1644_v27 = vmul.f32 %v1627_v49, %v3221_v52 }
 0x87f   :  { %v1702_v20 = vrot.slane %v1701_v1, 4  ;;  %v1697_v52 = vrot.slane %v1696_v34, 1 }
 0x880   :  { %v1709_v50 = vsel %vm90_vm0, %v1644_v27, 0.0 }
 0x881   :  { %v1703_v36 = vadd.f32 %v1702_v20, %v1701_v1  ;;  %v1710_v57 = vadd.f32 %v1709_v50, %v1708_v5  ;;  %v1698_v19 = vadd.f32 %v1697_v52, %v1696_v34 }
 0x883   :  { %v1704_v48 = vrot.slane %v1703_v36, 2  ;;  %v1711_v61 = vrot.slane %v1710_v57, 4  ;;  %v1733_v7 = vsel %vm537_vm5, %v1698_v19, %v1732_v17  ;;  %v3695_v19 = vld [vmem:[#allocation16_spill] sm:$0xff] }
 0x885   :  { %v1705_v54 = vadd.f32 %v1704_v48, %v1703_v36  ;;  %v1712_v31 = vadd.f32 %v1711_v61, %v1710_v57  ;;  %v2434_v36 = vld [vmem:[%s3667_s4 + $0x2] ss:$0 sm:$0xff]  ;;  %v3692_v61 = vld [vmem:[#allocation12_spill] sm:$0xff]  ;;  %s2868_s4 = smov 96  }
 0x887   :  { %v1706_v62 = vrot.slane %v1705_v54, 1  ;;  %v1713_v23 = vrot.slane %v1712_v31, 2 }
 0x889   :  { %v1714_v29 = vadd.f32 %v1713_v23, %v1712_v31  ;;  %v1707_v15 = vadd.f32 %v1706_v62, %v1705_v54  ;;  %v3693_v31 = vld [vmem:[#allocation15_spill] sm:$0xff] }
 0x88b   :  { %v1715_v24 = vrot.slane %v1714_v29, 1  ;;  %v1734_v28 = vsel %vm539_vm6, %v1707_v15, %v1733_v7  ;;  %v3696_v15 = vld [vmem:[#allocation14_spill] sm:$0xff] }
 0x88c   :  { %v3697_v7 = vld [vmem:[#allocation18_spill] sm:$0xff] }
 0x88d   :  { %v1716_v12 = vadd.f32 %v1715_v24, %v1714_v29 }
 0x88f   :  { %v3535_v53 = vsel %vm541_vm7, %v1716_v12, %v1734_v28 }
 0x890   :  { %2549 = vmatmul.mubr.msk.f32.vlgmr.msra.gmra.mrb[10].mxu0 %vm90_vm0, %v3535_v53 }
 0x8db   :  { %v1929_v57 = vpop.permute.xlu1 %1928 }
 0x963   :  { %v1804_v40 = vpop.f32.mrb[10].mxu0 }
 0x964   :  { %v1809_v55 = vcombine.high %v1804_v40, %v1804_v40  ;;  %v1816_v32 = vrot.slane %v1804_v40, %v3690_v38  ;;  %v2550_v33 = vpop.f32.mrb[11].mxu0  ;;  %v3698_v40 = vld [vmem:[#allocation19_spill] sm:$0xff] }
 0x966   :  { %v1823_v8 = vrot.slane %v1809_v55, %v3690_v38  ;;  %v1824_v18 = vcombine.high %v1816_v32, %v1816_v32  ;;  %v1832_v3 = vrot.slane %v1816_v32, %v3690_v38 }
 0x968   :  { %v1846_v14 = vrot.slane %v1824_v18, %v3690_v38  ;;  %v1825_v11 = vcombine.high %v1823_v8, %v1823_v8  ;;  %v1854_v30 = vcombine.high %v1832_v3, %v1832_v3  ;;  %v1861_v4 = vrot.slane %v1832_v3, %v3050_v41 }
 0x969   :  { %v1839_v1 = vrot.slane %v1823_v8, %v3690_v38 }
 0x96a   :  { %v1865_v49 = vrot.slane %v1846_v14, %v3050_v41  ;;  %1890 = vrot.lane.b32.xlu1 %v1861_v4, %s2863_s10  ;;  %v1869_v26 = vrot.slane %v1854_v30, %v3050_v41  ;;  %v1853_v27 = vrot.slane %v1825_v11, %v3690_v38  ;;  %v1856_v10 = vcombine.high %v1846_v14, %v1846_v14 }
 0x96b   :  { %v1877_v9 = vrot.slane %v1839_v1, %v3050_v41  ;;  %v1855_v47 = vcombine.high %v1839_v1, %v1839_v1 }
 0x96c   :  { %1892 = vrot.lane.b32.xlu0 %v1865_v49, %s2863_s10  ;;  %v1881_v20 = vrot.slane %v1853_v27, %v3050_v41  ;;  %v1857_v5 = vcombine.high %v1853_v27, %v1853_v27  ;;  %v1873_v50 = vrot.slane %v1856_v10, %v3050_v41 }
 0x96d   :  { %v1885_v34 = vrot.slane %v1855_v47, %v3050_v41 }
 0x96e   :  { %1894 = vrot.lane.b32.xlu1 %v1869_v26, %s2863_s10  ;;  %v1889_v16 = vrot.slane %v1857_v5, %v3050_v41 }
 0x970   :  { %1898 = vrot.lane.b32.xlu0 %v1877_v9, %s2863_s10 }
 0x972   :  { %1900 = vrot.lane.b32.xlu1 %v1881_v20, %s2863_s10 }
 0x974   :  { %1896 = vrot.lane.b32.xlu0 %v1873_v50, %s2863_s10 }
 0x976   :  { %1904 = vrot.lane.b32.xlu1 %v1889_v16, %s2863_s10 }
 0x978   :  { %1902 = vrot.lane.b32.xlu0 %v1885_v34, %s2863_s10 }
 0x97c   :  { %1953 = vrot.lane.b32.xlu0 %v2434_v36, %s2863_s10 }
 0x9dc   :  { %v1891_v46 = vpop.permute.xlu1 %1890 }
 0x9dd   :  { %v1914_v35 = vadd.f32 %v1891_v46, %v3691_v45 }
 0x9de   :  { %v1893_v48 = vpop.permute.xlu0 %1892 }
 0x9df   :  { %v1915_v58 = vadd.f32 %v3692_v61, %v1893_v48  ;;  %v1931_v39 = vadd.f32 %v1929_v57, %v1914_v35 }
 0x9e0   :  { %v1895_v54 = vpop.permute.xlu1 %1894 }
 0x9e1   :  { %v1932_v52 = vadd.f32 %v1929_v57, %v1915_v58  ;;  %v1916_v22 = vadd.f32 %v1895_v54, %v3693_v31 }
 0x9e2   :  { %v1899_v2 = vpop.permute.xlu0 %1898 }
 0x9e3   :  { %2717 = vtanh.f32 %v1932_v52  ;;  %v1918_v62 = vadd.f32 %v1899_v2, %v3694_v37  ;;  %v1933_v23 = vadd.f32 %v1929_v57, %v1916_v22 }
 0x9e4   :  { %2719 = vtanh.f32 %v1931_v39  ;;  %v1901_v21 = vpop.permute.xlu1 %1900 }
 0x9e5   :  { %2721 = vtanh.f32 %v1933_v23  ;;  %v1935_v25 = vadd.f32 %v1929_v57, %v1918_v62  ;;  %v1919_v29 = vadd.f32 %v3695_v19, %v1901_v21 }
 0x9e6   :  { %v1897_v13 = vpop.permute.xlu0 %1896 }
 0x9e7   :  { %v1917_v0 = vadd.f32 %v3696_v15, %v1897_v13  ;;  %v1936_v24 = vadd.f32 %v1929_v57, %v1919_v29  ;;  %2723 = vtanh.f32 %v1935_v25 }
 0x9e8   :  { %v1905_v12 = vpop.permute.xlu1 %1904 }
 0x9e9   :  { %v1934_v17 = vadd.f32 %v1929_v57, %v1917_v0  ;;  %v1921_v28 = vadd.f32 %v3697_v7, %v1905_v12 }
 0x9ea   :  { %v1903_v63 = vpop.permute.xlu0 %1902 }
 0x9eb   :  { %2725 = vtanh.f32 %v1934_v17  ;;  %v1920_v55 = vadd.f32 %v1903_v63, %v3698_v40  ;;  %v1938_v32 = vadd.f32 %v1929_v57, %v1921_v28 }
 0x9ec   :  { %2727 = vtanh.f32 %v1936_v24 }
 0x9ed   :  { %v2718_v38 = vpop.eup %2717  ;;  %v1937_v33 = vadd.f32 %v1929_v57, %v1920_v55 }
 0x9ee   :  { %v2720_v8 = vpop.eup %2719  ;;  %v1954_v18 = vpop.permute.xlu0 %1953 }
 0x9ef   :  { %2729 = vtanh.f32 %v1937_v33  ;;  %v1957_v3 = vmul.f32 %v2718_v38, %v1954_v18  ;;  %v1956_v14 = vmul.f32 %v2720_v8, %v1954_v18  ;;  %v2722_v11 = vpop.eup %2721 }
 0x9f0   :  { %2731 = vtanh.f32 %v1938_v32  ;;  %v1958_v30 = vmul.f32 %v2722_v11, %v1954_v18 }
 0x9f1   :  { %1974 = vrot.lane.b32.xlu0 %v1957_v3, %s2868_s4  ;;  %1972 = vrot.lane.b32.xlu1 %v1956_v14, %s2868_s4  ;;  %v2724_v4 = vpop.eup %2723 }
 0x9f2   :  { %v1960_v27 = vmul.f32 %v2724_v4, %v1954_v18 }
 0x9f5   :  { %v2726_v1 = vpop.eup %2725  ;;  %1976 = vrot.lane.b32.xlu1 %v1958_v30, %s2868_s4 }
 0x9f6   :  { %v1959_v49 = vmul.f32 %v2726_v1, %v1954_v18  ;;  %v2728_v26 = vpop.eup %2727 }
 0x9f7   :  { %v1961_v9 = vmul.f32 %v2728_v26, %v1954_v18 }
 0x9f8   :  { %1978 = vrot.lane.b32.xlu0 %v1959_v49, %s2868_s4 }
 0x9f9   :  { %v2730_v10 = vpop.eup %2729  ;;  %1980 = vrot.lane.b32.xlu1 %v1960_v27, %s2868_s4 }
 0x9fa   :  { %v1962_v20 = vmul.f32 %v2730_v10, %v1954_v18  ;;  %v2732_v5 = vpop.eup %2731 }
 0x9fb   :  { %v1963_v47 = vmul.f32 %v2732_v5, %v1954_v18 }
 0x9fc   :  { %1982 = vrot.lane.b32.xlu0 %v1961_v9, %s2868_s4 }
 0x9fd   :  { %1984 = vrot.lane.b32.xlu1 %v1962_v20, %s2868_s4 }
 0xa00   :  { %1986 = vrot.lane.b32.xlu0 %v1963_v47, %s2868_s4 }
 0xa63   :  { %v1975_v50 = vpop.permute.xlu0 %1974  ;;  %v1973_v16 = vpop.permute.xlu1 %1972 }
 0xa64   :  { %v1999_v34 = vsel %vm90_vm0, %v1975_v50, 0.0  ;;  %v1996_v36 = vsel %vm90_vm0, %v1973_v16, 0.0 }
 0xa65   :  { %2000 = vadd.xlane.f32.xlu0 %v1999_v34  ;;  %1997 = vadd.xlane.f32.xlu1 %v1996_v36 }
 0xa67   :  { %v1977_v57 = vpop.permute.xlu1 %1976 }
 0xa68   :  { %v2002_v46 = vsel %vm90_vm0, %v1977_v57, 0.0 }
 0xa69   :  { %2003 = vadd.xlane.f32.xlu0 %v2002_v46 }
 0xa6a   :  { %v1979_v45 = vpop.permute.xlu0 %1978 }
 0xa6b   :  { %v2005_v35 = vsel %vm90_vm0, %v1979_v45, 0.0  ;;  %v1981_v48 = vpop.permute.xlu1 %1980 }
 0xa6c   :  { %v2008_v61 = vsel %vm90_vm0, %v1981_v48, 0.0 }
 0xa6d   :  { %2006 = vadd.xlane.f32.xlu0 %v2005_v35  ;;  %2009 = vadd.xlane.f32.xlu1 %v2008_v61 }
 0xa6e   :  { %v1983_v58 = vpop.permute.xlu0 %1982 }
 0xa6f   :  { %v2011_v39 = vsel %vm90_vm0, %v1983_v58, 0.0  ;;  %v1985_v52 = vpop.permute.xlu1 %1984 }
 0xa70   :  { %v2014_v54 = vsel %vm90_vm0, %v1985_v52, 0.0 }
 0xa71   :  { %2012 = vadd.xlane.f32.xlu0 %v2011_v39  ;;  %2015 = vadd.xlane.f32.xlu1 %v2014_v54 }
 0xa72   :  { %v1987_v31 = vpop.permute.xlu0 %1986 }
 0xa73   :  { %v2017_v22 = vsel %vm90_vm0, %v1987_v31, 0.0 }
 0xa75   :  { %2018 = vadd.xlane.f32.xlu0 %v2017_v22 }
 0xaf2   :  { %v2001_v2 = vpop.xlane.xlu0 %2000  ;;  %v1998_v37 = vpop.xlane.xlu1 %1997 }
 0xaf3   :  { %v2035_v23 = vrot.slane %v2001_v2, %v3031_v60  ;;  %v2031_v21 = vrot.slane %v1998_v37, %v3031_v60 }
 0xaf5   :  { %v2060_v13 = vsel %vm529_vm1, %v2035_v23, %v2031_v21 }
 0xaf6   :  { %v2004_v62 = vpop.xlane.xlu0 %2003 }
 0xaf7   :  { %v2039_v25 = vrot.slane %v2004_v62, %v3031_v60 }
 0xaf9   :  { %v2061_v0 = vsel %vm531_vm2, %v2039_v25, %v2060_v13 }
 0xafa   :  { %v2007_v19 = vpop.xlane.xlu0 %2006  ;;  %v2010_v29 = vpop.xlane.xlu1 %2009 }
 0xafb   :  { %v2043_v15 = vrot.slane %v2007_v19, %v3031_v60  ;;  %v2047_v24 = vrot.slane %v2010_v29, %v3031_v60 }
 0xafd   :  { %v2062_v17 = vsel %vm533_vm3, %v2043_v15, %v2061_v0 }
 0xafe   :  { %v2013_v12 = vpop.xlane.xlu0 %2012  ;;  %v2016_v7 = vpop.xlane.xlu1 %2015  ;;  %v2063_v63 = vsel %vm535_vm4, %v2047_v24, %v2062_v17 }
 0xaff   :  { %v2051_v28 = vrot.slane %v2013_v12, %v3031_v60  ;;  %v2055_v40 = vrot.slane %v2016_v7, %v3031_v60 }
 0xb01   :  { %v2064_v55 = vsel %vm537_vm5, %v2051_v28, %v2063_v63 }
 0xb02   :  { %v2019_v38 = vpop.xlane.xlu0 %2018  ;;  %v2065_v33 = vsel %vm539_vm6, %v2055_v40, %v2064_v55 }
 0xb03   :  { %v2059_v32 = vrot.slane %v2019_v38, %v3031_v60 }
 0xb05   :  { %v2066_v8 = vsel %vm541_vm7, %v2059_v32, %v2065_v33 }
 0xb06   :  { %v2068_v18 = vsel %vm544_vm8, %v2066_v8, -inf }
 0xb07   :  { %2069 = vmax.xlane.f32.xlu1 %v2068_v18 }
 0xb94   :  { %v2070_v3 = vpop.xlane.xlu1 %2069 }
 0xb95   :  { %v2075_v14 = vrot.slane %v2070_v3, %v3050_v41  ;;  %v2079_v11 = vrot.slane %v2070_v3, %v3053_v42  ;;  %v2083_v30 = vrot.slane %v2070_v3, %v3056_v43  ;;  %v2091_v4 = vrot.slane %v2070_v3, %v3065_v51 }
 0xb96   :  { %v2099_v1 = vrot.slane %v2070_v3, %v3073_v59  ;;  %v2087_v27 = vrot.slane %v2070_v3, %v3059_v44  ;;  %v2095_v16 = vrot.slane %v2070_v3, %v3069_v56  ;;  %v2103_v46 = vrot.slane %v2070_v3, %v3077_v6 }
 0xb97   :  { %v2112_v49 = vsub.f32 %v1998_v37, %v2075_v14  ;;  %v2113_v26 = vsub.f32 %v2001_v2, %v2079_v11  ;;  %v2114_v10 = vsub.f32 %v2004_v62, %v2083_v30  ;;  %v2116_v9 = vsub.f32 %v2010_v29, %v2091_v4 }
 0xb98   :  { %v2118_v47 = vsub.f32 %v2016_v7, %v2099_v1  ;;  %v2115_v34 = vsub.f32 %v2007_v19, %v2087_v27  ;;  %v2117_v45 = vsub.f32 %v2013_v12, %v2095_v16  ;;  %v2119_v48 = vsub.f32 %v2019_v38, %v2103_v46  ;;  %v2753_v46 = vld [vmem:[#allocation2] sm:$0xff] }
 0xb99   :  { %v2120_v20 = vmul.f32 1.442695, %v2112_v49  ;;  %v2122_v5 = vmul.f32 1.442695, %v2113_v26  ;;  %v2128_v50 = vmul.f32 1.442695, %v2116_v9 }
 0xb9a   :  { %v2124_v36 = vmul.f32 1.442695, %v2114_v10  ;;  %v2132_v57 = vmul.f32 1.442695, %v2118_v47  ;;  %v2126_v35 = vmul.f32 1.442695, %v2115_v34 }
 0xb9b   :  { %2733 = vpow2.f32 %v2120_v20  ;;  %v2130_v61 = vmul.f32 1.442695, %v2117_v45  ;;  %v2134_v52 = vmul.f32 1.442695, %v2119_v48  ;;  %v2754_v48 = vld [vmem:[#allocation2 + $0x10] sm:$0xff] }
 0xb9c   :  { %2735 = vpow2.f32 %v2122_v5 }
 0xb9d   :  { %2737 = vpow2.f32 %v2128_v50 }
 0xb9e   :  { %2739 = vpow2.f32 %v2124_v36  ;;  %v2752_v36 = vld [vmem:[#allocation2 + $0x8] sm:$0xff] }
 0xb9f   :  { %2741 = vpow2.f32 %v2132_v57 }
 0xba0   :  { %2743 = vpow2.f32 %v2126_v35 }
 0xba1   :  { %2745 = vpow2.f32 %v2130_v61 }
 0xba2   :  { %2747 = vpow2.f32 %v2134_v52  ;;  %v2755_v52 = vld [vmem:[#allocation2 + $0x38] sm:$0xff] }
 0xba5   :  { %v2734_v58 = vpop.eup %2733 }
 0xba6   :  { %v2736_v39 = vpop.eup %2735  ;;  %2145 = vperm.xlu0 %2596, %v2734_v58  }
 0xba7   :  { %2148 = vperm.xlu1 %2595, %v2736_v39   ;;  %v2738_v54 = vpop.eup %2737 }
 0xba8   :  { %v2740_v31 = vpop.eup %2739 }
 0xba9   :  { %v2742_v22 = vpop.eup %2741 }
 0xbaa   :  { %2157 = vperm.xlu0 %2596, %v2738_v54   ;;  %v2744_v2 = vpop.eup %2743 }
 0xbab   :  { %2151 = vperm.xlu1 %2595, %v2740_v31   ;;  %v2746_v37 = vpop.eup %2745 }
 0xbac   :  { %v2748_v62 = vpop.eup %2747 }
 0xbae   :  { %2163 = vperm.xlu0 %2596, %v2742_v22  }
 0xbaf   :  { %2154 = vperm.xlu1 %2595, %v2744_v2  }
 0xbb3   :  { %2160 = vperm.xlu1 %2595, %v2746_v37  }
 0xbb7   :  { %2166 = vperm.xlu1 %2595, %v2748_v62  }
 0xc25   :  { %v2146_v21 = vpop.permute.xlu0 %2145 }
 0xc26   :  { %v2149_v23 = vpop.permute.xlu1 %2148  ;;  %v2171_v29 = vrot.slane %v2146_v21, %v3031_v60 }
 0xc27   :  { %v2175_v19 = vrot.slane %v2149_v23, %v3031_v60 }
 0xc29   :  { %v2158_v15 = vpop.permute.xlu0 %2157  ;;  %v2200_v24 = vsel %vm529_vm1, %v2175_v19, %v2171_v29 }
 0xc2a   :  { %v2152_v25 = vpop.permute.xlu1 %2151  ;;  %v2187_v28 = vrot.slane %v2158_v15, %v3031_v60  ;;  %v2757_v15 = vld [vmem:[#allocation2 + $0x20] sm:$0xff] }
 0xc2b   :  { %v2179_v13 = vrot.slane %v2152_v25, %v3031_v60 }
 0xc2d   :  { %v2201_v12 = vsel %vm531_vm2, %v2179_v13, %v2200_v24  ;;  %v2164_v40 = vpop.permute.xlu0 %2163 }
 0xc2e   :  { %v2155_v0 = vpop.permute.xlu1 %2154  ;;  %v2195_v33 = vrot.slane %v2164_v40, %v3031_v60 }
 0xc2f   :  { %v2183_v17 = vrot.slane %v2155_v0, %v3031_v60 }
 0xc31   :  { %v2202_v7 = vsel %vm533_vm3, %v2183_v17, %v2201_v12 }
 0xc32   :  { %v2161_v63 = vpop.permute.xlu1 %2160  ;;  %v2203_v38 = vsel %vm535_vm4, %v2187_v28, %v2202_v7 }
 0xc33   :  { %v2191_v55 = vrot.slane %v2161_v63, %v3031_v60 }
 0xc35   :  { %v2204_v32 = vsel %vm537_vm5, %v2191_v55, %v2203_v38 }
 0xc36   :  { %v2167_v8 = vpop.permute.xlu1 %2166  ;;  %v2205_v3 = vsel %vm539_vm6, %v2195_v33, %v2204_v32  ;;  %v2758_v32 = vld [vmem:[#allocation2 + $0x28] sm:$0xff] }
 0xc37   :  { %v2199_v18 = vrot.slane %v2167_v8, %v3031_v60 }
 0xc39   :  { %v2206_v14 = vsel %vm541_vm7, %v2199_v18, %v2205_v3 }
 0xc3a   :  { %v2208_v11 = vsel %vm544_vm8, %v2206_v14, 0.0 }
 0xc3b   :  { %2209 = vadd.xlane.f32.xlu0 %v2208_v11 }
 0xcc8   :  { %v2210_v30 = vpop.xlane.xlu0 %2209 }
 0xcc9   :  { %2749 = vrcp.f32 %v2210_v30 }
 0xcd3   :  { %v2750_v4 = vpop.eup %2749 }
 0xcd4   :  { %v2244_v1 = vrot.slane %v2750_v4, %v3077_v6  ;;  %v2216_v49 = vrot.slane %v2750_v4, %v3050_v41  ;;  %v2220_v10 = vrot.slane %v2750_v4, %v3053_v42  ;;  %v2224_v9 = vrot.slane %v2750_v4, %v3056_v43 }
 0xcd5   :  { %v2228_v5 = vrot.slane %v2750_v4, %v3059_v44  ;;  %v2232_v50 = vrot.slane %v2750_v4, %v3065_v51  ;;  %v2236_v41 = vrot.slane %v2750_v4, %v3069_v56  ;;  %v2240_v42 = vrot.slane %v2750_v4, %v3073_v59 }
 0xcd6   :  { %v2260_v26 = vmul.f32 %v2748_v62, %v2244_v1  ;;  %v2253_v27 = vmul.f32 %v2734_v58, %v2216_v49  ;;  %v2254_v60 = vmul.f32 %v2736_v39, %v2220_v10  ;;  %v2255_v20 = vmul.f32 %v2740_v31, %v2224_v9 }
 0xcd7   :  { %v2256_v47 = vmul.f32 %v2744_v2, %v2228_v5  ;;  %v2257_v6 = vmul.f32 %v2738_v54, %v2232_v50  ;;  %v2258_v16 = vmul.f32 %v2746_v37, %v2236_v41  ;;  %v2259_v34 = vmul.f32 %v2742_v22, %v2240_v42  ;;  %v2756_v2 = vld [vmem:[#allocation2 + $0x18] sm:$0xff] }
 0xcd8   :  { %2298 = vperm.xlu0 %2596, %v2260_v26   ;;  %2263 = vperm.xlu1 %2595, %v2253_v27   ;;  %v2759_v27 = vld [vmem:[#allocation2 + $0x30] sm:$0xff] }
 0xcdc   :  { %2268 = vperm.xlu1 %2595, %v2254_v60  }
 0xce0   :  { %2273 = vperm.xlu1 %2595, %v2255_v20  }
 0xce4   :  { %2278 = vperm.xlu1 %2595, %v2256_v47  }
 0xce8   :  { %2283 = vperm.xlu1 %2595, %v2257_v6  }
 0xcec   :  { %2288 = vperm.xlu1 %2595, %v2258_v16  }
 0xcf0   :  { %2293 = vperm.xlu1 %2595, %v2259_v34  }
 0xcf4   :  { %2382 = vrot.lane.b32.xlu1 %v3535_v53, %s2863_s10 }
 0xd57   :  { %v2264_v43 = vpop.permute.xlu1 %2263  ;;  %v2299_v56 = vpop.permute.xlu0 %2298 }
 0xd58   :  { %v2301_v51 = vmul.f32 %v2753_v46, %v2264_v43  ;;  %v2308_v54 = vmul.f32 %v2755_v52, %v2299_v56 }
 0xd5a   :  { %v2309_v59 = vsel %vm90_vm0, %v2301_v51, 0.0  ;;  %v2358_v21 = vsel %vm90_vm0, %v2308_v54, 0.0 }
 0xd5b   :  { %v2269_v44 = vpop.permute.xlu1 %2268  ;;  %v2310_v22 = vrot.slane %v2309_v59, 4  ;;  %v2359_v17 = vrot.slane %v2358_v21, 4 }
 0xd5c   :  { %v2302_v57 = vmul.f32 %v2752_v36, %v2269_v44 }
 0xd5d   :  { %v2311_v13 = vadd.f32 %v2310_v22, %v2309_v59  ;;  %v2360_v18 = vadd.f32 %v2359_v17, %v2358_v21 }
 0xd5e   :  { %v2316_v45 = vsel %vm90_vm0, %v2302_v57, 0.0 }
 0xd5f   :  { %v2274_v35 = vpop.permute.xlu1 %2273  ;;  %v2317_v58 = vrot.slane %v2316_v45, 4  ;;  %v2312_v55 = vrot.slane %v2311_v13, 2  ;;  %v2361_v20 = vrot.slane %v2360_v18, 2 }
 0xd60   :  { %v2303_v61 = vmul.f32 %v2754_v48, %v2274_v35 }
 0xd61   :  { %v2318_v62 = vadd.f32 %v2317_v58, %v2316_v45  ;;  %v2313_v49 = vadd.f32 %v2312_v55, %v2311_v13  ;;  %v2362_v36 = vadd.f32 %v2361_v20, %v2360_v18 }
 0xd62   :  { %v2323_v39 = vsel %vm90_vm0, %v2303_v61, 0.0 }
 0xd63   :  { %v2324_v53 = vrot.slane %v2323_v39, 4  ;;  %v2279_v31 = vpop.permute.xlu1 %2278  ;;  %v2319_v12 = vrot.slane %v2318_v62, 2  ;;  %v2314_v16 = vrot.slane %v2313_v49, 1  ;;  %v2363_v59 = vrot.slane %v2362_v36, 1 }
 0xd64   :  { %v2304_v37 = vmul.f32 %v2756_v2, %v2279_v31 }
 0xd65   :  { %v2325_v25 = vadd.f32 %v2324_v53, %v2323_v39  ;;  %v2320_v3 = vadd.f32 %v2319_v12, %v2318_v62  ;;  %v2315_v35 = vadd.f32 %v2314_v16, %v2313_v49  ;;  %v2364_v2 = vadd.f32 %v2363_v59, %v2362_v36 }
 0xd66   :  { %v2330_v23 = vsel %vm90_vm0, %v2304_v37, 0.0 }
 0xd67   :  { %v2331_v19 = vrot.slane %v2330_v23, 4  ;;  %v2284_v29 = vpop.permute.xlu1 %2283  ;;  %v2326_v28 = vrot.slane %v2325_v25, 2  ;;  %v2321_v5 = vrot.slane %v2320_v3, 1 }
 0xd68   :  { %v2305_v0 = vmul.f32 %v2757_v15, %v2284_v29 }
 0xd69   :  { %v2332_v24 = vadd.f32 %v2331_v19, %v2330_v23  ;;  %v2327_v11 = vadd.f32 %v2326_v28, %v2325_v25  ;;  %v2322_v57 = vadd.f32 %v2321_v5, %v2320_v3 }
 0xd6a   :  { %v2337_v7 = vsel %vm90_vm0, %v2305_v0, 0.0 }
 0xd6b   :  { %v2338_v63 = vrot.slane %v2337_v7, 4  ;;  %v2289_v40 = vpop.permute.xlu1 %2288  ;;  %v2333_v38 = vrot.slane %v2332_v24, 2  ;;  %v2328_v50 = vrot.slane %v2327_v11, 1  ;;  %v2373_v58 = vsel %vm529_vm1, %v2322_v57, %v2315_v35 }
 0xd6c   :  { %v2306_v33 = vmul.f32 %v2758_v32, %v2289_v40 }
 0xd6d   :  { %v2339_v8 = vadd.f32 %v2338_v63, %v2337_v7  ;;  %v2334_v26 = vadd.f32 %v2333_v38, %v2332_v24  ;;  %v2329_v46 = vadd.f32 %v2328_v50, %v2327_v11 }
 0xd6e   :  { %v2344_v14 = vsel %vm90_vm0, %v2306_v33, 0.0 }
 0xd6f   :  { %v2340_v30 = vrot.slane %v2339_v8, 2  ;;  %v2345_v4 = vrot.slane %v2344_v14, 4  ;;  %v2294_v1 = vpop.permute.xlu1 %2293  ;;  %v2335_v42 = vrot.slane %v2334_v26, 1  ;;  %v2374_v52 = vsel %vm531_vm2, %v2329_v46, %v2373_v58 }
 0xd70   :  { %v2307_v10 = vmul.f32 %v2759_v27, %v2294_v1 }
 0xd71   :  { %v2341_v60 = vadd.f32 %v2340_v30, %v2339_v8  ;;  %v2346_v9 = vadd.f32 %v2345_v4, %v2344_v14  ;;  %v2336_v56 = vadd.f32 %v2335_v42, %v2334_v26 }
 0xd72   :  { %v2351_v47 = vsel %vm90_vm0, %v2307_v10, 0.0 }
 0xd73   :  { %v2347_v6 = vrot.slane %v2346_v9, 2  ;;  %v2352_v41 = vrot.slane %v2351_v47, 4  ;;  %v2342_v34 = vrot.slane %v2341_v60, 1  ;;  %v2375_v53 = vsel %vm533_vm3, %v2336_v56, %v2374_v52  ;;  %v2383_v21 = vpop.permute.xlu1 %2382 }
 0xd75   :  { %v2348_v43 = vadd.f32 %v2347_v6, %v2346_v9  ;;  %v2353_v44 = vadd.f32 %v2352_v41, %v2351_v47  ;;  %v2343_v48 = vadd.f32 %v2342_v34, %v2341_v60 }
 0xd77   :  { %v2349_v51 = vrot.slane %v2348_v43, 1  ;;  %v2354_v45 = vrot.slane %v2353_v44, 2  ;;  %v2376_v31 = vsel %vm535_vm4, %v2343_v48, %v2375_v53 }
 0xd79   :  { %v2355_v61 = vadd.f32 %v2354_v45, %v2353_v44  ;;  %v2350_v39 = vadd.f32 %v2349_v51, %v2348_v43 }
 0xd7b   :  { %v2356_v54 = vrot.slane %v2355_v61, 1  ;;  %v2377_v37 = vsel %vm537_vm5, %v2350_v39, %v2376_v31 }
 0xd7d   :  { %v2357_v22 = vadd.f32 %v2356_v54, %v2355_v61 }
 0xd7f   :  { %v2378_v62 = vsel %vm539_vm6, %v2357_v22, %v2377_v37 }
 0xd80   :  { %v2379_v23 = vsel %vm541_vm7, %v2364_v2, %v2378_v62 }
 0xd81   :  { %2381 = vst.msk [vmem:[#allocation8] sm:$0xff] %vm90_vm0, %v2379_v23 }
 0xd82   :  { %2386 = vst.msk [vmem:[#allocation8] sm:$0xff] %vm2385_vm12, %v2383_v21 }
 0xd83   :  { %2837 = shalt.err (!%p2834_p0)
}
 0xd84   :  { %s2838_s23 = scalar_lea.hbm %s3668_s5, 128 }
 0xd85   :  { %p2839_p1 = scmp.ne.s32.totalorder %s3668_s5, %s2838_s23  ;;  %p2842_p2 = scmp.lt.u32.totalorder %s2838_s23, %s3668_s5 }
 0xd87   :  { %p2844_p3 = pnand %p2842_p2, %p2839_p1 }
 0xd89   :  { %2847 = shalt.err (!%p2844_p3)
}
 0xd8a   :  { %2396 = dma.vmem_to_hbm [thread:$0]  %s2394_s18, 128, %s3668_s5, [#allocation4]  }
 0xd8b   :  { %2852 = dma.done.wait [#allocation4], 128  }
 0xd8c   :  { %2853 = vsyncadd [#allocation4], 4294967168 }
 0xd8d   :  { %2400 = vsyncpa [#allocation3], 1 }
 0xd8e   :  { %2401 = vsyncpa [#allocation6], 1 }
 0xd8f   :  { %2402 = vsyncpa [#allocation4], 1 }

// kernel: tpu_custom_call.1
= control target key start
LH: loop header
LB: loop body
LE: loop exit
PB: predicated region body
PF: predicated region fallthrough
CT: control target
= control target key end

     0   :  { %10 = vsyncpa [#allocation3], 0  ;;  %s3663_s0 = inlined_call_operand.hbm [shape: f32[8,8,32], index: 0, kind: input, shape index: {}]   ;;  %s3664_s1 = inlined_call_operand.hbm [shape: f32[8,16,32], index: 1, kind: input, shape index: {}]   ;;  %s3665_s2 = inlined_call_operand.hbm [shape: f32[32,160], index: 2, kind: input, shape index: {}]   ;;  %s3666_s3 = inlined_call_operand.vmem [shape: f32[3,32], index: 3, kind: input, shape index: {}]   ;;  %s3667_s4 = inlined_call_operand.vmem [shape: f32[3,32], index: 4, kind: input, shape index: {}]   ;;  %s3668_s5 = inlined_call_operand.hbm [shape: f32[8,64], index: 5, kind: output, shape index: {}]  }
   0x1   :  { %11 = vsyncpa [#allocation6], 0 }
   0x2   :  { %12 = vsyncpa [#allocation4], 0  ;;  %s2854_s18 = smov [#allocation5]   ;;  %s2855_s20 = smov [#allocation2]  }
   0x3   :  { %s30_s19 = sshll.u32 %s2854_s18, 4  ;;  %s18_s21 = sshll.u32 %s2855_s20, 4  ;;  %s31_s19 = int_to_ptr.vmem [resolvable:$true] %s30_s19  ;;  %s2900_s21 = int_to_ptr.vmem [resolvable:$true] %s18_s21 }
   0x4   :  { %s2760_s24 = scalar_lea.hbm %s3664_s1, 2048 }
   0x5   :  { %p2761_p0 = scmp.ne.s32.totalorder %s3664_s1, %s2760_s24  ;;  %p2764_p1 = scmp.lt.u32.totalorder %s2760_s24, %s3664_s1 }
   0x7   :  { %p2766_p2 = pnand %p2764_p1, %p2761_p0 }
   0x9   :  { %2769 = shalt.err (!%p2766_p2)
}
   0xa   :  { %s2770_s29 = scalar_lea.vmem %s31_s19, 2048  ;;  %p2775_p4 = scmp.lt.s32.totalorder %s31_s19, %s31_s19 }
   0xb   :  { %p2771_p3 = scmp.ne.s32.totalorder %s31_s19, %s2770_s29  ;;  %p2776_p5 = scmp.lt.s32.totalorder %s2770_s29, %s2770_s29 }
   0xd   :  { %p2777_p6 = por %p2776_p5, %p2775_p4 }
   0xf   :  { %p2778_p7 = pnand %p2777_p6, %p2771_p3 }
  0x11   :  { %2781 = shalt.err (!%p2778_p7)
}
  0x12   :  { %s2856_s30 = smov 128   ;;  %s2857_s6 = smov 8  }
  0x13   :  { %36 = dma.hbm_to_vmem [thread:$0]  %s3664_s1, 2048, %s31_s19, [#allocation6], %s2856_s30, %s2856_s30, %s2857_s6  }
  0x14   :  { %s2782_s11 = scalar_lea.hbm %s3663_s0, 1024 }
  0x15   :  { %p2783_p8 = scmp.ne.s32.totalorder %s3663_s0, %s2782_s11  ;;  %p2786_p9 = scmp.lt.u32.totalorder %s2782_s11, %s3663_s0 }
  0x17   :  { %p2788_p10 = pnand %p2786_p9, %p2783_p8 }
  0x19   :  { %2791 = shalt.err (!%p2788_p10)
}
  0x1a   :  { %s2792_s16 = scalar_lea.vmem %s2900_s21, 1024  ;;  %p2797_p12 = scmp.lt.s32.totalorder %s2900_s21, %s2900_s21 }
  0x1b   :  { %p2793_p11 = scmp.ne.s32.totalorder %s2900_s21, %s2792_s16  ;;  %p2798_p13 = scmp.lt.s32.totalorder %s2792_s16, %s2792_s16 }
  0x1d   :  { %p2799_p0 = por %p2798_p13, %p2797_p12 }
  0x1f   :  { %p2800_p1 = pnand %p2799_p0, %p2793_p11 }
  0x21   :  { %2803 = shalt.err (!%p2800_p1)
}
  0x22   :  { %24 = dma.hbm_to_vmem [thread:$0]  %s3663_s0, 1024, %s2900_s21, [#allocation3], %s2856_s30, %s2856_s30, %s2857_s6  }
  0x23   :  { %s2858_s18 = smov [#allocation7]   ;;  %s2804_s23 = scalar_lea.hbm %s3665_s2, 1024 }
  0x24   :  { %s42_s19 = sshll.u32 %s2858_s18, 4  ;;  %p2805_p2 = scmp.ne.s32.totalorder %s3665_s2, %s2804_s23  ;;  %s43_s19 = int_to_ptr.vmem [resolvable:$true] %s42_s19 }
  0x25   :  { %p2808_p3 = scmp.lt.u32.totalorder %s2804_s23, %s3665_s2 }
  0x27   :  { %p2810_p4 = pnand %p2808_p3, %p2805_p2 }
  0x29   :  { %2813 = shalt.err (!%p2810_p4)
}
  0x2a   :  { %s2814_s28 = scalar_lea.vmem %s43_s19, 1024  ;;  %p2819_p6 = scmp.lt.s32.totalorder %s43_s19, %s43_s19 }
  0x2b   :  { %p2815_p5 = scmp.ne.s32.totalorder %s43_s19, %s2814_s28  ;;  %p2820_p7 = scmp.lt.s32.totalorder %s2814_s28, %s2814_s28 }
  0x2d   :  { %p2821_p8 = por %p2820_p7, %p2819_p6 }
  0x2f   :  { %p2822_p9 = pnand %p2821_p8, %p2815_p5 }
  0x31   :  { %2825 = shalt.err (!%p2822_p9)
}
  0x32   :  { %s2859_s0 = smov 256   ;;  %s2860_s21 = smov 16  }
  0x33   :  { %48 = dma.hbm_to_vmem [thread:$0]  %s3665_s2, 1024, %s43_s19, [#allocation6], %s2859_s0, %s2859_s0, %s2860_s21  }
  0x34   :  { %2848 = dma.done.wait [#allocation3], 1024  }
  0x35   :  { %2849 = vsyncadd [#allocation3], 4294966272 }
  0x36   :  { %2850 = dma.done.wait [#allocation6], 3072  }
  0x37   :  { %2851 = vsyncadd [#allocation6], 4294964224  ;;  %vm90_vm0 = vcmask 261120   ;;  %v2943_v0 = vld [vmem:[#allocation7] sm:$0xff]  ;;  %v2945_v1 = vld [vmem:[#allocation7 + $0x10] sm:$0xff]  ;;  %v495_v56 = vlaneseq  ;;  %vm529_vm1 = vcmask 1041409  }
  0x38   :  { %v2947_v2 = vld [vmem:[#allocation7 + $0x20] sm:$0xff]  ;;  %v2551_v3 = vpack.c.bf16 %v2945_v1, %v2943_v0  ;;  %v2951_v4 = vld [vmem:[#allocation7 + $0x30] sm:$0xff]  ;;  %v2959_v7 = vld [vmem:[#allocation2 + $0x8] sm:$0xff]  ;;  %vm531_vm2 = vcmask 1042434   ;;  %vm533_vm3 = vcmask 1043459   ;;  %vm535_vm4 = vcmask 1044484  }
  0x39   :  { %v2953_v5 = vld [vmem:[#allocation2] sm:$0xff]  ;;  %v2555_v6 = vpack.c.bf16 %v2951_v4, %v2947_v2  ;;  %v2961_v8 = vld [vmem:[#allocation2 + $0x10] sm:$0xff]  ;;  %v2967_v9 = vld [vmem:[#allocation2 + $0x18] sm:$0xff]  ;;  %v3025_v57 = vand.u32 127, %v495_v56  ;;  %v3027_v58 = vshrl.u32 %v495_v56, 7  ;;  %vm537_vm5 = vcmask 1045509  }
  0x3a   :  { %2485 = vmatprep.mubr.msk.f32.mxu0 %vm90_vm0, %v2953_v5  ;;  %2552 = vmatprep.subr.bf16.mxu0 %v2551_v3  ;;  %v2969_v10 = vld [vmem:[#allocation2 + $0x20] sm:$0xff]  ;;  %v2975_v11 = vld [vmem:[#allocation2 + $0x28] sm:$0xff]  ;;  %v2977_v12 = vld [vmem:[#allocation2 + $0x30] sm:$0xff]  ;;  %vm539_vm6 = vcmask 1046534   ;;  %vm541_vm7 = vcmask 1047559   ;;  %vm544_vm8 = vcmask 64512  }
  0x3b   :  { %2554 = vmatpush3.bf16.msra.mxu0 %v2551_v3  ;;  %v2983_v13 = vld [vmem:[#allocation2 + $0x38] sm:$0xff]  ;;  %v2427_v14 = vld [vmem:[%s3666_s3] ss:$0 sm:$0xff]  ;;  %v3031_v60 = vsub.s32 %v3025_v57, %v3027_v58  ;;  %v3069_v56 = vsub.s32 5, %v3027_v58  ;;  %s2862_s9 = smov 64   ;;  %s2863_s10 = smov 32  }
  0x3c   :  { %2556 = vmatprep.subr.bf16.mxu0 %v2555_v6  ;;  %v2428_v27 = vld [vmem:[%s3667_s4] ss:$0 sm:$0xff]  ;;  %vm2865_vm9 = vmmov 0   ;;  %vm1178_vm10 = vcmask 130112   ;;  %vm1251_vm11 = vcmask 130048   ;;  %s2869_s17 = smov [#allocation8]  }
  0x3d   :  { %s2393_s18 = sshll.u32 %s2869_s17, 4  ;;  %vm2385_vm12 = vcmask 523520   ;;  %s2394_s18 = int_to_ptr.vmem [resolvable:$true] %s2393_s18 }
  0x3e   :  { %s2826_s19 = scalar_lea.vmem %s2394_s18, 128  ;;  %p2831_p11 = scmp.lt.s32.totalorder %s2394_s18, %s2394_s18 }
  0x3f   :  { %2558 = vmatpush3.bf16.msra.mxu0 %v2555_v6  ;;  %p2827_p10 = scmp.ne.s32.totalorder %s2394_s18, %s2826_s19  ;;  %p2832_p12 = scmp.lt.s32.totalorder %s2826_s19, %s2826_s19 }
  0x41   :  { %p2833_p13 = por %p2832_p12, %p2831_p11 }
  0x42   :  { %2486 = vmatmul.mubr.msk.f32.vlgmr.msra.gmra.mrb[0].mxu0 %vm90_vm0, %v2959_v7 }
  0x43   :  { %2488 = vmatprep.mubr.msk.f32.mxu0 %vm90_vm0, %v2961_v8  ;;  %p2834_p0 = pnand %p2833_p13, %p2827_p10 }
  0x46   :  { %2489 = vmatmul.mubr.msk.f32.gmra.mrb[2].mxu0 %vm90_vm0, %v2967_v9 }
  0x47   :  { %2491 = vmatprep.mubr.msk.f32.mxu0 %vm90_vm0, %v2969_v10 }
  0x4a   :  { %2492 = vmatmul.mubr.msk.f32.gmra.mrb[4].mxu0 %vm90_vm0, %v2975_v11 }
  0x4b   :  { %2494 = vmatprep.mubr.msk.f32.mxu0 %vm90_vm0, %v2977_v12 }
  0x4e   :  { %2495 = vmatmul.mubr.msk.f32.gmra.mrb[6].mxu0 %vm90_vm0, %v2983_v13 }
 0x115   :  { %v2990_v15 = vpop.f32.mrb[0].mxu0 }
 0x116   :  { %3680 = vst [vmem:[#allocation12_spill] sm:$0xff] %v2990_v15  ;;  %v435_v16 = vadd.f32 %v2990_v15, %v2427_v14  ;;  %v2993_v17 = vpop.f32.mrb[1].mxu0 }
 0x117   :  { %3681 = vst [vmem:[#allocation13_spill] sm:$0xff] %v2993_v17  ;;  %v434_v18 = vadd.f32 %v2427_v14, %v2993_v17 }
 0x118   :  { %2617 = vtanh.f32 %v435_v16 }
 0x119   :  { %2619 = vtanh.f32 %v434_v18  ;;  %v2996_v19 = vpop.f32.mrb[2].mxu0 }
 0x11a   :  { %3682 = vst [vmem:[#allocation14_spill] sm:$0xff] %v2996_v19  ;;  %v437_v20 = vadd.f32 %v2996_v19, %v2427_v14  ;;  %v2999_v21 = vpop.f32.mrb[3].mxu0 }
 0x11b   :  { %3683 = vst [vmem:[#allocation15_spill] sm:$0xff] %v2999_v21  ;;  %v436_v22 = vadd.f32 %v2427_v14, %v2999_v21 }
 0x11c   :  { %2621 = vtanh.f32 %v437_v20 }
 0x11d   :  { %2623 = vtanh.f32 %v436_v22  ;;  %v3002_v23 = vpop.f32.mrb[4].mxu0 }
 0x11e   :  { %3684 = vst [vmem:[#allocation16_spill] sm:$0xff] %v3002_v23  ;;  %v439_v24 = vadd.f32 %v3002_v23, %v2427_v14  ;;  %v3005_v25 = vpop.f32.mrb[5].mxu0 }
 0x11f   :  { %3685 = vst [vmem:[#allocation17_spill] sm:$0xff] %v3005_v25  ;;  %v438_v26 = vadd.f32 %v2427_v14, %v3005_v25 }
 0x120   :  { %2625 = vtanh.f32 %v439_v24 }
 0x121   :  { %2627 = vtanh.f32 %v438_v26  ;;  %v3011_v28 = vpop.f32.mrb[6].mxu0 }
 0x122   :  { %3686 = vst [vmem:[#allocation18_spill] sm:$0xff] %v3011_v28  ;;  %v2618_v29 = vpop.eup %2617  ;;  %v441_v30 = vadd.f32 %v3011_v28, %v2427_v14  ;;  %v3014_v31 = vpop.f32.mrb[7].mxu0 }
 0x123   :  { %3687 = vst [vmem:[#allocation19_spill] sm:$0xff] %v3014_v31  ;;  %v2620_v32 = vpop.eup %2619  ;;  %v440_v33 = vadd.f32 %v2427_v14, %v3014_v31  ;;  %v456_v34 = vmul.f32 %v2618_v29, %v2428_v27 }
 0x124   :  { %2629 = vtanh.f32 %v441_v30  ;;  %v455_v36 = vmul.f32 %v2620_v32, %v2428_v27 }
 0x125   :  { %2631 = vtanh.f32 %v440_v33  ;;  %v466_v35 = vsel %vm90_vm0, %v456_v34, 0.0 }
 0x126   :  { %v2622_v37 = vpop.eup %2621  ;;  %467 = vadd.xlane.f32.xlu0 %v466_v35  ;;  %v463_v40 = vsel %vm90_vm0, %v455_v36, 0.0 }
 0x127   :  { %v2624_v38 = vpop.eup %2623  ;;  %v458_v39 = vmul.f32 %v2622_v37, %v2428_v27 }
 0x128   :  { %v457_v42 = vmul.f32 %v2624_v38, %v2428_v27 }
 0x129   :  { %v472_v41 = vsel %vm90_vm0, %v458_v39, 0.0 }
 0x12a   :  { %v2626_v43 = vpop.eup %2625  ;;  %464 = vadd.xlane.f32.xlu0 %v463_v40  ;;  %473 = vadd.xlane.f32.xlu1 %v472_v41  ;;  %v469_v46 = vsel %vm90_vm0, %v457_v42, 0.0  ;;  %v2861_v40 = vmov 0   ;;  %v3050_v41 = vsub.s32 0, %v3027_v58  ;;  %v3053_v42 = vsub.s32 1, %v3027_v58 }
 0x12b   :  { %v2628_v44 = vpop.eup %2627  ;;  %v460_v47 = vmul.f32 %v2626_v43, %v2428_v27  ;;  %2596 = vset.pattern.permute.xlu0 %v2861_v40  ;;  %2595 = vset.pattern.permute.xlu1 %v2861_v40  ;;  %v3056_v43 = vsub.s32 2, %v3027_v58 }
 0x12c   :  { %v459_v45 = vmul.f32 %v2628_v44, %v2428_v27  ;;  %v3059_v44 = vsub.s32 3, %v3027_v58 }
 0x12d   :  { %v478_v52 = vsel %vm90_vm0, %v460_v47, 0.0 }
 0x12e   :  { %v2630_v48 = vpop.eup %2629  ;;  %470 = vadd.xlane.f32.xlu1 %v469_v46  ;;  %v475_v49 = vsel %vm90_vm0, %v459_v45, 0.0 }
 0x12f   :  { %v2632_v50 = vpop.eup %2631  ;;  %476 = vadd.xlane.f32.xlu0 %v475_v49  ;;  %v462_v53 = vmul.f32 %v2630_v48, %v2428_v27 }
 0x130   :  { %v461_v51 = vmul.f32 %v2632_v50, %v2428_v27 }
 0x131   :  { %v484_v55 = vsel %vm90_vm0, %v462_v53, 0.0 }
 0x132   :  { %479 = vadd.xlane.f32.xlu1 %v478_v52  ;;  %v481_v54 = vsel %vm90_vm0, %v461_v51, 0.0  ;;  %v3065_v51 = vsub.s32 4, %v3027_v58 }
 0x133   :  { %482 = vadd.xlane.f32.xlu0 %v481_v54 }
 0x136   :  { %485 = vadd.xlane.f32.xlu1 %v484_v55 }
 0x1b3   :  { %v468_v59 = vpop.xlane.xlu0 %467 }
 0x1b4   :  { %v504_v3 = vrot.slane %v468_v59, %v3031_v60 }
 0x1b7   :  { %v465_v61 = vpop.xlane.xlu0 %464  ;;  %v474_v62 = vpop.xlane.xlu1 %473 }
 0x1b8   :  { %v500_v63 = vrot.slane %v465_v61, %v3031_v60  ;;  %v512_v20 = vrot.slane %v474_v62, %v3031_v60 }
 0x1ba   :  { %v530_v18 = vsel %vm529_vm1, %v504_v3, %v500_v63 }
 0x1bb   :  { %v471_v6 = vpop.xlane.xlu1 %470 }
 0x1bc   :  { %v508_v14 = vrot.slane %v471_v6, %v3031_v60  ;;  %v477_v16 = vpop.xlane.xlu0 %476 }
 0x1bd   :  { %v516_v22 = vrot.slane %v477_v16, %v3031_v60 }
 0x1be   :  { %v532_v24 = vsel %vm531_vm2, %v508_v14, %v530_v18 }
 0x1bf   :  { %v534_v26 = vsel %vm533_vm3, %v512_v20, %v532_v24  ;;  %v480_v27 = vpop.xlane.xlu1 %479 }
 0x1c0   :  { %v536_v29 = vsel %vm535_vm4, %v516_v22, %v534_v26  ;;  %v520_v30 = vrot.slane %v480_v27, %v3031_v60  ;;  %v483_v32 = vpop.xlane.xlu0 %482 }
 0x1c1   :  { %v524_v33 = vrot.slane %v483_v32, %v3031_v60 }
 0x1c2   :  { %v538_v34 = vsel %vm537_vm5, %v520_v30, %v536_v29 }
 0x1c3   :  { %v486_v35 = vpop.xlane.xlu1 %485  ;;  %v540_v37 = vsel %vm539_vm6, %v524_v33, %v538_v34 }
 0x1c4   :  { %v528_v36 = vrot.slane %v486_v35, %v3031_v60 }
 0x1c6   :  { %v542_v38 = vsel %vm541_vm7, %v528_v36, %v540_v37 }
 0x1c7   :  { %v545_v39 = vsel %vm544_vm8, %v542_v38, -inf }
 0x1c8   :  { %546 = vmax.xlane.f32.xlu0 %v545_v39 }
 0x255   :  { %v547_v45 = vpop.xlane.xlu0 %546 }
 0x256   :  { %v552_v46 = vrot.slane %v547_v45, %v3050_v41  ;;  %v556_v47 = vrot.slane %v547_v45, %v3053_v42  ;;  %v560_v48 = vrot.slane %v547_v45, %v3056_v43  ;;  %v564_v52 = vrot.slane %v547_v45, %v3059_v44 }
 0x257   :  { %v568_v63 = vrot.slane %v547_v45, %v3065_v51 }
 0x258   :  { %v590_v49 = vsub.f32 %v468_v59, %v556_v47  ;;  %v589_v50 = vsub.f32 %v465_v61, %v552_v46  ;;  %v591_v53 = vsub.f32 %v471_v6, %v560_v48  ;;  %v592_v14 = vsub.f32 %v474_v62, %v564_v52 }
 0x259   :  { %v3073_v59 = vsub.s32 6, %v3027_v58  ;;  %v572_v61 = vrot.slane %v547_v45, %v3069_v56  ;;  %v593_v20 = vsub.f32 %v477_v16, %v568_v63  ;;  %v3077_v6 = vsub.s32 7, %v3027_v58 }
 0x25a   :  { %v599_v54 = vmul.f32 1.442695, %v590_v49  ;;  %v597_v55 = vmul.f32 1.442695, %v589_v50  ;;  %v601_v3 = vmul.f32 1.442695, %v591_v53 }
 0x25b   :  { %v603_v18 = vmul.f32 1.442695, %v592_v14  ;;  %v576_v22 = vrot.slane %v547_v45, %v3073_v59  ;;  %v605_v24 = vmul.f32 1.442695, %v593_v20  ;;  %v594_v26 = vsub.f32 %v480_v27, %v572_v61 }
 0x25c   :  { %2633 = vpow2.f32 %v599_v54  ;;  %v580_v62 = vrot.slane %v547_v45, %v3077_v6 }
 0x25d   :  { %2635 = vpow2.f32 %v597_v55  ;;  %v607_v16 = vmul.f32 1.442695, %v594_v26  ;;  %v595_v33 = vsub.f32 %v483_v32, %v576_v22 }
 0x25e   :  { %2637 = vpow2.f32 %v601_v3  ;;  %v596_v27 = vsub.f32 %v486_v35, %v580_v62 }
 0x25f   :  { %2639 = vpow2.f32 %v603_v18  ;;  %v609_v36 = vmul.f32 1.442695, %v595_v33 }
 0x260   :  { %2641 = vpow2.f32 %v605_v24  ;;  %v611_v38 = vmul.f32 1.442695, %v596_v27 }
 0x261   :  { %2643 = vpow2.f32 %v607_v16 }
 0x262   :  { %2645 = vpow2.f32 %v609_v36 }
 0x263   :  { %2647 = vpow2.f32 %v611_v38  ;;  %v2597_v38 = vpack.i.bf16 %v2945_v1, %v2943_v0 }
 0x266   :  { %v3080_v29 = vpop.eup %2633 }
 0x267   :  { %v3082_v30 = vpop.eup %2635  ;;  %625 = vperm.xlu0 %2596, %v3080_v29  }
 0x268   :  { %622 = vperm.xlu1 %2595, %v3082_v30   ;;  %v3087_v34 = vpop.eup %2637 }
 0x269   :  { %v3090_v37 = vpop.eup %2639 }
 0x26a   :  { %v2642_v39 = vpop.eup %2641 }
 0x26b   :  { %v2644_v40 = vpop.eup %2643  ;;  %2598 = vrot.lane.b32.xlu0 %v2597_v38, %s2862_s9 }
 0x26c   :  { %628 = vperm.xlu1 %2595, %v3087_v34   ;;  %v3093_v45 = vpop.eup %2645 }
 0x26d   :  { %v2648_v32 = vpop.eup %2647 }
 0x270   :  { %631 = vperm.xlu1 %2595, %v3090_v37  }
 0x274   :  { %634 = vperm.xlu1 %2595, %v2642_v39  }
 0x278   :  { %637 = vperm.xlu1 %2595, %v2644_v40  }
 0x27c   :  { %640 = vperm.xlu1 %2595, %v3093_v45  }
 0x280   :  { %643 = vperm.xlu1 %2595, %v2648_v32  }
 0x2e6   :  { %v626_v49 = vpop.permute.xlu0 %625 }
 0x2e7   :  { %v623_v46 = vpop.permute.xlu1 %622  ;;  %v652_v52 = vrot.slane %v626_v49, %v3031_v60 }
 0x2e8   :  { %v648_v53 = vrot.slane %v623_v46, %v3031_v60 }
 0x2ea   :  { %v677_v14 = vsel %vm529_vm1, %v652_v52, %v648_v53  ;;  %v2599_v46 = vpop.permute.xlu0 %2598 }
 0x2eb   :  { %v629_v47 = vpop.permute.xlu1 %628 }
 0x2ec   :  { %v656_v54 = vrot.slane %v629_v47, %v3031_v60  ;;  %v2601_v47 = vunpack.i.h.bf16 %v2599_v46 }
 0x2ee   :  { %v678_v18 = vsel %vm531_vm2, %v656_v54, %v677_v14 }
 0x2ef   :  { %v632_v35 = vpop.permute.xlu1 %631 }
 0x2f0   :  { %v660_v55 = vrot.slane %v632_v35, %v3031_v60  ;;  %v2600_v35 = vunpack.i.l.bf16 %v2599_v46 }
 0x2f2   :  { %v679_v22 = vsel %vm533_vm3, %v660_v55, %v678_v18 }
 0x2f3   :  { %v635_v48 = vpop.permute.xlu1 %634 }
 0x2f4   :  { %v664_v63 = vrot.slane %v635_v48, %v3031_v60  ;;  %v2559_v48 = vpack.c.bf16 %v2601_v47, %v2600_v35 }
 0x2f6   :  { %v680_v24 = vsel %vm535_vm4, %v664_v63, %v679_v22  ;;  %2560 = vmatprep.subr.bf16.mxu1 %v2559_v48 }
 0x2f7   :  { %v638_v50 = vpop.permute.xlu1 %637  ;;  %2562 = vmatpush3.bf16.msra.mxu1 %v2559_v48 }
 0x2f8   :  { %v668_v61 = vrot.slane %v638_v50, %v3031_v60 }
 0x2fa   :  { %v681_v16 = vsel %vm537_vm5, %v668_v61, %v680_v24 }
 0x2fb   :  { %v641_v3 = vpop.permute.xlu1 %640 }
 0x2fc   :  { %v672_v20 = vrot.slane %v641_v3, %v3031_v60 }
 0x2fe   :  { %v682_v33 = vsel %vm539_vm6, %v672_v20, %v681_v16 }
 0x2ff   :  { %v644_v26 = vpop.permute.xlu1 %643 }
 0x300   :  { %v676_v62 = vrot.slane %v644_v26, %v3031_v60 }
 0x302   :  { %v683_v36 = vsel %vm541_vm7, %v676_v62, %v682_v33 }
 0x303   :  { %v685_v27 = vsel %vm544_vm8, %v683_v36, 0.0 }
 0x304   :  { %686 = vadd.xlane.f32.xlu1 %v685_v27 }
 0x391   :  { %v687_v49 = vpop.xlane.xlu1 %686 }
 0x392   :  { %2649 = vrcp.f32 %v687_v49 }
 0x39c   :  { %v2650_v50 = vpop.eup %2649 }
 0x39d   :  { %v721_v52 = vrot.slane %v2650_v50, %v3077_v6  ;;  %v693_v53 = vrot.slane %v2650_v50, %v3050_v41  ;;  %v697_v0 = vrot.slane %v2650_v50, %v3053_v42  ;;  %v701_v63 = vrot.slane %v2650_v50, %v3056_v43 }
 0x39e   :  { %v705_v14 = vrot.slane %v2650_v50, %v3059_v44  ;;  %v713_v18 = vrot.slane %v2650_v50, %v3069_v56 }
 0x39f   :  { %v737_v54 = vmul.f32 %v2648_v32, %v721_v52  ;;  %v730_v55 = vmul.f32 %v3082_v30, %v693_v53  ;;  %v731_v1 = vmul.f32 %v3080_v29, %v697_v0  ;;  %v732_v3 = vmul.f32 %v3087_v34, %v701_v63 }
 0x3a0   :  { %v733_v61 = vmul.f32 %v3090_v37, %v705_v14  ;;  %v709_v32 = vrot.slane %v2650_v50, %v3065_v51  ;;  %v735_v20 = vmul.f32 %v2644_v40, %v713_v18  ;;  %v717_v29 = vrot.slane %v2650_v50, %v3073_v59  ;;  %v70_v37 = vld [vmem:[#allocation5] sm:$0xff] }
 0x3a1   :  { %775 = vperm.xlu1 %2595, %v737_v54   ;;  %740 = vperm.xlu0 %2596, %v730_v55   ;;  %v2602_v34 = vpack.i.bf16 %v2951_v4, %v2947_v2  ;;  %v2866_v40 = vmov 0.0  }
 0x3a2   :  { %v734_v30 = vmul.f32 %v2642_v39, %v709_v32  ;;  %v736_v22 = vmul.f32 %v3093_v45, %v717_v29  ;;  %2505 = vmatprep.mubr.msk.f32.mxu1 %vm90_vm0, %v70_v37  ;;  %v3669_v39 = vmov 0.0|0.0   ;;  %2537 = vmatprep.mubr.msk.f32.mxu0 %vm2865_vm9, %v2866_v40 }
 0x3a3   :  { %2567 = vmatprep.subr.bf16.mxu0 %v3669_v39 }
 0x3a5   :  { %745 = vperm.xlu0 %2596, %v731_v1  }
 0x3a9   :  { %750 = vperm.xlu0 %2596, %v732_v3  }
 0x3ad   :  { %755 = vperm.xlu0 %2596, %v733_v61  }
 0x3b1   :  { %760 = vperm.xlu0 %2596, %v734_v30  }
 0x3b5   :  { %765 = vperm.xlu0 %2596, %v735_v20  }
 0x3b9   :  { %770 = vperm.xlu0 %2596, %v736_v22  }
 0x3bd   :  { %2603 = vrot.lane.b32.xlu0 %v2602_v34, %s2862_s9 }
 0x3c1   :  { %2608 = vrot.lane.b32.xlu0 %v2597_v38, %s2863_s10 }
 0x3c5   :  { %2613 = vrot.lane.b32.xlu0 %v2602_v34, %s2863_s10 }
 0x420   :  { %v741_v45 = vpop.permute.xlu0 %740  ;;  %v776_v33 = vpop.permute.xlu1 %775 }
 0x421   :  { %v778_v24 = vmul.f32 %v741_v45, %v2953_v5  ;;  %v785_v35 = vmul.f32 %v776_v33, %v2983_v13 }
 0x423   :  { %v786_v36 = vsel %vm90_vm0, %v778_v24, 0.0 }
 0x424   :  { %v746_v2 = vpop.permute.xlu0 %745  ;;  %v787_v48 = vrot.slane %v786_v36, 4 }
 0x425   :  { %v779_v4 = vmul.f32 %v746_v2, %v2959_v7 }
 0x426   :  { %v788_v54 = vadd.f32 %v787_v48, %v786_v36 }
 0x427   :  { %v793_v26 = vsel %vm90_vm0, %v779_v4, 0.0 }
 0x428   :  { %v751_v62 = vpop.permute.xlu0 %750  ;;  %v794_v27 = vrot.slane %v793_v26, 4 }
 0x429   :  { %v780_v16 = vmul.f32 %v751_v62, %v2961_v8  ;;  %v835_v8 = vsel %vm90_vm0, %v785_v35, 0.0 }
 0x42a   :  { %v795_v49 = vadd.f32 %v794_v27, %v793_v26  ;;  %v836_v3 = vrot.slane %v835_v8, 4 }
 0x42b   :  { %v800_v38 = vsel %vm90_vm0, %v780_v16, 0.0 }
 0x42c   :  { %v801_v46 = vrot.slane %v800_v38, 4  ;;  %v756_v47 = vpop.permute.xlu0 %755  ;;  %v796_v1 = vrot.slane %v795_v49, 2  ;;  %v837_v22 = vadd.f32 %v836_v3, %v835_v8 }
 0x42d   :  { %v781_v7 = vmul.f32 %v756_v47, %v2967_v9  ;;  %v789_v9 = vrot.slane %v788_v54, 2 }
 0x42e   :  { %v802_v50 = vadd.f32 %v801_v46, %v800_v38  ;;  %v797_v20 = vadd.f32 %v796_v1, %v795_v49  ;;  %v838_v36 = vrot.slane %v837_v22, 2 }
 0x42f   :  { %v807_v5 = vsel %vm90_vm0, %v781_v7, 0.0  ;;  %v790_v2 = vadd.f32 %v789_v9, %v788_v54  ;;  %v3153_v9 = vld [vmem:[#allocation5 + $0x8] sm:$0xff] }
 0x430   :  { %v808_v52 = vrot.slane %v807_v5, 4  ;;  %v761_v53 = vpop.permute.xlu0 %760  ;;  %v803_v13 = vrot.slane %v802_v50, 2  ;;  %v798_v16 = vrot.slane %v797_v20, 1 }
 0x431   :  { %v782_v55 = vmul.f32 %v761_v53, %v2969_v10  ;;  %v791_v47 = vrot.slane %v790_v2, 1 }
 0x432   :  { %v809_v0 = vadd.f32 %v808_v52, %v807_v5  ;;  %v804_v34 = vadd.f32 %v803_v13, %v802_v50  ;;  %v799_v52 = vadd.f32 %v798_v16, %v797_v20  ;;  %v3156_v20 = vld [vmem:[#allocation5 + $0x10] sm:$0xff]  ;;  %v3168_v16 = vld [vmem:[#allocation5 + $0x20] sm:$0xff] }
 0x433   :  { %v814_v63 = vsel %vm90_vm0, %v782_v55, 0.0  ;;  %v792_v1 = vadd.f32 %v791_v47, %v790_v2  ;;  %v3189_v47 = vld [vmem:[#allocation5 + $0x38] sm:$0xff] }
 0x434   :  { %v815_v14 = vrot.slane %v814_v63, 4  ;;  %v766_v61 = vpop.permute.xlu0 %765  ;;  %v810_v32 = vrot.slane %v809_v0, 2 }
 0x435   :  { %v783_v30 = vmul.f32 %v766_v61, %v2975_v11  ;;  %v805_v11 = vrot.slane %v804_v34, 1 }
 0x436   :  { %v816_v18 = vadd.f32 %v815_v14, %v814_v63  ;;  %v811_v4 = vadd.f32 %v810_v32, %v809_v0  ;;  %v850_v32 = vsel %vm529_vm1, %v799_v52, %v792_v1  ;;  %v3221_v52 = vld [vmem:[#allocation5 + $0x78] sm:$0xff] }
 0x437   :  { %v821_v29 = vsel %vm90_vm0, %v783_v30, 0.0  ;;  %v806_v8 = vadd.f32 %v805_v11, %v804_v34 }
 0x438   :  { %v817_v37 = vrot.slane %v816_v18, 2  ;;  %v822_v10 = vrot.slane %v821_v29, 4  ;;  %v771_v45 = vpop.permute.xlu0 %770  ;;  %v812_v35 = vrot.slane %v811_v4, 1 }
 0x439   :  { %v784_v24 = vmul.f32 %v771_v45, %v2977_v12  ;;  %v839_v12 = vadd.f32 %v838_v36, %v837_v22 }
 0x43a   :  { %v818_v26 = vadd.f32 %v817_v37, %v816_v18  ;;  %v823_v62 = vadd.f32 %v822_v10, %v821_v29  ;;  %v813_v63 = vadd.f32 %v812_v35, %v811_v4  ;;  %v851_v29 = vsel %vm531_vm2, %v806_v8, %v850_v32  ;;  %v3191_v35 = vld [vmem:[#allocation5 + $0x40] sm:$0xff] }
 0x43b   :  { %v828_v33 = vsel %vm90_vm0, %v784_v24, 0.0  ;;  %v840_v37 = vrot.slane %v839_v12, 1 }
 0x43c   :  { %v824_v27 = vrot.slane %v823_v62, 2  ;;  %v829_v38 = vrot.slane %v828_v33, 4  ;;  %v2604_v46 = vpop.permute.xlu0 %2603  ;;  %v819_v49 = vrot.slane %v818_v26, 1  ;;  %v852_v10 = vsel %vm533_vm3, %v813_v63, %v851_v29 }
 0x43d   :  { %v2606_v48 = vunpack.i.h.bf16 %v2604_v46  ;;  %v2605_v7 = vunpack.i.l.bf16 %v2604_v46  ;;  %v841_v11 = vadd.f32 %v840_v37, %v839_v12  ;;  %v3180_v46 = vld [vmem:[#allocation5 + $0x30] sm:$0xff] }
 0x43e   :  { %v825_v5 = vadd.f32 %v824_v27, %v823_v62  ;;  %v830_v50 = vadd.f32 %v829_v38, %v828_v33  ;;  %v820_v14 = vadd.f32 %v819_v49, %v818_v26  ;;  %v3166_v26 = vld [vmem:[#allocation5 + $0x18] sm:$0xff]  ;;  %v3176_v27 = vld [vmem:[#allocation5 + $0x28] sm:$0xff]  ;;  %v3207_v49 = vld [vmem:[#allocation5 + $0x60] sm:$0xff] }
 0x43f   :  { %v2563_v53 = vpack.c.bf16 %v2606_v48, %v2605_v7  ;;  %v3197_v48 = vld [vmem:[#allocation5 + $0x48] sm:$0xff]  ;;  %v3199_v7 = vld [vmem:[#allocation5 + $0x50] sm:$0xff] }
 0x440   :  { %v826_v54 = vrot.slane %v825_v5, 1  ;;  %v831_v55 = vrot.slane %v830_v50, 2  ;;  %v2609_v0 = vpop.permute.xlu0 %2608  ;;  %v853_v4 = vsel %vm535_vm4, %v820_v14, %v852_v10 }
 0x441   :  { %v2611_v3 = vunpack.i.h.bf16 %v2609_v0  ;;  %v2610_v13 = vunpack.i.l.bf16 %v2609_v0  ;;  %2564 = vmatprep.subr.bf16.mxu1 %v2563_v53 }
 0x442   :  { %v832_v61 = vadd.f32 %v831_v55, %v830_v50  ;;  %2566 = vmatpush3.bf16.msra.mxu1 %v2563_v53  ;;  %v827_v30 = vadd.f32 %v826_v54, %v825_v5  ;;  %v3213_v5 = vld [vmem:[#allocation5 + $0x68] sm:$0xff]  ;;  %v3215_v50 = vld [vmem:[#allocation5 + $0x70] sm:$0xff]  ;;  %v2867_v53 = vmov 1966171168  }
 0x443   :  { %v2568_v18 = vpack.c.bf16 %v2611_v3, %v2610_v13  ;;  %v944_v12 = vunpack.c.l.s4 %v2867_v53 }
 0x444   :  { %v833_v22 = vrot.slane %v832_v61, 1  ;;  %v2614_v34 = vpop.permute.xlu0 %2613  ;;  %v854_v33 = vsel %vm537_vm5, %v827_v30, %v853_v4  ;;  %v3236_v4 = vld [vmem:[%s3666_s3 + $0x1] ss:$0 sm:$0xff] }
 0x445   :  { %v2616_v45 = vunpack.i.h.bf16 %v2614_v34  ;;  %v2615_v2 = vunpack.i.l.bf16 %v2614_v34  ;;  %2506 = vmatmul.mubr.msk.f32.vlgmr.msra.gmra.mrb[0].mxu1 %vm90_vm0, %v3153_v9  ;;  %2569 = vmatpush3.bf16.msra.mxu0 %v2568_v18  ;;  %v945_v8 = vunpack.c.0.s8 %v944_v12 }
 0x446   :  { %v834_v24 = vadd.f32 %v833_v22, %v832_v61  ;;  %2508 = vmatprep.mubr.msk.f32.mxu1 %vm90_vm0, %v3156_v20  ;;  %2570 = vmatprep.subr.bf16.mxu0 %v3669_v39 }
 0x447   :  { %v2571_v62 = vpack.c.bf16 %v2616_v45, %v2615_v2  ;;  %v3226_v0 = vsub.s32 %v945_v8, %v3027_v58 }
 0x448   :  { %v855_v36 = vsel %vm539_vm6, %v834_v24, %v854_v33 }
 0x449   :  { %2509 = vmatmul.mubr.msk.f32.gmra.mrb[2].mxu1 %vm90_vm0, %v3166_v26  ;;  %2572 = vmatpush3.bf16.msra.mxu0 %v2571_v62  ;;  %v856_v38 = vsel %vm541_vm7, %v841_v11, %v855_v36  ;;  %3688 = vst [vmem:[#allocation20_spill] sm:$0xff] %v3226_v0 }
 0x44a   :  { %2511 = vmatprep.mubr.msk.f32.mxu1 %vm90_vm0, %v3168_v16  ;;  %2573 = vmatprep.subr.bf16.mxu0 %v3669_v39 }
 0x44c   :  { %2538 = vmatmul.mubr.msk.f32.vlgmr.msra.gmra.mrb[8].mxu0 %vm90_vm0, %v856_v38 }
 0x44d   :  { %2512 = vmatmul.mubr.msk.f32.gmra.mrb[4].mxu1 %vm90_vm0, %v3176_v27  ;;  %2548 = vmatprep.mubr.msk.f32.mxu0 %vm2865_vm9, %v2866_v40  ;;  %v3205_v40 = vld [vmem:[#allocation5 + $0x58] sm:$0xff] }
 0x44e   :  { %2514 = vmatprep.mubr.msk.f32.mxu1 %vm90_vm0, %v3180_v46 }
 0x451   :  { %2515 = vmatmul.mubr.msk.f32.gmra.mrb[6].mxu1 %vm90_vm0, %v3189_v47 }
 0x452   :  { %2517 = vmatprep.mubr.msk.f32.mxu1 %vm90_vm0, %v3191_v35 }
 0x455   :  { %2518 = vmatmul.mubr.msk.f32.gmra.mrb[8].mxu1 %vm90_vm0, %v3197_v48 }
 0x456   :  { %2520 = vmatprep.mubr.msk.f32.mxu1 %vm90_vm0, %v3199_v7 }
 0x459   :  { %2521 = vmatmul.mubr.msk.f32.gmra.mrb[10].mxu1 %vm90_vm0, %v3205_v40 }
 0x45a   :  { %2523 = vmatprep.mubr.msk.f32.mxu1 %vm90_vm0, %v3207_v49 }
 0x45d   :  { %2524 = vmatmul.mubr.msk.f32.gmra.mrb[12].mxu1 %vm90_vm0, %v3213_v5 }
 0x45e   :  { %2526 = vmatprep.mubr.msk.f32.mxu1 %vm90_vm0, %v3215_v50 }
 0x461   :  { %2527 = vmatmul.mubr.msk.f32.gmra.mrb[14].mxu1 %vm90_vm0, %v3221_v52 }
 0x518   :  { %v2507_v54 = vpop.f32.mrb[0].mxu1 }
 0x519   :  { %v350_v55 = vpop.f32.mrb[1].mxu1 }
 0x51c   :  { %v2510_v1 = vpop.f32.mrb[2].mxu1 }
 0x51d   :  { %v360_v63 = vpop.f32.mrb[3].mxu1 }
 0x51f   :  { %v937_v3 = vpop.f32.mrb[8].mxu0 }
 0x520   :  { %v942_v13 = vcombine.high %v937_v3, %v937_v3  ;;  %v949_v14 = vrot.slane %v937_v3, %v3226_v0  ;;  %v2539_v61 = vpop.f32.mrb[9].mxu0  ;;  %v2513_v32 = vpop.f32.mrb[4].mxu1 }
 0x521   :  { %v370_v30 = vpop.f32.mrb[5].mxu1 }
 0x522   :  { %v956_v18 = vrot.slane %v942_v13, %v3226_v0  ;;  %v957_v29 = vcombine.high %v949_v14, %v949_v14  ;;  %v965_v22 = vrot.slane %v949_v14, %v3226_v0 }
 0x524   :  { %v958_v34 = vcombine.high %v956_v18, %v956_v18  ;;  %v994_v37 = vrot.slane %v965_v22, %v3050_v41  ;;  %v979_v10 = vrot.slane %v957_v29, %v3226_v0  ;;  %v987_v45 = vcombine.high %v965_v22, %v965_v22  ;;  %v2516_v2 = vpop.f32.mrb[6].mxu1 }
 0x525   :  { %v380_v24 = vpop.f32.mrb[7].mxu1  ;;  %v972_v62 = vrot.slane %v956_v18, %v3226_v0 }
 0x526   :  { %v1032_v33 = vadd.f32 %v2507_v54, %v994_v37  ;;  %v1031_v36 = vadd.f32 %v994_v37, %v350_v55  ;;  %v998_v11 = vrot.slane %v979_v10, %v3050_v41  ;;  %v1002_v38 = vrot.slane %v987_v45, %v3050_v41 }
 0x527   :  { %v989_v53 = vcombine.high %v979_v10, %v979_v10  ;;  %v1010_v12 = vrot.slane %v972_v62, %v3050_v41  ;;  %v986_v8 = vrot.slane %v958_v34, %v3226_v0  ;;  %v988_v3 = vcombine.high %v972_v62, %v972_v62 }
 0x528   :  { %v1053_v13 = vadd.f32 %v3236_v4, %v1032_v33  ;;  %v1052_v14 = vadd.f32 %v3236_v4, %v1031_v36  ;;  %v1034_v61 = vadd.f32 %v2510_v1, %v998_v11  ;;  %v1033_v29 = vadd.f32 %v998_v11, %v360_v63  ;;  %v2519_v22 = vpop.f32.mrb[8].mxu1 }
 0x529   :  { %v1036_v18 = vadd.f32 %v2513_v32, %v1002_v38  ;;  %v1035_v54 = vadd.f32 %v1002_v38, %v370_v30  ;;  %v1006_v55 = vrot.slane %v989_v53, %v3050_v41  ;;  %v1040_v37 = vadd.f32 %v2519_v22, %v1010_v12  ;;  %v390_v39 = vpop.f32.mrb[9].mxu1  ;;  %v3258_v22 = vld [vmem:[%s3667_s4 + $0x1] ss:$0 sm:$0xff] }
 0x52a   :  { %2651 = vtanh.f32 %v1053_v13  ;;  %v1055_v10 = vadd.f32 %v3236_v4, %v1034_v61  ;;  %v1054_v45 = vadd.f32 %v3236_v4, %v1033_v29  ;;  %v1039_v34 = vadd.f32 %v1010_v12, %v390_v39 }
 0x52b   :  { %2653 = vtanh.f32 %v1052_v14  ;;  %v1056_v62 = vadd.f32 %v3236_v4, %v1035_v54  ;;  %v1038_v33 = vadd.f32 %v2516_v2, %v1006_v55  ;;  %v1037_v36 = vadd.f32 %v1006_v55, %v380_v24 }
 0x52c   :  { %v2522_v1 = vpop.f32.mrb[10].mxu1  ;;  %2655 = vtanh.f32 %v1054_v45  ;;  %v1057_v63 = vadd.f32 %v3236_v4, %v1036_v18  ;;  %v1014_v32 = vrot.slane %v986_v8, %v3050_v41  ;;  %v1060_v38 = vadd.f32 %v3236_v4, %v1039_v34 }
 0x52d   :  { %v400_v30 = vpop.f32.mrb[11].mxu1  ;;  %2657 = vtanh.f32 %v1055_v10  ;;  %v1058_v11 = vadd.f32 %v3236_v4, %v1037_v36  ;;  %v1018_v53 = vrot.slane %v988_v3, %v3050_v41  ;;  %v990_v13 = vcombine.high %v986_v8, %v986_v8 }
 0x52e   :  { %2659 = vtanh.f32 %v1056_v62  ;;  %v1042_v39 = vadd.f32 %v2522_v1, %v1014_v32  ;;  %v1041_v12 = vadd.f32 %v1014_v32, %v400_v30  ;;  %v1061_v61 = vadd.f32 %v3236_v4, %v1040_v37 }
 0x52f   :  { %2661 = vtanh.f32 %v1057_v63  ;;  %v1022_v18 = vrot.slane %v990_v13, %v3050_v41  ;;  %v1059_v37 = vadd.f32 %v3236_v4, %v1038_v33 }
 0x530   :  { %v2525_v2 = vpop.f32.mrb[12].mxu1  ;;  %2663 = vtanh.f32 %v1058_v11  ;;  %v1062_v3 = vadd.f32 %v3236_v4, %v1041_v12  ;;  %v1063_v33 = vadd.f32 %v3236_v4, %v1042_v39 }
 0x531   :  { %v1044_v24 = vadd.f32 %v2525_v2, %v1018_v53  ;;  %v410_v14 = vpop.f32.mrb[13].mxu1  ;;  %2665 = vtanh.f32 %v1060_v38 }
 0x532   :  { %v1043_v29 = vadd.f32 %v1018_v53, %v410_v14  ;;  %2667 = vtanh.f32 %v1061_v61 }
 0x533   :  { %2669 = vtanh.f32 %v1062_v3  ;;  %v1065_v39 = vadd.f32 %v3236_v4, %v1044_v24 }
 0x534   :  { %v2652_v54 = vpop.eup %2651  ;;  %v2528_v8 = vpop.f32.mrb[14].mxu1  ;;  %v1064_v63 = vadd.f32 %v3236_v4, %v1043_v29  ;;  %2671 = vtanh.f32 %v1059_v37 }
 0x535   :  { %v2654_v55 = vpop.eup %2653  ;;  %v1046_v10 = vadd.f32 %v2528_v8, %v1022_v18  ;;  %v420_v45 = vpop.f32.mrb[15].mxu1  ;;  %v1090_v34 = vmul.f32 %v2652_v54, %v3258_v22 }
 0x536   :  { %v1045_v62 = vadd.f32 %v1022_v18, %v420_v45  ;;  %v1089_v36 = vmul.f32 %v2654_v55, %v3258_v22  ;;  %v2656_v1 = vpop.eup %2655  ;;  %2673 = vtanh.f32 %v1064_v63 }
 0x537   :  { %v1108_v32 = vsel %vm90_vm0, %v1090_v34, 0.0  ;;  %v2658_v30 = vpop.eup %2657  ;;  %v1091_v38 = vmul.f32 %v2656_v1, %v3258_v22  ;;  %2675 = vtanh.f32 %v1063_v33 }
 0x538   :  { %1109 = vadd.xlane.f32.xlu1 %v1108_v32  ;;  %v1105_v11 = vsel %vm90_vm0, %v1089_v36, 0.0  ;;  %v2660_v53 = vpop.eup %2659  ;;  %v1066_v2 = vadd.f32 %v3236_v4, %v1045_v62  ;;  %v1092_v3 = vmul.f32 %v2658_v30, %v3258_v22  ;;  %v1067_v36 = vadd.f32 %v3236_v4, %v1046_v10 }
 0x539   :  { %1106 = vadd.xlane.f32.xlu0 %v1105_v11  ;;  %v1093_v12 = vmul.f32 %v2660_v53, %v3258_v22  ;;  %v2662_v13 = vpop.eup %2661  ;;  %v1111_v61 = vsel %vm90_vm0, %v1091_v38, 0.0 }
 0x53a   :  { %v2664_v14 = vpop.eup %2663  ;;  %2677 = vtanh.f32 %v1066_v2  ;;  %v1114_v55 = vsel %vm90_vm0, %v1092_v3, 0.0  ;;  %v1094_v34 = vmul.f32 %v2662_v13, %v3258_v22 }
 0x53b   :  { %v1117_v29 = vsel %vm90_vm0, %v1093_v12, 0.0  ;;  %v2666_v18 = vpop.eup %2665  ;;  %v1095_v37 = vmul.f32 %v2664_v14, %v3258_v22  ;;  %2679 = vtanh.f32 %v1065_v39 }
 0x53c   :  { %1118 = vadd.xlane.f32.xlu1 %v1117_v29  ;;  %v1097_v54 = vmul.f32 %v2666_v18, %v3258_v22  ;;  %v2668_v8 = vpop.eup %2667  ;;  %v1120_v63 = vsel %vm90_vm0, %v1094_v34, 0.0  ;;  %2681 = vtanh.f32 %v1067_v36 }
 0x53d   :  { %1112 = vadd.xlane.f32.xlu0 %v1111_v61  ;;  %v2670_v62 = vpop.eup %2669  ;;  %v1123_v24 = vsel %vm90_vm0, %v1095_v37, 0.0  ;;  %v1098_v32 = vmul.f32 %v2668_v8, %v3258_v22 }
 0x53e   :  { %v1129_v45 = vsel %vm90_vm0, %v1097_v54, 0.0  ;;  %v2672_v1 = vpop.eup %2671  ;;  %v1099_v30 = vmul.f32 %v2670_v62, %v3258_v22 }
 0x53f   :  { %v1132_v53 = vsel %vm90_vm0, %v1098_v32, 0.0  ;;  %v1096_v4 = vmul.f32 %v2672_v1, %v3258_v22 }
 0x540   :  { %1130 = vadd.xlane.f32.xlu1 %v1129_v45  ;;  %v2674_v11 = vpop.eup %2673  ;;  %v1135_v33 = vsel %vm90_vm0, %v1099_v30, 0.0  ;;  %v1173_v30 = vadd.s32 4294967288, %v3025_v57 }
 0x541   :  { %1115 = vadd.xlane.f32.xlu0 %v1114_v55  ;;  %v2676_v38 = vpop.eup %2675  ;;  %v1101_v10 = vmul.f32 %v2674_v11, %v3258_v22  ;;  %v1126_v13 = vsel %vm90_vm0, %v1096_v4, 0.0 }
 0x542   :  { %v1100_v14 = vmul.f32 %v2676_v38, %v3258_v22  ;;  %v3316_v38 = vsub.s32 %v1173_v30, %v3027_v58 }
 0x543   :  { %v1141_v2 = vsel %vm90_vm0, %v1101_v10, 0.0 }
 0x544   :  { %1124 = vadd.xlane.f32.xlu1 %v1123_v24  ;;  %v2678_v12 = vpop.eup %2677  ;;  %v1138_v3 = vsel %vm90_vm0, %v1100_v14, 0.0 }
 0x545   :  { %1121 = vadd.xlane.f32.xlu0 %v1120_v63  ;;  %v1103_v61 = vmul.f32 %v2678_v12, %v3258_v22  ;;  %v2680_v29 = vpop.eup %2679 }
 0x546   :  { %v1102_v54 = vmul.f32 %v2680_v29, %v3258_v22  ;;  %v2682_v39 = vpop.eup %2681 }
 0x547   :  { %v1147_v18 = vsel %vm90_vm0, %v1103_v61, 0.0  ;;  %v1104_v55 = vmul.f32 %v2682_v39, %v3258_v22 }
 0x548   :  { %1136 = vadd.xlane.f32.xlu1 %v1135_v33  ;;  %v1144_v8 = vsel %vm90_vm0, %v1102_v54, 0.0 }
 0x549   :  { %1133 = vadd.xlane.f32.xlu0 %v1132_v53  ;;  %v1150_v45 = vsel %vm90_vm0, %v1104_v55, 0.0 }
 0x54c   :  { %1142 = vadd.xlane.f32.xlu1 %v1141_v2 }
 0x54d   :  { %1127 = vadd.xlane.f32.xlu0 %v1126_v13 }
 0x550   :  { %1148 = vadd.xlane.f32.xlu1 %v1147_v18 }
 0x551   :  { %1139 = vadd.xlane.f32.xlu0 %v1138_v3 }
 0x555   :  { %1145 = vadd.xlane.f32.xlu0 %v1144_v8 }
 0x559   :  { %1151 = vadd.xlane.f32.xlu0 %v1150_v45 }
 0x5c5   :  { %v1110_v34 = vpop.xlane.xlu1 %1109 }
 0x5c6   :  { %v1107_v37 = vpop.xlane.xlu0 %1106  ;;  %v1177_v10 = vrot.slane %v1110_v34, %v3316_v38 }
 0x5c7   :  { %v1172_v12 = vrot.slane %v1107_v37, %v3031_v60 }
 0x5c9   :  { %v3302_v36 = vpop.xlane.xlu1 %1118  ;;  %v1179_v18 = vsel %vm1178_vm10, %v1177_v10, %v1172_v12 }
 0x5ca   :  { %v3300_v62 = vpop.xlane.xlu0 %1112  ;;  %v1192_v58 = vrot.slane %v3302_v36, %v3031_v60 }
 0x5cb   :  { %v1183_v57 = vrot.slane %v3300_v62, %v3031_v60 }
 0x5cd   :  { %v3304_v63 = vpop.xlane.xlu1 %1130 }
 0x5ce   :  { %v1116_v1 = vpop.xlane.xlu0 %1115  ;;  %v1210_v10 = vrot.slane %v3304_v63, %v3031_v60 }
 0x5cf   :  { %v1187_v33 = vrot.slane %v1116_v1, %v3316_v38 }
 0x5d1   :  { %v3308_v32 = vpop.xlane.xlu1 %1124  ;;  %v1188_v61 = vsel %vm1178_vm10, %v1187_v33, %v1183_v57 }
 0x5d2   :  { %v3306_v24 = vpop.xlane.xlu0 %1121  ;;  %v1201_v29 = vrot.slane %v3308_v32, %v3031_v60  ;;  %v1243_v8 = vsel %vm529_vm1, %v1188_v61, %v1179_v18 }
 0x5d3   :  { %v1196_v4 = vrot.slane %v3306_v24, %v3316_v38 }
 0x5d5   :  { %v3313_v11 = vpop.xlane.xlu1 %1136  ;;  %v1197_v3 = vsel %vm1178_vm10, %v1196_v4, %v1192_v58 }
 0x5d6   :  { %v3311_v22 = vpop.xlane.xlu0 %1133  ;;  %v1244_v30 = vsel %vm531_vm2, %v1197_v3, %v1243_v8  ;;  %v1219_v33 = vrot.slane %v3313_v11, %v3031_v60 }
 0x5d7   :  { %v1214_v55 = vrot.slane %v3311_v22, %v3316_v38 }
 0x5d9   :  { %v3331_v2 = vpop.xlane.xlu1 %1142  ;;  %v1215_v61 = vsel %vm1178_vm10, %v1214_v55, %v1210_v10 }
 0x5da   :  { %v3318_v53 = vpop.xlane.xlu0 %1127  ;;  %v1228_v57 = vrot.slane %v3331_v2, %v3031_v60 }
 0x5db   :  { %v1205_v13 = vrot.slane %v3318_v53, %v3316_v38 }
 0x5dd   :  { %v1206_v54 = vsel %vm1178_vm10, %v1205_v13, %v1201_v29  ;;  %v3358_v13 = vpop.xlane.xlu1 %1148 }
 0x5de   :  { %v3333_v14 = vpop.xlane.xlu0 %1139  ;;  %v1245_v12 = vsel %vm533_vm3, %v1206_v54, %v1244_v30  ;;  %v1237_v18 = vrot.slane %v3358_v13, %v3031_v60 }
 0x5df   :  { %v1223_v39 = vrot.slane %v3333_v14, %v3316_v38  ;;  %v1246_v54 = vsel %vm535_vm4, %v1215_v61, %v1245_v12 }
 0x5e1   :  { %v1224_v58 = vsel %vm1178_vm10, %v1223_v39, %v1219_v33 }
 0x5e2   :  { %v3346_v45 = vpop.xlane.xlu0 %1145  ;;  %v1247_v30 = vsel %vm537_vm5, %v1224_v58, %v1246_v54 }
 0x5e3   :  { %v1232_v4 = vrot.slane %v3346_v45, %v3316_v38 }
 0x5e5   :  { %v1233_v3 = vsel %vm1178_vm10, %v1232_v4, %v1228_v57 }
 0x5e6   :  { %v3362_v29 = vpop.xlane.xlu0 %1151  ;;  %v1248_v39 = vsel %vm539_vm6, %v1233_v3, %v1247_v30 }
 0x5e7   :  { %v1241_v8 = vrot.slane %v3362_v29, %v3316_v38 }
 0x5e9   :  { %v1242_v31 = vsel %vm1178_vm10, %v1241_v8, %v1237_v18 }
 0x5ea   :  { %v1249_v55 = vsel %vm541_vm7, %v1242_v31, %v1248_v39 }
 0x5eb   :  { %v1252_v33 = vsel %vm1251_vm11, %v1249_v55, -inf }
 0x5ec   :  { %1253 = vmax.xlane.f32.xlu1 %v1252_v33 }
 0x679   :  { %v1254_v4 = vpop.xlane.xlu1 %1253 }
 0x67a   :  { %v1259_v10 = vrot.slane %v1254_v4, %v3050_v41  ;;  %v1263_v57 = vrot.slane %v1254_v4, %v3053_v42  ;;  %v1267_v12 = vrot.slane %v1254_v4, %v3056_v43  ;;  %v1271_v3 = vrot.slane %v1254_v4, %v3059_v44 }
 0x67c   :  { %v1296_v28 = vsub.f32 %v1107_v37, %v1259_v10  ;;  %v1297_v19 = vsub.f32 %v1110_v34, %v1259_v10  ;;  %v1299_v58 = vsub.f32 %v1116_v1, %v1263_v57  ;;  %v1298_v61 = vsub.f32 %v3300_v62, %v1263_v57 }
 0x67d   :  { %v1301_v31 = vsub.f32 %v3306_v24, %v1267_v12  ;;  %v1300_v30 = vsub.f32 %v3302_v36, %v1267_v12  ;;  %v1275_v37 = vrot.slane %v1254_v4, %v3065_v51  ;;  %v1303_v34 = vsub.f32 %v3318_v53, %v1271_v3 }
 0x67e   :  { %v1312_v18 = vmul.f32 1.442695, %v1296_v28  ;;  %v1314_v8 = vmul.f32 1.442695, %v1297_v19  ;;  %v1318_v54 = vmul.f32 1.442695, %v1299_v58  ;;  %v1302_v62 = vsub.f32 %v3308_v32, %v1271_v3 }
 0x67f   :  { %v1316_v39 = vmul.f32 1.442695, %v1298_v61  ;;  %v1322_v1 = vmul.f32 1.442695, %v1301_v31  ;;  %v1320_v19 = vmul.f32 1.442695, %v1300_v30  ;;  %v1279_v28 = vrot.slane %v1254_v4, %v3069_v56 }
 0x680   :  { %2683 = vpow2.f32 %v1312_v18  ;;  %v1305_v24 = vsub.f32 %v3311_v22, %v1275_v37  ;;  %v1326_v55 = vmul.f32 1.442695, %v1303_v34  ;;  %v1304_v36 = vsub.f32 %v3304_v63, %v1275_v37 }
 0x681   :  { %2685 = vpow2.f32 %v1314_v8  ;;  %v1324_v33 = vmul.f32 1.442695, %v1302_v62  ;;  %v1283_v32 = vrot.slane %v1254_v4, %v3073_v59  ;;  %v1307_v53 = vsub.f32 %v3333_v14, %v1279_v28 }
 0x682   :  { %2687 = vpow2.f32 %v1318_v54  ;;  %v1330_v12 = vmul.f32 1.442695, %v1305_v24  ;;  %v1306_v22 = vsub.f32 %v3313_v11, %v1279_v28  ;;  %v1328_v63 = vmul.f32 1.442695, %v1304_v36 }
 0x683   :  { %2689 = vpow2.f32 %v1316_v39  ;;  %v1287_v18 = vrot.slane %v1254_v4, %v3077_v6  ;;  %v1309_v8 = vsub.f32 %v3346_v45, %v1283_v32  ;;  %v1334_v14 = vmul.f32 1.442695, %v1307_v53 }
 0x684   :  { %2691 = vpow2.f32 %v1322_v1  ;;  %v1308_v3 = vsub.f32 %v3331_v2, %v1283_v32  ;;  %v1332_v11 = vmul.f32 1.442695, %v1306_v22 }
 0x685   :  { %2693 = vpow2.f32 %v1320_v19  ;;  %v1311_v30 = vsub.f32 %v3362_v29, %v1287_v18  ;;  %v1338_v4 = vmul.f32 1.442695, %v1309_v8  ;;  %v1310_v45 = vsub.f32 %v3358_v13, %v1287_v18 }
 0x686   :  { %2695 = vpow2.f32 %v1326_v55  ;;  %v1336_v39 = vmul.f32 1.442695, %v1308_v3 }
 0x687   :  { %2697 = vpow2.f32 %v1324_v33  ;;  %v1342_v34 = vmul.f32 1.442695, %v1311_v30  ;;  %v1340_v29 = vmul.f32 1.442695, %v1310_v45 }
 0x688   :  { %2699 = vpow2.f32 %v1330_v12 }
 0x689   :  { %2701 = vpow2.f32 %v1328_v63 }
 0x68a   :  { %v3388_v10 = vpop.eup %2683  ;;  %2703 = vpow2.f32 %v1334_v14 }
 0x68b   :  { %v3390_v57 = vpop.eup %2685  ;;  %1361 = vperm.xlu0 %2596, %v3388_v10   ;;  %2705 = vpow2.f32 %v1332_v11 }
 0x68c   :  { %1364 = vperm.xlu1 %2595, %v3390_v57   ;;  %v3397_v58 = vpop.eup %2687  ;;  %2707 = vpow2.f32 %v1338_v4 }
 0x68d   :  { %v3399_v61 = vpop.eup %2689  ;;  %2709 = vpow2.f32 %v1336_v39 }
 0x68e   :  { %v3406_v31 = vpop.eup %2691  ;;  %2711 = vpow2.f32 %v1342_v34 }
 0x68f   :  { %1370 = vperm.xlu0 %2596, %v3397_v58   ;;  %v3408_v54 = vpop.eup %2693  ;;  %2713 = vpow2.f32 %v1340_v29 }
 0x690   :  { %1367 = vperm.xlu1 %2595, %v3399_v61   ;;  %v3414_v37 = vpop.eup %2695 }
 0x691   :  { %v3416_v2 = vpop.eup %2697 }
 0x692   :  { %v3420_v1 = vpop.eup %2699 }
 0x693   :  { %1376 = vperm.xlu0 %2596, %v3406_v31   ;;  %v3422_v62 = vpop.eup %2701 }
 0x694   :  { %1373 = vperm.xlu1 %2595, %v3408_v54   ;;  %v3426_v13 = vpop.eup %2703 }
 0x695   :  { %v3428_v19 = vpop.eup %2705 }
 0x696   :  { %v3432_v28 = vpop.eup %2707 }
 0x697   :  { %1382 = vperm.xlu0 %2596, %v3414_v37   ;;  %v3434_v24 = vpop.eup %2709 }
 0x698   :  { %1379 = vperm.xlu1 %2595, %v3416_v2   ;;  %v3438_v55 = vpop.eup %2711 }
 0x699   :  { %v2714_v36 = vpop.eup %2713 }
 0x69b   :  { %1388 = vperm.xlu0 %2596, %v3420_v1  }
 0x69c   :  { %1385 = vperm.xlu1 %2595, %v3422_v62  }
 0x69f   :  { %1394 = vperm.xlu0 %2596, %v3426_v13  }
 0x6a0   :  { %1391 = vperm.xlu1 %2595, %v3428_v19  }
 0x6a3   :  { %1400 = vperm.xlu0 %2596, %v3432_v28  }
 0x6a4   :  { %1397 = vperm.xlu1 %2595, %v3434_v24  }
 0x6a7   :  { %1406 = vperm.xlu0 %2596, %v3438_v55  }
 0x6a8   :  { %1403 = vperm.xlu1 %2595, %v2714_v36  }
 0x70a   :  { %v1362_v33 = vpop.permute.xlu0 %1361 }
 0x70b   :  { %v1365_v32 = vpop.permute.xlu1 %1364  ;;  %v1411_v23 = vrot.slane %v1362_v33, %v3031_v60 }
 0x70c   :  { %v1415_v29 = vrot.slane %v1365_v32, %v3316_v38 }
 0x70e   :  { %v1371_v53 = vpop.permute.xlu0 %1370 }
 0x70f   :  { %v1368_v12 = vpop.permute.xlu1 %1367  ;;  %v1424_v30 = vrot.slane %v1371_v53, %v3316_v38 }
 0x710   :  { %v1420_v11 = vrot.slane %v1368_v12, %v3031_v60 }
 0x712   :  { %v1377_v22 = vpop.permute.xlu0 %1376  ;;  %v1425_v53 = vsel %vm1178_vm10, %v1424_v30, %v1420_v11 }
 0x713   :  { %v1374_v63 = vpop.permute.xlu1 %1373  ;;  %v1433_v39 = vrot.slane %v1377_v22, %v3316_v38 }
 0x714   :  { %v1429_v45 = vrot.slane %v1374_v63, %v3031_v60 }
 0x716   :  { %v1383_v18 = vpop.permute.xlu0 %1382  ;;  %v1434_v0 = vsel %vm1178_vm10, %v1433_v39, %v1429_v45 }
 0x717   :  { %v1380_v8 = vpop.permute.xlu1 %1379  ;;  %v1442_v21 = vrot.slane %v1383_v18, %v3316_v38 }
 0x718   :  { %v1438_v25 = vrot.slane %v1380_v8, %v3031_v60  ;;  %v1416_v8 = vsel %vm1178_vm10, %v1415_v29, %v1411_v23 }
 0x71a   :  { %v1389_v14 = vpop.permute.xlu0 %1388  ;;  %v1443_v18 = vsel %vm1178_vm10, %v1442_v21, %v1438_v25 }
 0x71b   :  { %v1386_v3 = vpop.permute.xlu1 %1385  ;;  %v1451_v12 = vrot.slane %v1389_v14, %v3316_v38  ;;  %v1480_v14 = vsel %vm529_vm1, %v1425_v53, %v1416_v8 }
 0x71c   :  { %v1447_v15 = vrot.slane %v1386_v3, %v3031_v60  ;;  %v1481_v30 = vsel %vm531_vm2, %v1434_v0, %v1480_v14 }
 0x71d   :  { %v1482_v45 = vsel %vm533_vm3, %v1443_v18, %v1481_v30 }
 0x71e   :  { %v1395_v4 = vpop.permute.xlu0 %1394  ;;  %v1452_v11 = vsel %vm1178_vm10, %v1451_v12, %v1447_v15 }
 0x71f   :  { %v1392_v34 = vpop.permute.xlu1 %1391  ;;  %v1460_v63 = vrot.slane %v1395_v4, %v3316_v38  ;;  %v1483_v21 = vsel %vm535_vm4, %v1452_v11, %v1482_v45 }
 0x720   :  { %v1456_v17 = vrot.slane %v1392_v34, %v3031_v60 }
 0x722   :  { %v1401_v22 = vpop.permute.xlu0 %1400  ;;  %v1461_v4 = vsel %vm1178_vm10, %v1460_v63, %v1456_v17 }
 0x723   :  { %v1398_v32 = vpop.permute.xlu1 %1397  ;;  %v1469_v33 = vrot.slane %v1401_v22, %v3316_v38  ;;  %v1484_v29 = vsel %vm537_vm5, %v1461_v4, %v1483_v21  ;;  %v1719_v21 = vld [vmem:[#allocation7 + $0x28] sm:$0xff] }
 0x724   :  { %v1465_v3 = vrot.slane %v1398_v32, %v3031_v60 }
 0x726   :  { %v1407_v34 = vpop.permute.xlu0 %1406  ;;  %v1470_v39 = vsel %vm1178_vm10, %v1469_v33, %v1465_v3 }
 0x727   :  { %v1404_v22 = vpop.permute.xlu1 %1403  ;;  %v1478_v23 = vrot.slane %v1407_v34, %v3316_v38  ;;  %v1485_v0 = vsel %vm539_vm6, %v1470_v39, %v1484_v29 }
 0x728   :  { %v1474_v25 = vrot.slane %v1404_v22, %v3031_v60 }
 0x72a   :  { %v1479_v15 = vsel %vm1178_vm10, %v1478_v23, %v1474_v25  ;;  %v1718_v23 = vld [vmem:[#allocation7 + $0x18] sm:$0xff] }
 0x72b   :  { %v1486_v17 = vsel %vm541_vm7, %v1479_v15, %v1485_v0 }
 0x72c   :  { %v1488_v12 = vsel %vm1251_vm11, %v1486_v17, 0.0 }
 0x72d   :  { %1489 = vadd.xlane.f32.xlu1 %v1488_v12 }
 0x7ba   :  { %v1490_v53 = vpop.xlane.xlu1 %1489 }
 0x7bb   :  { %2715 = vrcp.f32 %v1490_v53 }
 0x7c5   :  { %v2716_v63 = vpop.eup %2715 }
 0x7c6   :  { %v1512_v38 = vrot.slane %v2716_v63, %v3065_v51  ;;  %v1496_v32 = vrot.slane %v2716_v63, %v3050_v41  ;;  %v1524_v18 = vrot.slane %v2716_v63, %v3077_v6  ;;  %v1500_v11 = vrot.slane %v2716_v63, %v3053_v42 }
 0x7c8   :  { %v1542_v33 = vmul.f32 %v3420_v1, %v1512_v38  ;;  %v1533_v8 = vmul.f32 %v3388_v10, %v1496_v32  ;;  %v1547_v3 = vmul.f32 %v2714_v36, %v1524_v18  ;;  %v1534_v14 = vmul.f32 %v3390_v57, %v1496_v32 }
 0x7c9   :  { %v1535_v30 = vmul.f32 %v3399_v61, %v1500_v11  ;;  %v1536_v4 = vmul.f32 %v3397_v58, %v1500_v11  ;;  %v1504_v1 = vrot.slane %v2716_v63, %v3056_v43  ;;  %v1508_v36 = vrot.slane %v2716_v63, %v3059_v44  ;;  %v2751_v11 = vld [vmem:[#allocation5] sm:$0xff] }
 0x7ca   :  { %1596 = vperm.xlu1 %2595, %v1542_v33   ;;  %1551 = vperm.xlu0 %2596, %v1533_v8   ;;  %v1541_v61 = vmul.f32 %v3422_v62, %v1512_v38  ;;  %v1516_v58 = vrot.slane %v2716_v63, %v3069_v56  ;;  %v1717_v62 = vld [vmem:[#allocation7 + $0x8] sm:$0xff] }
 0x7cb   :  { %v1537_v10 = vmul.f32 %v3408_v54, %v1504_v1  ;;  %v1538_v34 = vmul.f32 %v3406_v31, %v1504_v1  ;;  %v1539_v57 = vmul.f32 %v3416_v2, %v1508_v36  ;;  %v1540_v45 = vmul.f32 %v3414_v37, %v1508_v36 }
 0x7cc   :  { %v1543_v39 = vmul.f32 %v3428_v19, %v1516_v58  ;;  %v1544_v54 = vmul.f32 %v3426_v13, %v1516_v58  ;;  %v1520_v31 = vrot.slane %v2716_v63, %v3073_v59  ;;  %v1548_v37 = vmul.f32 %v3438_v55, %v1524_v18  ;;  %v1720_v19 = vld [vmem:[#allocation7 + $0x38] sm:$0xff] }
 0x7cd   :  { %v2574_v25 = vpack.c.bf16 %v1718_v23, %v1717_v62  ;;  %v2577_v29 = vpack.c.bf16 %v1720_v19, %v1719_v21  ;;  %v3689_v13 = vmov 0.0|0.0  }
 0x7ce   :  { %1621 = vperm.xlu1 %2595, %v1547_v3   ;;  %1556 = vperm.xlu0 %2596, %v1534_v14   ;;  %v1545_v22 = vmul.f32 %v3434_v24, %v1520_v31  ;;  %v1546_v2 = vmul.f32 %v3432_v28, %v1520_v31 }
 0x7cf   :  { %2575 = vmatpush3.bf16.msra.mxu0 %v2574_v25 }
 0x7d0   :  { %2576 = vmatprep.subr.bf16.mxu0 %v3689_v13 }
 0x7d2   :  { %1561 = vperm.xlu0 %2596, %v1535_v30  }
 0x7d3   :  { %2578 = vmatpush3.bf16.msra.mxu0 %v2577_v29 }
 0x7d6   :  { %1566 = vperm.xlu0 %2596, %v1536_v4  }
 0x7da   :  { %1571 = vperm.xlu0 %2596, %v1537_v10  }
 0x7de   :  { %1576 = vperm.xlu0 %2596, %v1538_v34  }
 0x7e2   :  { %1581 = vperm.xlu0 %2596, %v1539_v57  }
 0x7e6   :  { %1586 = vperm.xlu0 %2596, %v1540_v45  }
 0x7ea   :  { %1591 = vperm.xlu0 %2596, %v1541_v61  }
 0x7ee   :  { %1601 = vperm.xlu0 %2596, %v1543_v39  }
 0x7f2   :  { %1606 = vperm.xlu0 %2596, %v1544_v54  }
 0x7f6   :  { %1611 = vperm.xlu0 %2596, %v1545_v22  }
 0x7fa   :  { %1616 = vperm.xlu0 %2596, %v1546_v2  }
 0x7fe   :  { %1626 = vperm.xlu0 %2596, %v1548_v37  }
 0x849   :  { %v1552_v15 = vpop.permute.xlu0 %1551  ;;  %v1597_v32 = vpop.permute.xlu1 %1596 }
 0x84a   :  { %v1629_v30 = vmul.f32 %v2751_v11, %v1552_v15 }
 0x84d   :  { %v1557_v0 = vpop.permute.xlu0 %1556 }
 0x84e   :  { %v1630_v33 = vmul.f32 %v1557_v0, %v3153_v9 }
 0x850   :  { %v1646_v9 = vsel %vm90_vm0, %v1630_v33, 0.0 }
 0x851   :  { %v1562_v24 = vpop.permute.xlu0 %1561 }
 0x852   :  { %v1631_v8 = vmul.f32 %v1562_v24, %v3156_v20 }
 0x854   :  { %v1654_v20 = vsel %vm90_vm0, %v1631_v8, 0.0 }
 0x855   :  { %v1567_v17 = vpop.permute.xlu0 %1566 }
 0x856   :  { %v1632_v55 = vmul.f32 %v1567_v17, %v3166_v26 }
 0x858   :  { %v1655_v4 = vsel %vm90_vm0, %v1632_v55, 0.0 }
 0x859   :  { %v1572_v12 = vpop.permute.xlu0 %1571 }
 0x85a   :  { %v1633_v3 = vmul.f32 %v1572_v12, %v3168_v16  ;;  %v1656_v16 = vadd.f32 %v1655_v4, %v1654_v20 }
 0x85c   :  { %v1663_v34 = vsel %vm90_vm0, %v1633_v3, 0.0  ;;  %v1657_v31 = vrot.slane %v1656_v16, 4 }
 0x85d   :  { %v1577_v28 = vpop.permute.xlu0 %1576 }
 0x85e   :  { %v1634_v38 = vmul.f32 %v1577_v28, %v3176_v27  ;;  %v1638_v27 = vmul.f32 %v1597_v32, %v3197_v48  ;;  %v1658_v29 = vadd.f32 %v1657_v31, %v1656_v16 }
 0x860   :  { %v1664_v10 = vsel %vm90_vm0, %v1634_v38, 0.0  ;;  %v1682_v48 = vsel %vm90_vm0, %v1638_v27, 0.0 }
 0x861   :  { %v1582_v53 = vpop.permute.xlu0 %1581  ;;  %v1665_v45 = vadd.f32 %v1664_v10, %v1663_v34 }
 0x862   :  { %v1635_v1 = vmul.f32 %v1582_v53, %v3180_v46  ;;  %v1645_v46 = vsel %vm90_vm0, %v1629_v30, 0.0  ;;  %v1622_v53 = vpop.permute.xlu1 %1621 }
 0x863   :  { %v1647_v61 = vadd.f32 %v1646_v9, %v1645_v46  ;;  %v1666_v2 = vrot.slane %v1665_v45, 4 }
 0x865   :  { %v1587_v63 = vpop.permute.xlu0 %1586  ;;  %v1648_v62 = vrot.slane %v1647_v61, 4  ;;  %v1667_v0 = vadd.f32 %v1666_v2, %v1665_v45 }
 0x866   :  { %v1636_v18 = vmul.f32 %v1587_v63, %v3189_v47  ;;  %v1659_v63 = vrot.slane %v1658_v29, 2 }
 0x867   :  { %v1649_v24 = vadd.f32 %v1648_v62, %v1647_v61  ;;  %v1668_v38 = vrot.slane %v1667_v0, 2 }
 0x868   :  { %v1673_v47 = vsel %vm90_vm0, %v1636_v18, 0.0  ;;  %v1643_v18 = vmul.f32 %v1622_v53, %v3215_v50  ;;  %v1660_v30 = vadd.f32 %v1659_v63, %v1658_v29  ;;  %v2433_v63 = vld [vmem:[%s3666_s3 + $0x2] ss:$0 sm:$0xff] }
 0x869   :  { %v1592_v14 = vpop.permute.xlu0 %1591  ;;  %v1650_v33 = vrot.slane %v1649_v24, 2  ;;  %1928 = vrot.lane.b32.xlu1 %v2433_v63, %s2863_s10 }
 0x86a   :  { %v1637_v26 = vmul.f32 %v1592_v14, %v3191_v35  ;;  %v1672_v35 = vsel %vm90_vm0, %v1635_v1, 0.0  ;;  %v1661_v16 = vrot.slane %v1660_v30, 1 }
 0x86b   :  { %v1674_v58 = vadd.f32 %v1673_v47, %v1672_v35  ;;  %v1651_v10 = vadd.f32 %v1650_v33, %v1649_v24 }
 0x86c   :  { %v1681_v36 = vsel %vm90_vm0, %v1637_v26, 0.0  ;;  %v1669_v26 = vadd.f32 %v1668_v38, %v1667_v0  ;;  %v3690_v38 = vld [vmem:[#allocation20_spill] sm:$0xff] }
 0x86d   :  { %v1602_v57 = vpop.permute.xlu0 %1601  ;;  %v1683_v39 = vadd.f32 %v1682_v48, %v1681_v36  ;;  %v1675_v23 = vrot.slane %v1674_v58, 4  ;;  %v1652_v45 = vrot.slane %v1651_v10, 1 }
 0x86e   :  { %v1639_v54 = vmul.f32 %v1602_v57, %v3199_v7  ;;  %v1670_v46 = vrot.slane %v1669_v26, 1 }
 0x86f   :  { %v1684_v21 = vrot.slane %v1683_v39, 4  ;;  %v1676_v17 = vadd.f32 %v1675_v23, %v1674_v58  ;;  %v1653_v2 = vadd.f32 %v1652_v45, %v1651_v10  ;;  %v3691_v45 = vld [vmem:[#allocation13_spill] sm:$0xff] }
 0x870   :  { %v1690_v25 = vsel %vm90_vm0, %v1639_v54, 0.0 }
 0x871   :  { %v1607_v22 = vpop.permute.xlu0 %1606  ;;  %v1685_v7 = vadd.f32 %v1684_v21, %v1683_v39  ;;  %v1677_v8 = vrot.slane %v1676_v17, 2  ;;  %v1662_v39 = vadd.f32 %v1661_v16, %v1660_v30 }
 0x872   :  { %v1640_v37 = vmul.f32 %v1607_v22, %v3205_v40  ;;  %v1671_v22 = vadd.f32 %v1670_v46, %v1669_v26 }
 0x873   :  { %v1686_v3 = vrot.slane %v1685_v7, 2  ;;  %v1678_v9 = vadd.f32 %v1677_v8, %v1676_v17 }
 0x874   :  { %v1691_v19 = vsel %vm90_vm0, %v1640_v37, 0.0 }
 0x875   :  { %v1692_v13 = vadd.f32 %v1691_v19, %v1690_v25  ;;  %v1612_v15 = vpop.permute.xlu0 %1611  ;;  %v1687_v47 = vadd.f32 %v1686_v3, %v1685_v7  ;;  %v1679_v35 = vrot.slane %v1678_v9, 1  ;;  %v1729_v25 = vsel %vm529_vm1, %v1662_v39, %v1653_v2 }
 0x876   :  { %v1641_v28 = vmul.f32 %v1612_v15, %v3207_v49 }
 0x877   :  { %v1693_v12 = vrot.slane %v1692_v13, 4  ;;  %v1688_v58 = vrot.slane %v1687_v47, 1  ;;  %v1680_v37 = vadd.f32 %v1679_v35, %v1678_v9 }
 0x878   :  { %v1699_v14 = vsel %vm90_vm0, %v1641_v28, 0.0 }
 0x879   :  { %v1694_v40 = vadd.f32 %v1693_v12, %v1692_v13  ;;  %v1617_v55 = vpop.permute.xlu0 %1616  ;;  %v1689_v21 = vadd.f32 %v1688_v58, %v1687_v47  ;;  %v1730_v13 = vsel %vm531_vm2, %v1671_v22, %v1729_v25 }
 0x87a   :  { %v1642_v32 = vmul.f32 %v1617_v55, %v3213_v5  ;;  %v1708_v5 = vsel %vm90_vm0, %v1643_v18, 0.0  ;;  %v1731_v0 = vsel %vm533_vm3, %v1680_v37, %v1730_v13  ;;  %v3694_v37 = vld [vmem:[#allocation17_spill] sm:$0xff] }
 0x87b   :  { %v1695_v4 = vrot.slane %v1694_v40, 2  ;;  %v1732_v17 = vsel %vm535_vm4, %v1689_v21, %v1731_v0 }
 0x87c   :  { %v1700_v11 = vsel %vm90_vm0, %v1642_v32, 0.0 }
 0x87d   :  { %v1701_v1 = vadd.f32 %v1700_v11, %v1699_v14  ;;  %v1627_v49 = vpop.permute.xlu0 %1626  ;;  %v1696_v34 = vadd.f32 %v1695_v4, %v1694_v40 }
 0x87e   :  { %v1644_v27 = vmul.f32 %v1627_v49, %v3221_v52 }
 0x87f   :  { %v1702_v20 = vrot.slane %v1701_v1, 4  ;;  %v1697_v52 = vrot.slane %v1696_v34, 1 }
 0x880   :  { %v1709_v50 = vsel %vm90_vm0, %v1644_v27, 0.0 }
 0x881   :  { %v1703_v36 = vadd.f32 %v1702_v20, %v1701_v1  ;;  %v1710_v57 = vadd.f32 %v1709_v50, %v1708_v5  ;;  %v1698_v19 = vadd.f32 %v1697_v52, %v1696_v34 }
 0x883   :  { %v1704_v48 = vrot.slane %v1703_v36, 2  ;;  %v1711_v61 = vrot.slane %v1710_v57, 4  ;;  %v1733_v7 = vsel %vm537_vm5, %v1698_v19, %v1732_v17  ;;  %v3695_v19 = vld [vmem:[#allocation16_spill] sm:$0xff] }
 0x885   :  { %v1705_v54 = vadd.f32 %v1704_v48, %v1703_v36  ;;  %v1712_v31 = vadd.f32 %v1711_v61, %v1710_v57  ;;  %v2434_v36 = vld [vmem:[%s3667_s4 + $0x2] ss:$0 sm:$0xff]  ;;  %v3692_v61 = vld [vmem:[#allocation12_spill] sm:$0xff]  ;;  %s2868_s4 = smov 96  }
 0x887   :  { %v1706_v62 = vrot.slane %v1705_v54, 1  ;;  %v1713_v23 = vrot.slane %v1712_v31, 2 }
 0x889   :  { %v1714_v29 = vadd.f32 %v1713_v23, %v1712_v31  ;;  %v1707_v15 = vadd.f32 %v1706_v62, %v1705_v54  ;;  %v3693_v31 = vld [vmem:[#allocation15_spill] sm:$0xff] }
 0x88b   :  { %v1715_v24 = vrot.slane %v1714_v29, 1  ;;  %v1734_v28 = vsel %vm539_vm6, %v1707_v15, %v1733_v7  ;;  %v3696_v15 = vld [vmem:[#allocation14_spill] sm:$0xff] }
 0x88c   :  { %v3697_v7 = vld [vmem:[#allocation18_spill] sm:$0xff] }
 0x88d   :  { %v1716_v12 = vadd.f32 %v1715_v24, %v1714_v29 }
 0x88f   :  { %v3535_v53 = vsel %vm541_vm7, %v1716_v12, %v1734_v28 }
 0x890   :  { %2549 = vmatmul.mubr.msk.f32.vlgmr.msra.gmra.mrb[10].mxu0 %vm90_vm0, %v3535_v53 }
 0x8db   :  { %v1929_v57 = vpop.permute.xlu1 %1928 }
 0x963   :  { %v1804_v40 = vpop.f32.mrb[10].mxu0 }
 0x964   :  { %v1809_v55 = vcombine.high %v1804_v40, %v1804_v40  ;;  %v1816_v32 = vrot.slane %v1804_v40, %v3690_v38  ;;  %v2550_v33 = vpop.f32.mrb[11].mxu0  ;;  %v3698_v40 = vld [vmem:[#allocation19_spill] sm:$0xff] }
 0x966   :  { %v1823_v8 = vrot.slane %v1809_v55, %v3690_v38  ;;  %v1824_v18 = vcombine.high %v1816_v32, %v1816_v32  ;;  %v1832_v3 = vrot.slane %v1816_v32, %v3690_v38 }
 0x968   :  { %v1846_v14 = vrot.slane %v1824_v18, %v3690_v38  ;;  %v1825_v11 = vcombine.high %v1823_v8, %v1823_v8  ;;  %v1854_v30 = vcombine.high %v1832_v3, %v1832_v3  ;;  %v1861_v4 = vrot.slane %v1832_v3, %v3050_v41 }
 0x969   :  { %v1839_v1 = vrot.slane %v1823_v8, %v3690_v38 }
 0x96a   :  { %v1865_v49 = vrot.slane %v1846_v14, %v3050_v41  ;;  %1890 = vrot.lane.b32.xlu1 %v1861_v4, %s2863_s10  ;;  %v1869_v26 = vrot.slane %v1854_v30, %v3050_v41  ;;  %v1853_v27 = vrot.slane %v1825_v11, %v3690_v38  ;;  %v1856_v10 = vcombine.high %v1846_v14, %v1846_v14 }
 0x96b   :  { %v1877_v9 = vrot.slane %v1839_v1, %v3050_v41  ;;  %v1855_v47 = vcombine.high %v1839_v1, %v1839_v1 }
 0x96c   :  { %1892 = vrot.lane.b32.xlu0 %v1865_v49, %s2863_s10  ;;  %v1881_v20 = vrot.slane %v1853_v27, %v3050_v41  ;;  %v1857_v5 = vcombine.high %v1853_v27, %v1853_v27  ;;  %v1873_v50 = vrot.slane %v1856_v10, %v3050_v41 }
 0x96d   :  { %v1885_v34 = vrot.slane %v1855_v47, %v3050_v41 }
 0x96e   :  { %1894 = vrot.lane.b32.xlu1 %v1869_v26, %s2863_s10  ;;  %v1889_v16 = vrot.slane %v1857_v5, %v3050_v41 }
 0x970   :  { %1898 = vrot.lane.b32.xlu0 %v1877_v9, %s2863_s10 }
 0x972   :  { %1900 = vrot.lane.b32.xlu1 %v1881_v20, %s2863_s10 }
 0x974   :  { %1896 = vrot.lane.b32.xlu0 %v1873_v50, %s2863_s10 }
 0x976   :  { %1904 = vrot.lane.b32.xlu1 %v1889_v16, %s2863_s10 }
 0x978   :  { %1902 = vrot.lane.b32.xlu0 %v1885_v34, %s2863_s10 }
 0x97c   :  { %1953 = vrot.lane.b32.xlu0 %v2434_v36, %s2863_s10 }
 0x9dc   :  { %v1891_v46 = vpop.permute.xlu1 %1890 }
 0x9dd   :  { %v1914_v35 = vadd.f32 %v1891_v46, %v3691_v45 }
 0x9de   :  { %v1893_v48 = vpop.permute.xlu0 %1892 }
 0x9df   :  { %v1915_v58 = vadd.f32 %v3692_v61, %v1893_v48  ;;  %v1931_v39 = vadd.f32 %v1929_v57, %v1914_v35 }
 0x9e0   :  { %v1895_v54 = vpop.permute.xlu1 %1894 }
 0x9e1   :  { %v1932_v52 = vadd.f32 %v1929_v57, %v1915_v58  ;;  %v1916_v22 = vadd.f32 %v1895_v54, %v3693_v31 }
 0x9e2   :  { %v1899_v2 = vpop.permute.xlu0 %1898 }
 0x9e3   :  { %2717 = vtanh.f32 %v1932_v52  ;;  %v1918_v62 = vadd.f32 %v1899_v2, %v3694_v37  ;;  %v1933_v23 = vadd.f32 %v1929_v57, %v1916_v22 }
 0x9e4   :  { %2719 = vtanh.f32 %v1931_v39  ;;  %v1901_v21 = vpop.permute.xlu1 %1900 }
 0x9e5   :  { %2721 = vtanh.f32 %v1933_v23  ;;  %v1935_v25 = vadd.f32 %v1929_v57, %v1918_v62  ;;  %v1919_v29 = vadd.f32 %v3695_v19, %v1901_v21 }
 0x9e6   :  { %v1897_v13 = vpop.permute.xlu0 %1896 }
 0x9e7   :  { %v1917_v0 = vadd.f32 %v3696_v15, %v1897_v13  ;;  %v1936_v24 = vadd.f32 %v1929_v57, %v1919_v29  ;;  %2723 = vtanh.f32 %v1935_v25 }
 0x9e8   :  { %v1905_v12 = vpop.permute.xlu1 %1904 }
 0x9e9   :  { %v1934_v17 = vadd.f32 %v1929_v57, %v1917_v0  ;;  %v1921_v28 = vadd.f32 %v3697_v7, %v1905_v12 }
 0x9ea   :  { %v1903_v63 = vpop.permute.xlu0 %1902 }
 0x9eb   :  { %2725 = vtanh.f32 %v1934_v17  ;;  %v1920_v55 = vadd.f32 %v1903_v63, %v3698_v40  ;;  %v1938_v32 = vadd.f32 %v1929_v57, %v1921_v28 }
 0x9ec   :  { %2727 = vtanh.f32 %v1936_v24 }
 0x9ed   :  { %v2718_v38 = vpop.eup %2717  ;;  %v1937_v33 = vadd.f32 %v1929_v57, %v1920_v55 }
 0x9ee   :  { %v2720_v8 = vpop.eup %2719  ;;  %v1954_v18 = vpop.permute.xlu0 %1953 }
 0x9ef   :  { %2729 = vtanh.f32 %v1937_v33  ;;  %v1957_v3 = vmul.f32 %v2718_v38, %v1954_v18  ;;  %v1956_v14 = vmul.f32 %v2720_v8, %v1954_v18  ;;  %v2722_v11 = vpop.eup %2721 }
 0x9f0   :  { %2731 = vtanh.f32 %v1938_v32  ;;  %v1958_v30 = vmul.f32 %v2722_v11, %v1954_v18 }
 0x9f1   :  { %1974 = vrot.lane.b32.xlu0 %v1957_v3, %s2868_s4  ;;  %1972 = vrot.lane.b32.xlu1 %v1956_v14, %s2868_s4  ;;  %v2724_v4 = vpop.eup %2723 }
 0x9f2   :  { %v1960_v27 = vmul.f32 %v2724_v4, %v1954_v18 }
 0x9f5   :  { %v2726_v1 = vpop.eup %2725  ;;  %1976 = vrot.lane.b32.xlu1 %v1958_v30, %s2868_s4 }
 0x9f6   :  { %v1959_v49 = vmul.f32 %v2726_v1, %v1954_v18  ;;  %v2728_v26 = vpop.eup %2727 }
 0x9f7   :  { %v1961_v9 = vmul.f32 %v2728_v26, %v1954_v18 }
 0x9f8   :  { %1978 = vrot.lane.b32.xlu0 %v1959_v49, %s2868_s4 }
 0x9f9   :  { %v2730_v10 = vpop.eup %2729  ;;  %1980 = vrot.lane.b32.xlu1 %v1960_v27, %s2868_s4 }
 0x9fa   :  { %v1962_v20 = vmul.f32 %v2730_v10, %v1954_v18  ;;  %v2732_v5 = vpop.eup %2731 }
 0x9fb   :  { %v1963_v47 = vmul.f32 %v2732_v5, %v1954_v18 }
 0x9fc   :  { %1982 = vrot.lane.b32.xlu0 %v1961_v9, %s2868_s4 }
 0x9fd   :  { %1984 = vrot.lane.b32.xlu1 %v1962_v20, %s2868_s4 }
 0xa00   :  { %1986 = vrot.lane.b32.xlu0 %v1963_v47, %s2868_s4 }
 0xa63   :  { %v1975_v50 = vpop.permute.xlu0 %1974  ;;  %v1973_v16 = vpop.permute.xlu1 %1972 }
 0xa64   :  { %v1999_v34 = vsel %vm90_vm0, %v1975_v50, 0.0  ;;  %v1996_v36 = vsel %vm90_vm0, %v1973_v16, 0.0 }
 0xa65   :  { %2000 = vadd.xlane.f32.xlu0 %v1999_v34  ;;  %1997 = vadd.xlane.f32.xlu1 %v1996_v36 }
 0xa67   :  { %v1977_v57 = vpop.permute.xlu1 %1976 }
 0xa68   :  { %v2002_v46 = vsel %vm90_vm0, %v1977_v57, 0.0 }
 0xa69   :  { %2003 = vadd.xlane.f32.xlu0 %v2002_v46 }
 0xa6a   :  { %v1979_v45 = vpop.permute.xlu0 %1978 }
 0xa6b   :  { %v2005_v35 = vsel %vm90_vm0, %v1979_v45, 0.0  ;;  %v1981_v48 = vpop.permute.xlu1 %1980 }
 0xa6c   :  { %v2008_v61 = vsel %vm90_vm0, %v1981_v48, 0.0 }
 0xa6d   :  { %2006 = vadd.xlane.f32.xlu0 %v2005_v35  ;;  %2009 = vadd.xlane.f32.xlu1 %v2008_v61 }
 0xa6e   :  { %v1983_v58 = vpop.permute.xlu0 %1982 }
 0xa6f   :  { %v2011_v39 = vsel %vm90_vm0, %v1983_v58, 0.0  ;;  %v1985_v52 = vpop.permute.xlu1 %1984 }
 0xa70   :  { %v2014_v54 = vsel %vm90_vm0, %v1985_v52, 0.0 }
 0xa71   :  { %2012 = vadd.xlane.f32.xlu0 %v2011_v39  ;;  %2015 = vadd.xlane.f32.xlu1 %v2014_v54 }
 0xa72   :  { %v1987_v31 = vpop.permute.xlu0 %1986 }
 0xa73   :  { %v2017_v22 = vsel %vm90_vm0, %v1987_v31, 0.0 }
 0xa75   :  { %2018 = vadd.xlane.f32.xlu0 %v2017_v22 }
 0xaf2   :  { %v2001_v2 = vpop.xlane.xlu0 %2000  ;;  %v1998_v37 = vpop.xlane.xlu1 %1997 }
 0xaf3   :  { %v2035_v23 = vrot.slane %v2001_v2, %v3031_v60  ;;  %v2031_v21 = vrot.slane %v1998_v37, %v3031_v60 }
 0xaf5   :  { %v2060_v13 = vsel %vm529_vm1, %v2035_v23, %v2031_v21 }
 0xaf6   :  { %v2004_v62 = vpop.xlane.xlu0 %2003 }
 0xaf7   :  { %v2039_v25 = vrot.slane %v2004_v62, %v3031_v60 }
 0xaf9   :  { %v2061_v0 = vsel %vm531_vm2, %v2039_v25, %v2060_v13 }
 0xafa   :  { %v2007_v19 = vpop.xlane.xlu0 %2006  ;;  %v2010_v29 = vpop.xlane.xlu1 %2009 }
 0xafb   :  { %v2043_v15 = vrot.slane %v2007_v19, %v3031_v60  ;;  %v2047_v24 = vrot.slane %v2010_v29, %v3031_v60 }
 0xafd   :  { %v2062_v17 = vsel %vm533_vm3, %v2043_v15, %v2061_v0 }
 0xafe   :  { %v2013_v12 = vpop.xlane.xlu0 %2012  ;;  %v2016_v7 = vpop.xlane.xlu1 %2015  ;;  %v2063_v63 = vsel %vm535_vm4, %v2047_v24, %v2062_v17 }
 0xaff   :  { %v2051_v28 = vrot.slane %v2013_v12, %v3031_v60  ;;  %v2055_v40 = vrot.slane %v2016_v7, %v3031_v60 }
 0xb01   :  { %v2064_v55 = vsel %vm537_vm5, %v2051_v28, %v2063_v63 }
 0xb02   :  { %v2019_v38 = vpop.xlane.xlu0 %2018  ;;  %v2065_v33 = vsel %vm539_vm6, %v2055_v40, %v2064_v55 }
 0xb03   :  { %v2059_v32 = vrot.slane %v2019_v38, %v3031_v60 }
 0xb05   :  { %v2066_v8 = vsel %vm541_vm7, %v2059_v32, %v2065_v33 }
 0xb06   :  { %v2068_v18 = vsel %vm544_vm8, %v2066_v8, -inf }
 0xb07   :  { %2069 = vmax.xlane.f32.xlu1 %v2068_v18 }
 0xb94   :  { %v2070_v3 = vpop.xlane.xlu1 %2069 }
 0xb95   :  { %v2075_v14 = vrot.slane %v2070_v3, %v3050_v41  ;;  %v2079_v11 = vrot.slane %v2070_v3, %v3053_v42  ;;  %v2083_v30 = vrot.slane %v2070_v3, %v3056_v43  ;;  %v2091_v4 = vrot.slane %v2070_v3, %v3065_v51 }
 0xb96   :  { %v2099_v1 = vrot.slane %v2070_v3, %v3073_v59  ;;  %v2087_v27 = vrot.slane %v2070_v3, %v3059_v44  ;;  %v2095_v16 = vrot.slane %v2070_v3, %v3069_v56  ;;  %v2103_v46 = vrot.slane %v2070_v3, %v3077_v6 }
 0xb97   :  { %v2112_v49 = vsub.f32 %v1998_v37, %v2075_v14  ;;  %v2113_v26 = vsub.f32 %v2001_v2, %v2079_v11  ;;  %v2114_v10 = vsub.f32 %v2004_v62, %v2083_v30  ;;  %v2116_v9 = vsub.f32 %v2010_v29, %v2091_v4 }
 0xb98   :  { %v2118_v47 = vsub.f32 %v2016_v7, %v2099_v1  ;;  %v2115_v34 = vsub.f32 %v2007_v19, %v2087_v27  ;;  %v2117_v45 = vsub.f32 %v2013_v12, %v2095_v16  ;;  %v2119_v48 = vsub.f32 %v2019_v38, %v2103_v46  ;;  %v2753_v46 = vld [vmem:[#allocation2] sm:$0xff] }
 0xb99   :  { %v2120_v20 = vmul.f32 1.442695, %v2112_v49  ;;  %v2122_v5 = vmul.f32 1.442695, %v2113_v26  ;;  %v2128_v50 = vmul.f32 1.442695, %v2116_v9 }
 0xb9a   :  { %v2124_v36 = vmul.f32 1.442695, %v2114_v10  ;;  %v2132_v57 = vmul.f32 1.442695, %v2118_v47  ;;  %v2126_v35 = vmul.f32 1.442695, %v2115_v34 }
 0xb9b   :  { %2733 = vpow2.f32 %v2120_v20  ;;  %v2130_v61 = vmul.f32 1.442695, %v2117_v45  ;;  %v2134_v52 = vmul.f32 1.442695, %v2119_v48  ;;  %v2754_v48 = vld [vmem:[#allocation2 + $0x10] sm:$0xff] }
 0xb9c   :  { %2735 = vpow2.f32 %v2122_v5 }
 0xb9d   :  { %2737 = vpow2.f32 %v2128_v50 }
 0xb9e   :  { %2739 = vpow2.f32 %v2124_v36  ;;  %v2752_v36 = vld [vmem:[#allocation2 + $0x8] sm:$0xff] }
 0xb9f   :  { %2741 = vpow2.f32 %v2132_v57 }
 0xba0   :  { %2743 = vpow2.f32 %v2126_v35 }
 0xba1   :  { %2745 = vpow2.f32 %v2130_v61 }
 0xba2   :  { %2747 = vpow2.f32 %v2134_v52  ;;  %v2755_v52 = vld [vmem:[#allocation2 + $0x38] sm:$0xff] }
 0xba5   :  { %v2734_v58 = vpop.eup %2733 }
 0xba6   :  { %v2736_v39 = vpop.eup %2735  ;;  %2145 = vperm.xlu0 %2596, %v2734_v58  }
 0xba7   :  { %2148 = vperm.xlu1 %2595, %v2736_v39   ;;  %v2738_v54 = vpop.eup %2737 }
 0xba8   :  { %v2740_v31 = vpop.eup %2739 }
 0xba9   :  { %v2742_v22 = vpop.eup %2741 }
 0xbaa   :  { %2157 = vperm.xlu0 %2596, %v2738_v54   ;;  %v2744_v2 = vpop.eup %2743 }
 0xbab   :  { %2151 = vperm.xlu1 %2595, %v2740_v31   ;;  %v2746_v37 = vpop.eup %2745 }
 0xbac   :  { %v2748_v62 = vpop.eup %2747 }
 0xbae   :  { %2163 = vperm.xlu0 %2596, %v2742_v22  }
 0xbaf   :  { %2154 = vperm.xlu1 %2595, %v2744_v2  }
 0xbb3   :  { %2160 = vperm.xlu1 %2595, %v2746_v37  }
 0xbb7   :  { %2166 = vperm.xlu1 %2595, %v2748_v62  }
 0xc25   :  { %v2146_v21 = vpop.permute.xlu0 %2145 }
 0xc26   :  { %v2149_v23 = vpop.permute.xlu1 %2148  ;;  %v2171_v29 = vrot.slane %v2146_v21, %v3031_v60 }
 0xc27   :  { %v2175_v19 = vrot.slane %v2149_v23, %v3031_v60 }
 0xc29   :  { %v2158_v15 = vpop.permute.xlu0 %2157  ;;  %v2200_v24 = vsel %vm529_vm1, %v2175_v19, %v2171_v29 }
 0xc2a   :  { %v2152_v25 = vpop.permute.xlu1 %2151  ;;  %v2187_v28 = vrot.slane %v2158_v15, %v3031_v60  ;;  %v2757_v15 = vld [vmem:[#allocation2 + $0x20] sm:$0xff] }
 0xc2b   :  { %v2179_v13 = vrot.slane %v2152_v25, %v3031_v60 }
 0xc2d   :  { %v2201_v12 = vsel %vm531_vm2, %v2179_v13, %v2200_v24  ;;  %v2164_v40 = vpop.permute.xlu0 %2163 }
 0xc2e   :  { %v2155_v0 = vpop.permute.xlu1 %2154  ;;  %v2195_v33 = vrot.slane %v2164_v40, %v3031_v60 }
 0xc2f   :  { %v2183_v17 = vrot.slane %v2155_v0, %v3031_v60 }
 0xc31   :  { %v2202_v7 = vsel %vm533_vm3, %v2183_v17, %v2201_v12 }
 0xc32   :  { %v2161_v63 = vpop.permute.xlu1 %2160  ;;  %v2203_v38 = vsel %vm535_vm4, %v2187_v28, %v2202_v7 }
 0xc33   :  { %v2191_v55 = vrot.slane %v2161_v63, %v3031_v60 }
 0xc35   :  { %v2204_v32 = vsel %vm537_vm5, %v2191_v55, %v2203_v38 }
 0xc36   :  { %v2167_v8 = vpop.permute.xlu1 %2166  ;;  %v2205_v3 = vsel %vm539_vm6, %v2195_v33, %v2204_v32  ;;  %v2758_v32 = vld [vmem:[#allocation2 + $0x28] sm:$0xff] }
 0xc37   :  { %v2199_v18 = vrot.slane %v2167_v8, %v3031_v60 }
 0xc39   :  { %v2206_v14 = vsel %vm541_vm7, %v2199_v18, %v2205_v3 }
 0xc3a   :  { %v2208_v11 = vsel %vm544_vm8, %v2206_v14, 0.0 }
 0xc3b   :  { %2209 = vadd.xlane.f32.xlu0 %v2208_v11 }
 0xcc8   :  { %v2210_v30 = vpop.xlane.xlu0 %2209 }
 0xcc9   :  { %2749 = vrcp.f32 %v2210_v30 }
 0xcd3   :  { %v2750_v4 = vpop.eup %2749 }
 0xcd4   :  { %v2244_v1 = vrot.slane %v2750_v4, %v3077_v6  ;;  %v2216_v49 = vrot.slane %v2750_v4, %v3050_v41  ;;  %v2220_v10 = vrot.slane %v2750_v4, %v3053_v42  ;;  %v2224_v9 = vrot.slane %v2750_v4, %v3056_v43 }
 0xcd5   :  { %v2228_v5 = vrot.slane %v2750_v4, %v3059_v44  ;;  %v2232_v50 = vrot.slane %v2750_v4, %v3065_v51  ;;  %v2236_v41 = vrot.slane %v2750_v4, %v3069_v56  ;;  %v2240_v42 = vrot.slane %v2750_v4, %v3073_v59 }
 0xcd6   :  { %v2260_v26 = vmul.f32 %v2748_v62, %v2244_v1  ;;  %v2253_v27 = vmul.f32 %v2734_v58, %v2216_v49  ;;  %v2254_v60 = vmul.f32 %v2736_v39, %v2220_v10  ;;  %v2255_v20 = vmul.f32 %v2740_v31, %v2224_v9 }
 0xcd7   :  { %v2256_v47 = vmul.f32 %v2744_v2, %v2228_v5  ;;  %v2257_v6 = vmul.f32 %v2738_v54, %v2232_v50  ;;  %v2258_v16 = vmul.f32 %v2746_v37, %v2236_v41  ;;  %v2259_v34 = vmul.f32 %v2742_v22, %v2240_v42  ;;  %v2756_v2 = vld [vmem:[#allocation2 + $0x18] sm:$0xff] }
 0xcd8   :  { %2298 = vperm.xlu0 %2596, %v2260_v26   ;;  %2263 = vperm.xlu1 %2595, %v2253_v27   ;;  %v2759_v27 = vld [vmem:[#allocation2 + $0x30] sm:$0xff] }
 0xcdc   :  { %2268 = vperm.xlu1 %2595, %v2254_v60  }
 0xce0   :  { %2273 = vperm.xlu1 %2595, %v2255_v20  }
 0xce4   :  { %2278 = vperm.xlu1 %2595, %v2256_v47  }
 0xce8   :  { %2283 = vperm.xlu1 %2595, %v2257_v6  }
 0xcec   :  { %2288 = vperm.xlu1 %2595, %v2258_v16  }
 0xcf0   :  { %2293 = vperm.xlu1 %2595, %v2259_v34  }
 0xcf4   :  { %2382 = vrot.lane.b32.xlu1 %v3535_v53, %s2863_s10 }
 0xd57   :  { %v2264_v43 = vpop.permute.xlu1 %2263  ;;  %v2299_v56 = vpop.permute.xlu0 %2298 }
 0xd58   :  { %v2301_v51 = vmul.f32 %v2753_v46, %v2264_v43  ;;  %v2308_v54 = vmul.f32 %v2755_v52, %v2299_v56 }
 0xd5a   :  { %v2309_v59 = vsel %vm90_vm0, %v2301_v51, 0.0  ;;  %v2358_v21 = vsel %vm90_vm0, %v2308_v54, 0.0 }
 0xd5b   :  { %v2269_v44 = vpop.permute.xlu1 %2268  ;;  %v2310_v22 = vrot.slane %v2309_v59, 4  ;;  %v2359_v17 = vrot.slane %v2358_v21, 4 }
 0xd5c   :  { %v2302_v57 = vmul.f32 %v2752_v36, %v2269_v44 }
 0xd5d   :  { %v2311_v13 = vadd.f32 %v2310_v22, %v2309_v59  ;;  %v2360_v18 = vadd.f32 %v2359_v17, %v2358_v21 }
 0xd5e   :  { %v2316_v45 = vsel %vm90_vm0, %v2302_v57, 0.0 }
 0xd5f   :  { %v2274_v35 = vpop.permute.xlu1 %2273  ;;  %v2317_v58 = vrot.slane %v2316_v45, 4  ;;  %v2312_v55 = vrot.slane %v2311_v13, 2  ;;  %v2361_v20 = vrot.slane %v2360_v18, 2 }
 0xd60   :  { %v2303_v61 = vmul.f32 %v2754_v48, %v2274_v35 }
 0xd61   :  { %v2318_v62 = vadd.f32 %v2317_v58, %v2316_v45  ;;  %v2313_v49 = vadd.f32 %v2312_v55, %v2311_v13  ;;  %v2362_v36 = vadd.f32 %v2361_v20, %v2360_v18 }
 0xd62   :  { %v2323_v39 = vsel %vm90_vm0, %v2303_v61, 0.0 }
 0xd63   :  { %v2324_v53 = vrot.slane %v2323_v39, 4  ;;  %v2279_v31 = vpop.permute.xlu1 %2278  ;;  %v2319_v12 = vrot.slane %v2318_v62, 2  ;;  %v2314_v16 = vrot.slane %v2313_v49, 1  ;;  %v2363_v59 = vrot.slane %v2362_v36, 1 }
 0xd64   :  { %v2304_v37 = vmul.f32 %v2756_v2, %v2279_v31 }
 0xd65   :  { %v2325_v25 = vadd.f32 %v2324_v53, %v2323_v39  ;;  %v2320_v3 = vadd.f32 %v2319_v12, %v2318_v62  ;;  %v2315_v35 = vadd.f32 %v2314_v16, %v2313_v49  ;;  %v2364_v2 = vadd.f32 %v2363_v59, %v2362_v36 }
 0xd66   :  { %v2330_v23 = vsel %vm90_vm0, %v2304_v37, 0.0 }
 0xd67   :  { %v2331_v19 = vrot.slane %v2330_v23, 4  ;;  %v2284_v29 = vpop.permute.xlu1 %2283  ;;  %v2326_v28 = vrot.slane %v2325_v25, 2  ;;  %v2321_v5 = vrot.slane %v2320_v3, 1 }
 0xd68   :  { %v2305_v0 = vmul.f32 %v2757_v15, %v2284_v29 }
 0xd69   :  { %v2332_v24 = vadd.f32 %v2331_v19, %v2330_v23  ;;  %v2327_v11 = vadd.f32 %v2326_v28, %v2325_v25  ;;  %v2322_v57 = vadd.f32 %v2321_v5, %v2320_v3 }
 0xd6a   :  { %v2337_v7 = vsel %vm90_vm0, %v2305_v0, 0.0 }
 0xd6b   :  { %v2338_v63 = vrot.slane %v2337_v7, 4  ;;  %v2289_v40 = vpop.permute.xlu1 %2288  ;;  %v2333_v38 = vrot.slane %v2332_v24, 2  ;;  %v2328_v50 = vrot.slane %v2327_v11, 1  ;;  %v2373_v58 = vsel %vm529_vm1, %v2322_v57, %v2315_v35 }
 0xd6c   :  { %v2306_v33 = vmul.f32 %v2758_v32, %v2289_v40 }
 0xd6d   :  { %v2339_v8 = vadd.f32 %v2338_v63, %v2337_v7  ;;  %v2334_v26 = vadd.f32 %v2333_v38, %v2332_v24  ;;  %v2329_v46 = vadd.f32 %v2328_v50, %v2327_v11 }
 0xd6e   :  { %v2344_v14 = vsel %vm90_vm0, %v2306_v33, 0.0 }
 0xd6f   :  { %v2340_v30 = vrot.slane %v2339_v8, 2  ;;  %v2345_v4 = vrot.slane %v2344_v14, 4  ;;  %v2294_v1 = vpop.permute.xlu1 %2293  ;;  %v2335_v42 = vrot.slane %v2334_v26, 1  ;;  %v2374_v52 = vsel %vm531_vm2, %v2329_v46, %v2373_v58 }
 0xd70   :  { %v2307_v10 = vmul.f32 %v2759_v27, %v2294_v1 }
 0xd71   :  { %v2341_v60 = vadd.f32 %v2340_v30, %v2339_v8  ;;  %v2346_v9 = vadd.f32 %v2345_v4, %v2344_v14  ;;  %v2336_v56 = vadd.f32 %v2335_v42, %v2334_v26 }
 0xd72   :  { %v2351_v47 = vsel %vm90_vm0, %v2307_v10, 0.0 }
 0xd73   :  { %v2347_v6 = vrot.slane %v2346_v9, 2  ;;  %v2352_v41 = vrot.slane %v2351_v47, 4  ;;  %v2342_v34 = vrot.slane %v2341_v60, 1  ;;  %v2375_v53 = vsel %vm533_vm3, %v2336_v56, %v2374_v52  ;;  %v2383_v21 = vpop.permute.xlu1 %2382 }
 0xd75   :  { %v2348_v43 = vadd.f32 %v2347_v6, %v2346_v9  ;;  %v2353_v44 = vadd.f32 %v2352_v41, %v2351_v47  ;;  %v2343_v48 = vadd.f32 %v2342_v34, %v2341_v60 }
 0xd77   :  { %v2349_v51 = vrot.slane %v2348_v43, 1  ;;  %v2354_v45 = vrot.slane %v2353_v44, 2  ;;  %v2376_v31 = vsel %vm535_vm4, %v2343_v48, %v2375_v53 }
 0xd79   :  { %v2355_v61 = vadd.f32 %v2354_v45, %v2353_v44  ;;  %v2350_v39 = vadd.f32 %v2349_v51, %v2348_v43 }
 0xd7b   :  { %v2356_v54 = vrot.slane %v2355_v61, 1  ;;  %v2377_v37 = vsel %vm537_vm5, %v2350_v39, %v2376_v31 }
 0xd7d   :  { %v2357_v22 = vadd.f32 %v2356_v54, %v2355_v61 }
 0xd7f   :  { %v2378_v62 = vsel %vm539_vm6, %v2357_v22, %v2377_v37 }
 0xd80   :  { %v2379_v23 = vsel %vm541_vm7, %v2364_v2, %v2378_v62 }
 0xd81   :  { %2381 = vst.msk [vmem:[#allocation8] sm:$0xff] %vm90_vm0, %v2379_v23 }
 0xd82   :  { %2386 = vst.msk [vmem:[#allocation8] sm:$0xff] %vm2385_vm12, %v2383_v21 }
 0xd83   :  { %2837 = shalt.err (!%p2834_p0)
}
 0xd84   :  { %s2838_s23 = scalar_lea.hbm %s3668_s5, 128 }
 0xd85   :  { %p2839_p1 = scmp.ne.s32.totalorder %s3668_s5, %s2838_s23  ;;  %p2842_p2 = scmp.lt.u32.totalorder %s2838_s23, %s3668_s5 }
 0xd87   :  { %p2844_p3 = pnand %p2842_p2, %p2839_p1 }
 0xd89   :  { %2847 = shalt.err (!%p2844_p3)
}
 0xd8a   :  { %2396 = dma.vmem_to_hbm [thread:$0]  %s2394_s18, 128, %s3668_s5, [#allocation4]  }
 0xd8b   :  { %2852 = dma.done.wait [#allocation4], 128  }
 0xd8c   :  { %2853 = vsyncadd [#allocation4], 4294967168 }
 0xd8d   :  { %2400 = vsyncpa [#allocation3], 1 }
 0xd8e   :  { %2401 = vsyncpa [#allocation6], 1 }
 0xd8f   :  { %2402 = vsyncpa [#allocation4], 1 }

</bundles_post_ra>
